<compile_context>
chip_gen: v5e
topology: v5e:2x2
jax: 0.10.0
libtpu: 0.0.40
codegen_flags: <defaults>
</compile_context>

<pallas_src>
import jax
import jax.numpy as jnp
from jax.experimental import pallas as pl
from jax.experimental.pallas import tpu as pltpu


# ------------------------------ fused kernel ---------------------------------
def _make_flow_lstm_kernel(T, BP, H, num_layers):
    """Fused (LSTM stack + FC) kernel for static T, padded batch BP, hidden H.

    Weight layout (packed gates): W_ih^T (in_f, 4H), W_hh^T (H, 4H),
    bias (1, 4H), all with gate order [i | f | g | o], each H lanes wide.
    """
    G = 4 * H  # packed gate width (128 when H == 32)

    def kernel(*refs):
        n_w = 3 * num_layers
        x_ref = refs[0]                              # (T*BP, FP)  bf16
        layer_refs = refs[1:1 + n_w]                 # per layer: Wih^T, Whh^T, b
        wfc_ref = refs[1 + n_w]                      # (H, OP)  bf16
        bfc_ref = refs[2 + n_w]                      # (1, OP)  f32
        out_ref = refs[3 + n_w]                      # (T*BP, OP) f32
        gx_ref = refs[4 + n_w]                       # (T*BP, G)  f32 scratch

        wih = [layer_refs[3 * l + 0] for l in range(num_layers)]
        whh = [layer_refs[3 * l + 1] for l in range(num_layers)]
        bias = [layer_refs[3 * l + 2] for l in range(num_layers)]

        # Hoisted layer-0 input projection for ALL timesteps (off the
        # recurrent critical path): one big (T*BP, FP) @ (FP, G) matmul.
        gx_ref[...] = (
            jnp.dot(x_ref[...], wih[0][...],
                    preferred_element_type=jnp.float32)
            + bias[0][...])

        h = [jnp.zeros((BP, H), jnp.float32) for _ in range(num_layers)]
        c = [jnp.zeros((BP, H), jnp.float32) for _ in range(num_layers)]

        def cell(gates, c_prev):
            # Whole-vreg nonlinearities over the packed gates, then 32-lane
            # slices.  sigmoid(x) = 0.5*(1 + tanh(0.5*x)) -> one EUP push.
            sig = 0.5 * jnp.tanh(0.5 * gates) + 0.5
            tnh = jnp.tanh(gates)
            i_g = sig[:, 0 * H:1 * H]
            f_g = sig[:, 1 * H:2 * H]
            g_g = tnh[:, 2 * H:3 * H]
            o_g = sig[:, 3 * H:4 * H]
            c_new = f_g * c_prev + i_g * g_g
            h_new = o_g * jnp.tanh(c_new)
            return h_new, c_new

        # Wavefront over s = t + layer: serial depth T + L - 1 instead of T*L;
        # layer bodies inside one wavefront step are mutually independent.
        for s in range(T + num_layers - 1):
            h_prev = list(h)  # snapshot of last wavefront step's hidden states
            for l in range(num_layers):
                t = s - l
                if not (0 <= t < T):
                    continue
                if l == 0:
                    gates = gx_ref[t * BP:(t + 1) * BP, :]
                else:
                    # Per-step input projection from the layer below (its h at
                    # time t, produced in the previous wavefront step).
                    gates = (
                        jnp.dot(h_prev[l - 1].astype(jnp.bfloat16),
                                wih[l][...],
                                preferred_element_type=jnp.float32)
                        + bias[l][...])
                # Recurrent term: single (BP,H) @ (H,4H) MXU pass.
                gates = gates + jnp.dot(
                    h_prev[l].astype(jnp.bfloat16), whh[l][...],
                    preferred_element_type=jnp.float32)
                h[l], c[l] = cell(gates, c[l])
                if l == num_layers - 1:
                    # Fused output FC, lane-dense (BP, OP) store.
                    out_ref[t * BP:(t + 1) * BP, :] = (
                        jnp.dot(h[l].astype(jnp.bfloat16), wfc_ref[...],
                                preferred_element_type=jnp.float32)
                        + bfc_ref[...])

    return kernel


# --------------------------------- parameters ---------------------------------
def init_raw_params(key, input_size, hidden_size, num_layers, out_size):
    """PyTorch-style U(-1/sqrt(H), 1/sqrt(H)) init; raw (unpadded, f32) layout."""
    H = hidden_size
    bound = 1.0 / float(H) ** 0.5
    keys = jax.random.split(key, num_layers * 4 + 2)
    u = lambda k, shape: jax.random.uniform(k, shape, jnp.float32,
                                            minval=-bound, maxval=bound)
    layers = []
    ki = 0
    for layer in range(num_layers):
        in_f = input_size if layer == 0 else H
        layers.append({
            "w_ih": u(keys[ki + 0], (4 * H, in_f)),
            "w_hh": u(keys[ki + 1], (4 * H, H)),
            "b_ih": u(keys[ki + 2], (4 * H,)),
            "b_hh": u(keys[ki + 3], (4 * H,)),
        })
        ki += 4
    w_fc = u(keys[ki + 0], (out_size, H))
    b_fc = u(keys[ki + 1], (out_size,))
    return {"layers": layers, "w_fc": w_fc, "b_fc": b_fc}


def prepare_params(raw, hidden_size, input_size, out_size,
                   feat_pad=128, out_pad=128):
    """Packed-gate layout: columns are [i|f|g|o], each H wide (no per-gate pad).

    Layer-0 input rows are padded to `feat_pad` (lane-dense x); the FC output
    is padded to `out_pad` lanes.  Matmul weights are bf16, biases f32.
    """
    H = hidden_size
    layers = []
    for layer_idx, lw in enumerate(raw["layers"]):
        in_f = input_size if layer_idx == 0 else H
        in_fp = feat_pad if layer_idx == 0 else H
        wih_t = jnp.transpose(lw["w_ih"])                       # (in_f, 4H)
        wih_t = jnp.pad(wih_t, ((0, in_fp - in_f), (0, 0)))     # (in_fp, 4H)
        whh_t = jnp.transpose(lw["w_hh"])                       # (H, 4H)
        bias = (lw["b_ih"] + lw["b_hh"]).reshape(1, 4 * H)      # (1, 4H) f32
        layers.append({
            "w_ih_t": wih_t.astype(jnp.bfloat16),
            "w_hh_t": whh_t.astype(jnp.bfloat16),
            "bias": bias,
        })
    w_fc_t = jnp.pad(jnp.transpose(raw["w_fc"]),
                     ((0, 0), (0, out_pad - out_size)))          # (H, OP)
    b_fc = jnp.pad(raw["b_fc"].reshape(1, -1),
                   ((0, 0), (0, out_pad - out_size)))            # (1, OP)
    return {"layers": layers,
            "w_fc_t": w_fc_t.astype(jnp.bfloat16),
            "b_fc": b_fc}


# ----------------------------------- forward -----------------------------------
def flow_lstm_forward(params, x_btf, out_size):
    """x_btf: (B, T, F) batch_first (PyTorch convention) -> (B, T, out_size)."""
    B, T, F = x_btf.shape
    H = params["layers"][0]["w_hh_t"].shape[0]            # hidden size
    G = params["layers"][0]["w_hh_t"].shape[1]            # 4*H (packed gates)
    FP = params["layers"][0]["w_ih_t"].shape[0]            # padded feature dim
    OP = params["w_fc_t"].shape[1]                         # padded output dim
    num_layers = len(params["layers"])
    BP = ((B + 7) // 8) * 8                                # sublane-pad batch

    # (B,T,F) -> (T,BP,FP) lane-dense bf16 -> (T*BP, FP); row = t*BP + b.
    x = jnp.transpose(x_btf.astype(jnp.float32), (1, 0, 2))
    x = jnp.pad(x, ((0, 0), (0, BP - B), (0, FP - F)))
    x_2d = x.reshape(T * BP, FP).astype(jnp.bfloat16)

    inputs = [x_2d]
    for lp in params["layers"]:
        inputs += [lp["w_ih_t"], lp["w_hh_t"], lp["bias"]]
    inputs += [params["w_fc_t"], params["b_fc"]]

    kernel = _make_flow_lstm_kernel(T, BP, H, num_layers)
    vmem = pltpu.MemorySpace.VMEM

    out_2d = pl.pallas_call(
        kernel,
        out_shape=jax.ShapeDtypeStruct((T * BP, OP), jnp.float32),
        in_specs=[pl.BlockSpec(memory_space=vmem) for _ in inputs],
        out_specs=pl.BlockSpec(memory_space=vmem),
        scratch_shapes=[
            pltpu.VMEM((T * BP, G), jnp.float32),   # hoisted layer-0 gate pre-acts
        ],
    )(*inputs)

    out = out_2d.reshape(T, BP, OP)[:, :B, :out_size]       # (T, B, out)
    return jnp.transpose(out, (1, 0, 2))                    # (B, T, out)


# ------------------------- pure-JAX reference (f32) ----------------------------
def reference_forward(raw, x_btf, hidden_size):
    H = hidden_size
    x = jnp.transpose(x_btf.astype(jnp.float32), (1, 0, 2))  # (T, B, F)
    T, B, _ = x.shape
    h_seq = x
    for lw in raw["layers"]:
        w_ih, w_hh = lw["w_ih"], lw["w_hh"]
        b = lw["b_ih"] + lw["b_hh"]
        h = jnp.zeros((B, H), jnp.float32)
        c = jnp.zeros((B, H), jnp.float32)
        outs = []
        for t in range(T):
            g = h_seq[t] @ w_ih.T + h @ w_hh.T + b
            i_g = jax.nn.sigmoid(g[:, 0 * H:1 * H])
            f_g = jax.nn.sigmoid(g[:, 1 * H:2 * H])
            g_g = jnp.tanh(g[:, 2 * H:3 * H])
            o_g = jax.nn.sigmoid(g[:, 3 * H:4 * H])
            c = f_g * c + i_g * g_g
            h = o_g * jnp.tanh(c)
            outs.append(h)
        h_seq = jnp.stack(outs, axis=0)
    out = h_seq @ raw["w_fc"].T + raw["b_fc"]
    return jnp.transpose(out, (1, 0, 2))


if __name__ == "__main__":
    batch_size = 2
    seq_len = 19
    input_size = 17
    hidden_size = 32
    num_layers = 2

    key = jax.random.PRNGKey(0)
    k_param, k_x = jax.random.split(key)

    raw = init_raw_params(k_param, input_size, hidden_size, num_layers,
                          out_size=input_size)
    params = prepare_params(raw, hidden_size, input_size, out_size=input_size)
    x = jax.random.normal(k_x, (batch_size, seq_len, input_size), jnp.float32)

    fwd = jax.jit(flow_lstm_forward, static_argnames=("out_size",))
    out = fwd(params, x, out_size=input_size)
    out = jax.block_until_ready(out)

    assert out.shape == (batch_size, seq_len, input_size), out.shape
    assert out.dtype == jnp.float32
    assert bool(jnp.all(jnp.isfinite(out)))

    # Numerical sanity vs. pure-JAX f32 reference (bf16 MXU operands in kernel).
    ref = jax.block_until_ready(reference_forward(raw, x, hidden_size))
    max_err = float(jnp.max(jnp.abs(out - ref)))
    assert max_err < 0.1, f"max abs error vs reference: {max_err}"

    print("KERNEL_OK")
</pallas_src>

<mosaic_0001>
module attributes {stable_mosaic.version = 11 : i64} {
  func.func @kernel(%arg0: memref<152x128xbf16, #tpu.memory_space<vmem>>, %arg1: memref<128x128xbf16, #tpu.memory_space<vmem>>, %arg2: memref<32x128xbf16, #tpu.memory_space<vmem>>, %arg3: memref<1x128xf32, #tpu.memory_space<vmem>>, %arg4: memref<32x128xbf16, #tpu.memory_space<vmem>>, %arg5: memref<32x128xbf16, #tpu.memory_space<vmem>>, %arg6: memref<1x128xf32, #tpu.memory_space<vmem>>, %arg7: memref<32x128xbf16, #tpu.memory_space<vmem>>, %arg8: memref<1x128xf32, #tpu.memory_space<vmem>>, %arg9: memref<152x128xf32, #tpu.memory_space<vmem>>, %arg10: memref<152x128xf32, #tpu.memory_space<vmem>>) attributes {dimension_semantics = [], scalar_prefetch = 0 : i64, scratch_operands = 1 : i64, tpu.core_type = #tpu.core_type<tc>} {
    %c0 = arith.constant 0 : index
    %c0_0 = arith.constant 0 : index
    %0 = vector.load %arg0[%c0, %c0_0] : memref<152x128xbf16, #tpu.memory_space<vmem>>, vector<152x128xbf16>
    %c0_1 = arith.constant 0 : index
    %c0_2 = arith.constant 0 : index
    %1 = vector.load %arg1[%c0_1, %c0_2] : memref<128x128xbf16, #tpu.memory_space<vmem>>, vector<128x128xbf16>
    %cst = arith.constant dense<0.000000e+00> : vector<152x128xf32>
    %2 = tpu.matmul %0, %1, %cst {dimension_numbers = #tpu.dot_dimension_numbers<[1], [0], [0], [1], [0, 0, 1, 1], [], []>} : vector<152x128xbf16>, vector<128x128xbf16>, vector<152x128xf32> -> vector<152x128xf32>
    %c0_3 = arith.constant 0 : index
    %c0_4 = arith.constant 0 : index
    %3 = vector.load %arg3[%c0_3, %c0_4] : memref<1x128xf32, #tpu.memory_space<vmem>>, vector<1x128xf32>
    %4 = vector.broadcast %3 : vector<1x128xf32> to vector<152x128xf32>
    %5 = arith.addf %2, %4 : vector<152x128xf32>
    %c0_5 = arith.constant 0 : index
    %c0_6 = arith.constant 0 : index
    %6 = vector.load %arg10[%c0_5, %c0_6] : memref<152x128xf32, #tpu.memory_space<vmem>>, vector<152x128xf32>
    tpu.vector_store %arg10[%c0_5, %c0_6], %5 {strides = array<i32>} : memref<152x128xf32, #tpu.memory_space<vmem>>, vector<152x128xf32>,
    %cst_7 = arith.constant 0.000000e+00 : f32
    %7 = vector.broadcast %cst_7 : f32 to vector<8x32xf32>
    %cst_8 = arith.constant 0.000000e+00 : f32
    %8 = vector.broadcast %cst_8 : f32 to vector<8x32xf32>
    %cst_9 = arith.constant 0.000000e+00 : f32
    %9 = vector.broadcast %cst_9 : f32 to vector<8x32xf32>
    %cst_10 = arith.constant 0.000000e+00 : f32
    %10 = vector.broadcast %cst_10 : f32 to vector<8x32xf32>
    %c0_11 = arith.constant 0 : index
    %c0_12 = arith.constant 0 : index
    %11 = vector.load %arg10[%c0_11, %c0_12] : memref<152x128xf32, #tpu.memory_space<vmem>>, vector<8x128xf32>
    %12 = arith.truncf %7 : vector<8x32xf32> to vector<8x32xbf16>
    %c0_13 = arith.constant 0 : index
    %c0_14 = arith.constant 0 : index
    %13 = vector.load %arg2[%c0_13, %c0_14] : memref<32x128xbf16, #tpu.memory_space<vmem>>, vector<32x128xbf16>
    %cst_15 = arith.constant dense<0.000000e+00> : vector<8x128xf32>
    %14 = tpu.matmul %12, %13, %cst_15 {dimension_numbers = #tpu.dot_dimension_numbers<[1], [0], [0], [1], [0, 0, 1, 1], [], []>} : vector<8x32xbf16>, vector<32x128xbf16>, vector<8x128xf32> -> vector<8x128xf32>
    %15 = arith.addf %11, %14 : vector<8x128xf32>
    %cst_16 = arith.constant 5.000000e-01 : f32
    %16 = vector.broadcast %cst_16 : f32 to vector<8x128xf32>
    %17 = arith.mulf %16, %15 : vector<8x128xf32>
    %18 = math.tanh %17 : vector<8x128xf32>
    %cst_17 = arith.constant 5.000000e-01 : f32
    %19 = vector.broadcast %cst_17 : f32 to vector<8x128xf32>
    %20 = arith.mulf %19, %18 : vector<8x128xf32>
    %cst_18 = arith.constant 5.000000e-01 : f32
    %21 = vector.broadcast %cst_18 : f32 to vector<8x128xf32>
    %22 = arith.addf %20, %21 : vector<8x128xf32>
    %23 = math.tanh %15 : vector<8x128xf32>
    %24 = vector.extract_strided_slice %22 {offsets = [0, 0], sizes = [8, 32], strides = [1, 1]} : vector<8x128xf32> to vector<8x32xf32>
    %25 = vector.extract_strided_slice %22 {offsets = [0, 32], sizes = [8, 32], strides = [1, 1]} : vector<8x128xf32> to vector<8x32xf32>
    %26 = vector.extract_strided_slice %23 {offsets = [0, 64], sizes = [8, 32], strides = [1, 1]} : vector<8x128xf32> to vector<8x32xf32>
    %27 = vector.extract_strided_slice %22 {offsets = [0, 96], sizes = [8, 32], strides = [1, 1]} : vector<8x128xf32> to vector<8x32xf32>
    %28 = arith.mulf %25, %9 : vector<8x32xf32>
    %29 = arith.mulf %24, %26 : vector<8x32xf32>
    %30 = arith.addf %28, %29 : vector<8x32xf32>
    %31 = math.tanh %30 : vector<8x32xf32>
    %32 = arith.mulf %27, %31 : vector<8x32xf32>
    %c8 = arith.constant 8 : index
    %c0_19 = arith.constant 0 : index
    %33 = vector.load %arg10[%c8, %c0_19] : memref<152x128xf32, #tpu.memory_space<vmem>>, vector<8x128xf32>
    %34 = arith.truncf %32 : vector<8x32xf32> to vector<8x32xbf16>
    %c0_20 = arith.constant 0 : index
    %c0_21 = arith.constant 0 : index
    %35 = vector.load %arg2[%c0_20, %c0_21] : memref<32x128xbf16, #tpu.memory_space<vmem>>, vector<32x128xbf16>
    %cst_22 = arith.constant dense<0.000000e+00> : vector<8x128xf32>
    %36 = tpu.matmul %34, %35, %cst_22 {dimension_numbers = #tpu.dot_dimension_numbers<[1], [0], [0], [1], [0, 0, 1, 1], [], []>} : vector<8x32xbf16>, vector<32x128xbf16>, vector<8x128xf32> -> vector<8x128xf32>
    %37 = arith.addf %33, %36 : vector<8x128xf32>
    %cst_23 = arith.constant 5.000000e-01 : f32
    %38 = vector.broadcast %cst_23 : f32 to vector<8x128xf32>
    %39 = arith.mulf %38, %37 : vector<8x128xf32>
    %40 = math.tanh %39 : vector<8x128xf32>
    %cst_24 = arith.constant 5.000000e-01 : f32
    %41 = vector.broadcast %cst_24 : f32 to vector<8x128xf32>
    %42 = arith.mulf %41, %40 : vector<8x128xf32>
    %cst_25 = arith.constant 5.000000e-01 : f32
    %43 = vector.broadcast %cst_25 : f32 to vector<8x128xf32>
    %44 = arith.addf %42, %43 : vector<8x128xf32>
    %45 = math.tanh %37 : vector<8x128xf32>
    %46 = vector.extract_strided_slice %44 {offsets = [0, 0], sizes = [8, 32], strides = [1, 1]} : vector<8x128xf32> to vector<8x32xf32>
    %47 = vector.extract_strided_slice %44 {offsets = [0, 32], sizes = [8, 32], strides = [1, 1]} : vector<8x128xf32> to vector<8x32xf32>
    %48 = vector.extract_strided_slice %45 {offsets = [0, 64], sizes = [8, 32], strides = [1, 1]} : vector<8x128xf32> to vector<8x32xf32>
    %49 = vector.extract_strided_slice %44 {offsets = [0, 96], sizes = [8, 32], strides = [1, 1]} : vector<8x128xf32> to vector<8x32xf32>
    %50 = arith.mulf %47, %30 : vector<8x32xf32>
    %51 = arith.mulf %46, %48 : vector<8x32xf32>
    %52 = arith.addf %50, %51 : vector<8x32xf32>
    %53 = math.tanh %52 : vector<8x32xf32>
    %54 = arith.mulf %49, %53 : vector<8x32xf32>
    %55 = arith.truncf %32 : vector<8x32xf32> to vector<8x32xbf16>
    %c0_26 = arith.constant 0 : index
    %c0_27 = arith.constant 0 : index
    %56 = vector.load %arg4[%c0_26, %c0_27] : memref<32x128xbf16, #tpu.memory_space<vmem>>, vector<32x128xbf16>
    %cst_28 = arith.constant dense<0.000000e+00> : vector<8x128xf32>
    %57 = tpu.matmul %55, %56, %cst_28 {dimension_numbers = #tpu.dot_dimension_numbers<[1], [0], [0], [1], [0, 0, 1, 1], [], []>} : vector<8x32xbf16>, vector<32x128xbf16>, vector<8x128xf32> -> vector<8x128xf32>
    %c0_29 = arith.constant 0 : index
    %c0_30 = arith.constant 0 : index
    %58 = vector.load %arg6[%c0_29, %c0_30] : memref<1x128xf32, #tpu.memory_space<vmem>>, vector<1x128xf32>
    %59 = vector.broadcast %58 : vector<1x128xf32> to vector<8x128xf32>
    %60 = arith.addf %57, %59 : vector<8x128xf32>
    %61 = arith.truncf %8 : vector<8x32xf32> to vector<8x32xbf16>
    %c0_31 = arith.constant 0 : index
    %c0_32 = arith.constant 0 : index
    %62 = vector.load %arg5[%c0_31, %c0_32] : memref<32x128xbf16, #tpu.memory_space<vmem>>, vector<32x128xbf16>
    %cst_33 = arith.constant dense<0.000000e+00> : vector<8x128xf32>
    %63 = tpu.matmul %61, %62, %cst_33 {dimension_numbers = #tpu.dot_dimension_numbers<[1], [0], [0], [1], [0, 0, 1, 1], [], []>} : vector<8x32xbf16>, vector<32x128xbf16>, vector<8x128xf32> -> vector<8x128xf32>
    %64 = arith.addf %60, %63 : vector<8x128xf32>
    %cst_34 = arith.constant 5.000000e-01 : f32
    %65 = vector.broadcast %cst_34 : f32 to vector<8x128xf32>
    %66 = arith.mulf %65, %64 : vector<8x128xf32>
    %67 = math.tanh %66 : vector<8x128xf32>
    %cst_35 = arith.constant 5.000000e-01 : f32
    %68 = vector.broadcast %cst_35 : f32 to vector<8x128xf32>
    %69 = arith.mulf %68, %67 : vector<8x128xf32>
    %cst_36 = arith.constant 5.000000e-01 : f32
    %70 = vector.broadcast %cst_36 : f32 to vector<8x128xf32>
    %71 = arith.addf %69, %70 : vector<8x128xf32>
    %72 = math.tanh %64 : vector<8x128xf32>
    %73 = vector.extract_strided_slice %71 {offsets = [0, 0], sizes = [8, 32], strides = [1, 1]} : vector<8x128xf32> to vector<8x32xf32>
    %74 = vector.extract_strided_slice %71 {offsets = [0, 32], sizes = [8, 32], strides = [1, 1]} : vector<8x128xf32> to vector<8x32xf32>
    %75 = vector.extract_strided_slice %72 {offsets = [0, 64], sizes = [8, 32], strides = [1, 1]} : vector<8x128xf32> to vector<8x32xf32>
    %76 = vector.extract_strided_slice %71 {offsets = [0, 96], sizes = [8, 32], strides = [1, 1]} : vector<8x128xf32> to vector<8x32xf32>
    %77 = arith.mulf %74, %10 : vector<8x32xf32>
    %78 = arith.mulf %73, %75 : vector<8x32xf32>
    %79 = arith.addf %77, %78 : vector<8x32xf32>
    %80 = math.tanh %79 : vector<8x32xf32>
    %81 = arith.mulf %76, %80 : vector<8x32xf32>
    %82 = arith.truncf %81 : vector<8x32xf32> to vector<8x32xbf16>
    %c0_37 = arith.constant 0 : index
    %c0_38 = arith.constant 0 : index
    %83 = vector.load %arg7[%c0_37, %c0_38] : memref<32x128xbf16, #tpu.memory_space<vmem>>, vector<32x128xbf16>
    %cst_39 = arith.constant dense<0.000000e+00> : vector<8x128xf32>
    %84 = tpu.matmul %82, %83, %cst_39 {dimension_numbers = #tpu.dot_dimension_numbers<[1], [0], [0], [1], [0, 0, 1, 1], [], []>} : vector<8x32xbf16>, vector<32x128xbf16>, vector<8x128xf32> -> vector<8x128xf32>
    %c0_40 = arith.constant 0 : index
    %c0_41 = arith.constant 0 : index
    %85 = vector.load %arg8[%c0_40, %c0_41] : memref<1x128xf32, #tpu.memory_space<vmem>>, vector<1x128xf32>
    %86 = vector.broadcast %85 : vector<1x128xf32> to vector<8x128xf32>
    %87 = arith.addf %84, %86 : vector<8x128xf32>
    %c0_42 = arith.constant 0 : index
    %c0_43 = arith.constant 0 : index
    %88 = vector.load %arg9[%c0_42, %c0_43] : memref<152x128xf32, #tpu.memory_space<vmem>>, vector<8x128xf32>
    tpu.vector_store %arg9[%c0_42, %c0_43], %87 {strides = array<i32>} : memref<152x128xf32, #tpu.memory_space<vmem>>, vector<8x128xf32>,
    %c16 = arith.constant 16 : index
    %c0_44 = arith.constant 0 : index
    %89 = vector.load %arg10[%c16, %c0_44] : memref<152x128xf32, #tpu.memory_space<vmem>>, vector<8x128xf32>
    %90 = arith.truncf %54 : vector<8x32xf32> to vector<8x32xbf16>
    %c0_45 = arith.constant 0 : index
    %c0_46 = arith.constant 0 : index
    %91 = vector.load %arg2[%c0_45, %c0_46] : memref<32x128xbf16, #tpu.memory_space<vmem>>, vector<32x128xbf16>
    %cst_47 = arith.constant dense<0.000000e+00> : vector<8x128xf32>
    %92 = tpu.matmul %90, %91, %cst_47 {dimension_numbers = #tpu.dot_dimension_numbers<[1], [0], [0], [1], [0, 0, 1, 1], [], []>} : vector<8x32xbf16>, vector<32x128xbf16>, vector<8x128xf32> -> vector<8x128xf32>
    %93 = arith.addf %89, %92 : vector<8x128xf32>
    %cst_48 = arith.constant 5.000000e-01 : f32
    %94 = vector.broadcast %cst_48 : f32 to vector<8x128xf32>
    %95 = arith.mulf %94, %93 : vector<8x128xf32>
    %96 = math.tanh %95 : vector<8x128xf32>
    %cst_49 = arith.constant 5.000000e-01 : f32
    %97 = vector.broadcast %cst_49 : f32 to vector<8x128xf32>
    %98 = arith.mulf %97, %96 : vector<8x128xf32>
    %cst_50 = arith.constant 5.000000e-01 : f32
    %99 = vector.broadcast %cst_50 : f32 to vector<8x128xf32>
    %100 = arith.addf %98, %99 : vector<8x128xf32>
    %101 = math.tanh %93 : vector<8x128xf32>
    %102 = vector.extract_strided_slice %100 {offsets = [0, 0], sizes = [8, 32], strides = [1, 1]} : vector<8x128xf32> to vector<8x32xf32>
    %103 = vector.extract_strided_slice %100 {offsets = [0, 32], sizes = [8, 32], strides = [1, 1]} : vector<8x128xf32> to vector<8x32xf32>
    %104 = vector.extract_strided_slice %101 {offsets = [0, 64], sizes = [8, 32], strides = [1, 1]} : vector<8x128xf32> to vector<8x32xf32>
    %105 = vector.extract_strided_slice %100 {offsets = [0, 96], sizes = [8, 32], strides = [1, 1]} : vector<8x128xf32> to vector<8x32xf32>
    %106 = arith.mulf %103, %52 : vector<8x32xf32>
    %107 = arith.mulf %102, %104 : vector<8x32xf32>
    %108 = arith.addf %106, %107 : vector<8x32xf32>
    %109 = math.tanh %108 : vector<8x32xf32>
    %110 = arith.mulf %105, %109 : vector<8x32xf32>
    %111 = arith.truncf %54 : vector<8x32xf32> to vector<8x32xbf16>
    %c0_51 = arith.constant 0 : index
    %c0_52 = arith.constant 0 : index
    %112 = vector.load %arg4[%c0_51, %c0_52] : memref<32x128xbf16, #tpu.memory_space<vmem>>, vector<32x128xbf16>
    %cst_53 = arith.constant dense<0.000000e+00> : vector<8x128xf32>
    %113 = tpu.matmul %111, %112, %cst_53 {dimension_numbers = #tpu.dot_dimension_numbers<[1], [0], [0], [1], [0, 0, 1, 1], [], []>} : vector<8x32xbf16>, vector<32x128xbf16>, vector<8x128xf32> -> vector<8x128xf32>
    %c0_54 = arith.constant 0 : index
    %c0_55 = arith.constant 0 : index
    %114 = vector.load %arg6[%c0_54, %c0_55] : memref<1x128xf32, #tpu.memory_space<vmem>>, vector<1x128xf32>
    %115 = vector.broadcast %114 : vector<1x128xf32> to vector<8x128xf32>
    %116 = arith.addf %113, %115 : vector<8x128xf32>
    %117 = arith.truncf %81 : vector<8x32xf32> to vector<8x32xbf16>
    %c0_56 = arith.constant 0 : index
    %c0_57 = arith.constant 0 : index
    %118 = vector.load %arg5[%c0_56, %c0_57] : memref<32x128xbf16, #tpu.memory_space<vmem>>, vector<32x128xbf16>
    %cst_58 = arith.constant dense<0.000000e+00> : vector<8x128xf32>
    %119 = tpu.matmul %117, %118, %cst_58 {dimension_numbers = #tpu.dot_dimension_numbers<[1], [0], [0], [1], [0, 0, 1, 1], [], []>} : vector<8x32xbf16>, vector<32x128xbf16>, vector<8x128xf32> -> vector<8x128xf32>
    %120 = arith.addf %116, %119 : vector<8x128xf32>
    %cst_59 = arith.constant 5.000000e-01 : f32
    %121 = vector.broadcast %cst_59 : f32 to vector<8x128xf32>
    %122 = arith.mulf %121, %120 : vector<8x128xf32>
    %123 = math.tanh %122 : vector<8x128xf32>
    %cst_60 = arith.constant 5.000000e-01 : f32
    %124 = vector.broadcast %cst_60 : f32 to vector<8x128xf32>
    %125 = arith.mulf %124, %123 : vector<8x128xf32>
    %cst_61 = arith.constant 5.000000e-01 : f32
    %126 = vector.broadcast %cst_61 : f32 to vector<8x128xf32>
    %127 = arith.addf %125, %126 : vector<8x128xf32>
    %128 = math.tanh %120 : vector<8x128xf32>
    %129 = vector.extract_strided_slice %127 {offsets = [0, 0], sizes = [8, 32], strides = [1, 1]} : vector<8x128xf32> to vector<8x32xf32>
    %130 = vector.extract_strided_slice %127 {offsets = [0, 32], sizes = [8, 32], strides = [1, 1]} : vector<8x128xf32> to vector<8x32xf32>
    %131 = vector.extract_strided_slice %128 {offsets = [0, 64], sizes = [8, 32], strides = [1, 1]} : vector<8x128xf32> to vector<8x32xf32>
    %132 = vector.extract_strided_slice %127 {offsets = [0, 96], sizes = [8, 32], strides = [1, 1]} : vector<8x128xf32> to vector<8x32xf32>
    %133 = arith.mulf %130, %79 : vector<8x32xf32>
    %134 = arith.mulf %129, %131 : vector<8x32xf32>
    %135 = arith.addf %133, %134 : vector<8x32xf32>
    %136 = math.tanh %135 : vector<8x32xf32>
    %137 = arith.mulf %132, %136 : vector<8x32xf32>
    %138 = arith.truncf %137 : vector<8x32xf32> to vector<8x32xbf16>
    %c0_62 = arith.constant 0 : index
    %c0_63 = arith.constant 0 : index
    %139 = vector.load %arg7[%c0_62, %c0_63] : memref<32x128xbf16, #tpu.memory_space<vmem>>, vector<32x128xbf16>
    %cst_64 = arith.constant dense<0.000000e+00> : vector<8x128xf32>
    %140 = tpu.matmul %138, %139, %cst_64 {dimension_numbers = #tpu.dot_dimension_numbers<[1], [0], [0], [1], [0, 0, 1, 1], [], []>} : vector<8x32xbf16>, vector<32x128xbf16>, vector<8x128xf32> -> vector<8x128xf32>
    %c0_65 = arith.constant 0 : index
    %c0_66 = arith.constant 0 : index
    %141 = vector.load %arg8[%c0_65, %c0_66] : memref<1x128xf32, #tpu.memory_space<vmem>>, vector<1x128xf32>
    %142 = vector.broadcast %141 : vector<1x128xf32> to vector<8x128xf32>
    %143 = arith.addf %140, %142 : vector<8x128xf32>
    %c8_67 = arith.constant 8 : index
    %c0_68 = arith.constant 0 : index
    %144 = vector.load %arg9[%c8_67, %c0_68] : memref<152x128xf32, #tpu.memory_space<vmem>>, vector<8x128xf32>
    tpu.vector_store %arg9[%c8_67, %c0_68], %143 {strides = array<i32>} : memref<152x128xf32, #tpu.memory_space<vmem>>, vector<8x128xf32>,
    %c24 = arith.constant 24 : index
    %c0_69 = arith.constant 0 : index
    %145 = vector.load %arg10[%c24, %c0_69] : memref<152x128xf32, #tpu.memory_space<vmem>>, vector<8x128xf32>
    %146 = arith.truncf %110 : vector<8x32xf32> to vector<8x32xbf16>
    %c0_70 = arith.constant 0 : index
    %c0_71 = arith.constant 0 : index
    %147 = vector.load %arg2[%c0_70, %c0_71] : memref<32x128xbf16, #tpu.memory_space<vmem>>, vector<32x128xbf16>
    %cst_72 = arith.constant dense<0.000000e+00> : vector<8x128xf32>
    %148 = tpu.matmul %146, %147, %cst_72 {dimension_numbers = #tpu.dot_dimension_numbers<[1], [0], [0], [1], [0, 0, 1, 1], [], []>} : vector<8x32xbf16>, vector<32x128xbf16>, vector<8x128xf32> -> vector<8x128xf32>
    %149 = arith.addf %145, %148 : vector<8x128xf32>
    %cst_73 = arith.constant 5.000000e-01 : f32
    %150 = vector.broadcast %cst_73 : f32 to vector<8x128xf32>
    %151 = arith.mulf %150, %149 : vector<8x128xf32>
    %152 = math.tanh %151 : vector<8x128xf32>
    %cst_74 = arith.constant 5.000000e-01 : f32
    %153 = vector.broadcast %cst_74 : f32 to vector<8x128xf32>
    %154 = arith.mulf %153, %152 : vector<8x128xf32>
    %cst_75 = arith.constant 5.000000e-01 : f32
    %155 = vector.broadcast %cst_75 : f32 to vector<8x128xf32>
    %156 = arith.addf %154, %155 : vector<8x128xf32>
    %157 = math.tanh %149 : vector<8x128xf32>
    %158 = vector.extract_strided_slice %156 {offsets = [0, 0], sizes = [8, 32], strides = [1, 1]} : vector<8x128xf32> to vector<8x32xf32>
    %159 = vector.extract_strided_slice %156 {offsets = [0, 32], sizes = [8, 32], strides = [1, 1]} : vector<8x128xf32> to vector<8x32xf32>
    %160 = vector.extract_strided_slice %157 {offsets = [0, 64], sizes = [8, 32], strides = [1, 1]} : vector<8x128xf32> to vector<8x32xf32>
    %161 = vector.extract_strided_slice %156 {offsets = [0, 96], sizes = [8, 32], strides = [1, 1]} : vector<8x128xf32> to vector<8x32xf32>
    %162 = arith.mulf %159, %108 : vector<8x32xf32>
    %163 = arith.mulf %158, %160 : vector<8x32xf32>
    %164 = arith.addf %162, %163 : vector<8x32xf32>
    %165 = math.tanh %164 : vector<8x32xf32>
    %166 = arith.mulf %161, %165 : vector<8x32xf32>
    %167 = arith.truncf %110 : vector<8x32xf32> to vector<8x32xbf16>
    %c0_76 = arith.constant 0 : index
    %c0_77 = arith.constant 0 : index
    %168 = vector.load %arg4[%c0_76, %c0_77] : memref<32x128xbf16, #tpu.memory_space<vmem>>, vector<32x128xbf16>
    %cst_78 = arith.constant dense<0.000000e+00> : vector<8x128xf32>
    %169 = tpu.matmul %167, %168, %cst_78 {dimension_numbers = #tpu.dot_dimension_numbers<[1], [0], [0], [1], [0, 0, 1, 1], [], []>} : vector<8x32xbf16>, vector<32x128xbf16>, vector<8x128xf32> -> vector<8x128xf32>
    %c0_79 = arith.constant 0 : index
    %c0_80 = arith.constant 0 : index
    %170 = vector.load %arg6[%c0_79, %c0_80] : memref<1x128xf32, #tpu.memory_space<vmem>>, vector<1x128xf32>
    %171 = vector.broadcast %170 : vector<1x128xf32> to vector<8x128xf32>
    %172 = arith.addf %169, %171 : vector<8x128xf32>
    %173 = arith.truncf %137 : vector<8x32xf32> to vector<8x32xbf16>
    %c0_81 = arith.constant 0 : index
    %c0_82 = arith.constant 0 : index
    %174 = vector.load %arg5[%c0_81, %c0_82] : memref<32x128xbf16, #tpu.memory_space<vmem>>, vector<32x128xbf16>
    %cst_83 = arith.constant dense<0.000000e+00> : vector<8x128xf32>
    %175 = tpu.matmul %173, %174, %cst_83 {dimension_numbers = #tpu.dot_dimension_numbers<[1], [0], [0], [1], [0, 0, 1, 1], [], []>} : vector<8x32xbf16>, vector<32x128xbf16>, vector<8x128xf32> -> vector<8x128xf32>
    %176 = arith.addf %172, %175 : vector<8x128xf32>
    %cst_84 = arith.constant 5.000000e-01 : f32
    %177 = vector.broadcast %cst_84 : f32 to vector<8x128xf32>
    %178 = arith.mulf %177, %176 : vector<8x128xf32>
    %179 = math.tanh %178 : vector<8x128xf32>
    %cst_85 = arith.constant 5.000000e-01 : f32
    %180 = vector.broadcast %cst_85 : f32 to vector<8x128xf32>
    %181 = arith.mulf %180, %179 : vector<8x128xf32>
    %cst_86 = arith.constant 5.000000e-01 : f32
    %182 = vector.broadcast %cst_86 : f32 to vector<8x128xf32>
    %183 = arith.addf %181, %182 : vector<8x128xf32>
    %184 = math.tanh %176 : vector<8x128xf32>
    %185 = vector.extract_strided_slice %183 {offsets = [0, 0], sizes = [8, 32], strides = [1, 1]} : vector<8x128xf32> to vector<8x32xf32>
    %186 = vector.extract_strided_slice %183 {offsets = [0, 32], sizes = [8, 32], strides = [1, 1]} : vector<8x128xf32> to vector<8x32xf32>
    %187 = vector.extract_strided_slice %184 {offsets = [0, 64], sizes = [8, 32], strides = [1, 1]} : vector<8x128xf32> to vector<8x32xf32>
    %188 = vector.extract_strided_slice %183 {offsets = [0, 96], sizes = [8, 32], strides = [1, 1]} : vector<8x128xf32> to vector<8x32xf32>
    %189 = arith.mulf %186, %135 : vector<8x32xf32>
    %190 = arith.mulf %185, %187 : vector<8x32xf32>
    %191 = arith.addf %189, %190 : vector<8x32xf32>
    %192 = math.tanh %191 : vector<8x32xf32>
    %193 = arith.mulf %188, %192 : vector<8x32xf32>
    %194 = arith.truncf %193 : vector<8x32xf32> to vector<8x32xbf16>
    %c0_87 = arith.constant 0 : index
    %c0_88 = arith.constant 0 : index
    %195 = vector.load %arg7[%c0_87, %c0_88] : memref<32x128xbf16, #tpu.memory_space<vmem>>, vector<32x128xbf16>
    %cst_89 = arith.constant dense<0.000000e+00> : vector<8x128xf32>
    %196 = tpu.matmul %194, %195, %cst_89 {dimension_numbers = #tpu.dot_dimension_numbers<[1], [0], [0], [1], [0, 0, 1, 1], [], []>} : vector<8x32xbf16>, vector<32x128xbf16>, vector<8x128xf32> -> vector<8x128xf32>
    %c0_90 = arith.constant 0 : index
    %c0_91 = arith.constant 0 : index
    %197 = vector.load %arg8[%c0_90, %c0_91] : memref<1x128xf32, #tpu.memory_space<vmem>>, vector<1x128xf32>
    %198 = vector.broadcast %197 : vector<1x128xf32> to vector<8x128xf32>
    %199 = arith.addf %196, %198 : vector<8x128xf32>
    %c16_92 = arith.constant 16 : index
    %c0_93 = arith.constant 0 : index
    %200 = vector.load %arg9[%c16_92, %c0_93] : memref<152x128xf32, #tpu.memory_space<vmem>>, vector<8x128xf32>
    tpu.vector_store %arg9[%c16_92, %c0_93], %199 {strides = array<i32>} : memref<152x128xf32, #tpu.memory_space<vmem>>, vector<8x128xf32>,
    %c32 = arith.constant 32 : index
    %c0_94 = arith.constant 0 : index
    %201 = vector.load %arg10[%c32, %c0_94] : memref<152x128xf32, #tpu.memory_space<vmem>>, vector<8x128xf32>
    %202 = arith.truncf %166 : vector<8x32xf32> to vector<8x32xbf16>
    %c0_95 = arith.constant 0 : index
    %c0_96 = arith.constant 0 : index
    %203 = vector.load %arg2[%c0_95, %c0_96] : memref<32x128xbf16, #tpu.memory_space<vmem>>, vector<32x128xbf16>
    %cst_97 = arith.constant dense<0.000000e+00> : vector<8x128xf32>
    %204 = tpu.matmul %202, %203, %cst_97 {dimension_numbers = #tpu.dot_dimension_numbers<[1], [0], [0], [1], [0, 0, 1, 1], [], []>} : vector<8x32xbf16>, vector<32x128xbf16>, vector<8x128xf32> -> vector<8x128xf32>
    %205 = arith.addf %201, %204 : vector<8x128xf32>
    %cst_98 = arith.constant 5.000000e-01 : f32
    %206 = vector.broadcast %cst_98 : f32 to vector<8x128xf32>
    %207 = arith.mulf %206, %205 : vector<8x128xf32>
    %208 = math.tanh %207 : vector<8x128xf32>
    %cst_99 = arith.constant 5.000000e-01 : f32
    %209 = vector.broadcast %cst_99 : f32 to vector<8x128xf32>
    %210 = arith.mulf %209, %208 : vector<8x128xf32>
    %cst_100 = arith.constant 5.000000e-01 : f32
    %211 = vector.broadcast %cst_100 : f32 to vector<8x128xf32>
    %212 = arith.addf %210, %211 : vector<8x128xf32>
    %213 = math.tanh %205 : vector<8x128xf32>
    %214 = vector.extract_strided_slice %212 {offsets = [0, 0], sizes = [8, 32], strides = [1, 1]} : vector<8x128xf32> to vector<8x32xf32>
    %215 = vector.extract_strided_slice %212 {offsets = [0, 32], sizes = [8, 32], strides = [1, 1]} : vector<8x128xf32> to vector<8x32xf32>
    %216 = vector.extract_strided_slice %213 {offsets = [0, 64], sizes = [8, 32], strides = [1, 1]} : vector<8x128xf32> to vector<8x32xf32>
    %217 = vector.extract_strided_slice %212 {offsets = [0, 96], sizes = [8, 32], strides = [1, 1]} : vector<8x128xf32> to vector<8x32xf32>
    %218 = arith.mulf %215, %164 : vector<8x32xf32>
    %219 = arith.mulf %214, %216 : vector<8x32xf32>
    %220 = arith.addf %218, %219 : vector<8x32xf32>
    %221 = math.tanh %220 : vector<8x32xf32>
    %222 = arith.mulf %217, %221 : vector<8x32xf32>
    %223 = arith.truncf %166 : vector<8x32xf32> to vector<8x32xbf16>
    %c0_101 = arith.constant 0 : index
    %c0_102 = arith.constant 0 : index
    %224 = vector.load %arg4[%c0_101, %c0_102] : memref<32x128xbf16, #tpu.memory_space<vmem>>, vector<32x128xbf16>
    %cst_103 = arith.constant dense<0.000000e+00> : vector<8x128xf32>
    %225 = tpu.matmul %223, %224, %cst_103 {dimension_numbers = #tpu.dot_dimension_numbers<[1], [0], [0], [1], [0, 0, 1, 1], [], []>} : vector<8x32xbf16>, vector<32x128xbf16>, vector<8x128xf32> -> vector<8x128xf32>
    %c0_104 = arith.constant 0 : index
    %c0_105 = arith.constant 0 : index
    %226 = vector.load %arg6[%c0_104, %c0_105] : memref<1x128xf32, #tpu.memory_space<vmem>>, vector<1x128xf32>
    %227 = vector.broadcast %226 : vector<1x128xf32> to vector<8x128xf32>
    %228 = arith.addf %225, %227 : vector<8x128xf32>
    %229 = arith.truncf %193 : vector<8x32xf32> to vector<8x32xbf16>
    %c0_106 = arith.constant 0 : index
    %c0_107 = arith.constant 0 : index
    %230 = vector.load %arg5[%c0_106, %c0_107] : memref<32x128xbf16, #tpu.memory_space<vmem>>, vector<32x128xbf16>
    %cst_108 = arith.constant dense<0.000000e+00> : vector<8x128xf32>
    %231 = tpu.matmul %229, %230, %cst_108 {dimension_numbers = #tpu.dot_dimension_numbers<[1], [0], [0], [1], [0, 0, 1, 1], [], []>} : vector<8x32xbf16>, vector<32x128xbf16>, vector<8x128xf32> -> vector<8x128xf32>
    %232 = arith.addf %228, %231 : vector<8x128xf32>
    %cst_109 = arith.constant 5.000000e-01 : f32
    %233 = vector.broadcast %cst_109 : f32 to vector<8x128xf32>
    %234 = arith.mulf %233, %232 : vector<8x128xf32>
    %235 = math.tanh %234 : vector<8x128xf32>
    %cst_110 = arith.constant 5.000000e-01 : f32
    %236 = vector.broadcast %cst_110 : f32 to vector<8x128xf32>
    %237 = arith.mulf %236, %235 : vector<8x128xf32>
    %cst_111 = arith.constant 5.000000e-01 : f32
    %238 = vector.broadcast %cst_111 : f32 to vector<8x128xf32>
    %239 = arith.addf %237, %238 : vector<8x128xf32>
    %240 = math.tanh %232 : vector<8x128xf32>
    %241 = vector.extract_strided_slice %239 {offsets = [0, 0], sizes = [8, 32], strides = [1, 1]} : vector<8x128xf32> to vector<8x32xf32>
    %242 = vector.extract_strided_slice %239 {offsets = [0, 32], sizes = [8, 32], strides = [1, 1]} : vector<8x128xf32> to vector<8x32xf32>
    %243 = vector.extract_strided_slice %240 {offsets = [0, 64], sizes = [8, 32], strides = [1, 1]} : vector<8x128xf32> to vector<8x32xf32>
    %244 = vector.extract_strided_slice %239 {offsets = [0, 96], sizes = [8, 32], strides = [1, 1]} : vector<8x128xf32> to vector<8x32xf32>
    %245 = arith.mulf %242, %191 : vector<8x32xf32>
    %246 = arith.mulf %241, %243 : vector<8x32xf32>
    %247 = arith.addf %245, %246 : vector<8x32xf32>
    %248 = math.tanh %247 : vector<8x32xf32>
    %249 = arith.mulf %244, %248 : vector<8x32xf32>
    %250 = arith.truncf %249 : vector<8x32xf32> to vector<8x32xbf16>
    %c0_112 = arith.constant 0 : index
    %c0_113 = arith.constant 0 : index
    %251 = vector.load %arg7[%c0_112, %c0_113] : memref<32x128xbf16, #tpu.memory_space<vmem>>, vector<32x128xbf16>
    %cst_114 = arith.constant dense<0.000000e+00> : vector<8x128xf32>
    %252 = tpu.matmul %250, %251, %cst_114 {dimension_numbers = #tpu.dot_dimension_numbers<[1], [0], [0], [1], [0, 0, 1, 1], [], []>} : vector<8x32xbf16>, vector<32x128xbf16>, vector<8x128xf32> -> vector<8x128xf32>
    %c0_115 = arith.constant 0 : index
    %c0_116 = arith.constant 0 : index
    %253 = vector.load %arg8[%c0_115, %c0_116] : memref<1x128xf32, #tpu.memory_space<vmem>>, vector<1x128xf32>
    %254 = vector.broadcast %253 : vector<1x128xf32> to vector<8x128xf32>
    %255 = arith.addf %252, %254 : vector<8x128xf32>
    %c24_117 = arith.constant 24 : index
    %c0_118 = arith.constant 0 : index
    %256 = vector.load %arg9[%c24_117, %c0_118] : memref<152x128xf32, #tpu.memory_space<vmem>>, vector<8x128xf32>
    tpu.vector_store %arg9[%c24_117, %c0_118], %255 {strides = array<i32>} : memref<152x128xf32, #tpu.memory_space<vmem>>, vector<8x128xf32>,
    %c40 = arith.constant 40 : index
    %c0_119 = arith.constant 0 : index
    %257 = vector.load %arg10[%c40, %c0_119] : memref<152x128xf32, #tpu.memory_space<vmem>>, vector<8x128xf32>
    %258 = arith.truncf %222 : vector<8x32xf32> to vector<8x32xbf16>
    %c0_120 = arith.constant 0 : index
    %c0_121 = arith.constant 0 : index
    %259 = vector.load %arg2[%c0_120, %c0_121] : memref<32x128xbf16, #tpu.memory_space<vmem>>, vector<32x128xbf16>
    %cst_122 = arith.constant dense<0.000000e+00> : vector<8x128xf32>
    %260 = tpu.matmul %258, %259, %cst_122 {dimension_numbers = #tpu.dot_dimension_numbers<[1], [0], [0], [1], [0, 0, 1, 1], [], []>} : vector<8x32xbf16>, vector<32x128xbf16>, vector<8x128xf32> -> vector<8x128xf32>
    %261 = arith.addf %257, %260 : vector<8x128xf32>
    %cst_123 = arith.constant 5.000000e-01 : f32
    %262 = vector.broadcast %cst_123 : f32 to vector<8x128xf32>
    %263 = arith.mulf %262, %261 : vector<8x128xf32>
    %264 = math.tanh %263 : vector<8x128xf32>
    %cst_124 = arith.constant 5.000000e-01 : f32
    %265 = vector.broadcast %cst_124 : f32 to vector<8x128xf32>
    %266 = arith.mulf %265, %264 : vector<8x128xf32>
    %cst_125 = arith.constant 5.000000e-01 : f32
    %267 = vector.broadcast %cst_125 : f32 to vector<8x128xf32>
    %268 = arith.addf %266, %267 : vector<8x128xf32>
    %269 = math.tanh %261 : vector<8x128xf32>
    %270 = vector.extract_strided_slice %268 {offsets = [0, 0], sizes = [8, 32], strides = [1, 1]} : vector<8x128xf32> to vector<8x32xf32>
    %271 = vector.extract_strided_slice %268 {offsets = [0, 32], sizes = [8, 32], strides = [1, 1]} : vector<8x128xf32> to vector<8x32xf32>
    %272 = vector.extract_strided_slice %269 {offsets = [0, 64], sizes = [8, 32], strides = [1, 1]} : vector<8x128xf32> to vector<8x32xf32>
    %273 = vector.extract_strided_slice %268 {offsets = [0, 96], sizes = [8, 32], strides = [1, 1]} : vector<8x128xf32> to vector<8x32xf32>
    %274 = arith.mulf %271, %220 : vector<8x32xf32>
    %275 = arith.mulf %270, %272 : vector<8x32xf32>
    %276 = arith.addf %274, %275 : vector<8x32xf32>
    %277 = math.tanh %276 : vector<8x32xf32>
    %278 = arith.mulf %273, %277 : vector<8x32xf32>
    %279 = arith.truncf %222 : vector<8x32xf32> to vector<8x32xbf16>
    %c0_126 = arith.constant 0 : index
    %c0_127 = arith.constant 0 : index
    %280 = vector.load %arg4[%c0_126, %c0_127] : memref<32x128xbf16, #tpu.memory_space<vmem>>, vector<32x128xbf16>
    %cst_128 = arith.constant dense<0.000000e+00> : vector<8x128xf32>
    %281 = tpu.matmul %279, %280, %cst_128 {dimension_numbers = #tpu.dot_dimension_numbers<[1], [0], [0], [1], [0, 0, 1, 1], [], []>} : vector<8x32xbf16>, vector<32x128xbf16>, vector<8x128xf32> -> vector<8x128xf32>
    %c0_129 = arith.constant 0 : index
    %c0_130 = arith.constant 0 : index
    %282 = vector.load %arg6[%c0_129, %c0_130] : memref<1x128xf32, #tpu.memory_space<vmem>>, vector<1x128xf32>
    %283 = vector.broadcast %282 : vector<1x128xf32> to vector<8x128xf32>
    %284 = arith.addf %281, %283 : vector<8x128xf32>
    %285 = arith.truncf %249 : vector<8x32xf32> to vector<8x32xbf16>
    %c0_131 = arith.constant 0 : index
    %c0_132 = arith.constant 0 : index
    %286 = vector.load %arg5[%c0_131, %c0_132] : memref<32x128xbf16, #tpu.memory_space<vmem>>, vector<32x128xbf16>
    %cst_133 = arith.constant dense<0.000000e+00> : vector<8x128xf32>
    %287 = tpu.matmul %285, %286, %cst_133 {dimension_numbers = #tpu.dot_dimension_numbers<[1], [0], [0], [1], [0, 0, 1, 1], [], []>} : vector<8x32xbf16>, vector<32x128xbf16>, vector<8x128xf32> -> vector<8x128xf32>
    %288 = arith.addf %284, %287 : vector<8x128xf32>
    %cst_134 = arith.constant 5.000000e-01 : f32
    %289 = vector.broadcast %cst_134 : f32 to vector<8x128xf32>
    %290 = arith.mulf %289, %288 : vector<8x128xf32>
    %291 = math.tanh %290 : vector<8x128xf32>
    %cst_135 = arith.constant 5.000000e-01 : f32
    %292 = vector.broadcast %cst_135 : f32 to vector<8x128xf32>
    %293 = arith.mulf %292, %291 : vector<8x128xf32>
    %cst_136 = arith.constant 5.000000e-01 : f32
    %294 = vector.broadcast %cst_136 : f32 to vector<8x128xf32>
    %295 = arith.addf %293, %294 : vector<8x128xf32>
    %296 = math.tanh %288 : vector<8x128xf32>
    %297 = vector.extract_strided_slice %295 {offsets = [0, 0], sizes = [8, 32], strides = [1, 1]} : vector<8x128xf32> to vector<8x32xf32>
    %298 = vector.extract_strided_slice %295 {offsets = [0, 32], sizes = [8, 32], strides = [1, 1]} : vector<8x128xf32> to vector<8x32xf32>
    %299 = vector.extract_strided_slice %296 {offsets = [0, 64], sizes = [8, 32], strides = [1, 1]} : vector<8x128xf32> to vector<8x32xf32>
    %300 = vector.extract_strided_slice %295 {offsets = [0, 96], sizes = [8, 32], strides = [1, 1]} : vector<8x128xf32> to vector<8x32xf32>
    %301 = arith.mulf %298, %247 : vector<8x32xf32>
    %302 = arith.mulf %297, %299 : vector<8x32xf32>
    %303 = arith.addf %301, %302 : vector<8x32xf32>
    %304 = math.tanh %303 : vector<8x32xf32>
    %305 = arith.mulf %300, %304 : vector<8x32xf32>
    %306 = arith.truncf %305 : vector<8x32xf32> to vector<8x32xbf16>
    %c0_137 = arith.constant 0 : index
    %c0_138 = arith.constant 0 : index
    %307 = vector.load %arg7[%c0_137, %c0_138] : memref<32x128xbf16, #tpu.memory_space<vmem>>, vector<32x128xbf16>
    %cst_139 = arith.constant dense<0.000000e+00> : vector<8x128xf32>
    %308 = tpu.matmul %306, %307, %cst_139 {dimension_numbers = #tpu.dot_dimension_numbers<[1], [0], [0], [1], [0, 0, 1, 1], [], []>} : vector<8x32xbf16>, vector<32x128xbf16>, vector<8x128xf32> -> vector<8x128xf32>
    %c0_140 = arith.constant 0 : index
    %c0_141 = arith.constant 0 : index
    %309 = vector.load %arg8[%c0_140, %c0_141] : memref<1x128xf32, #tpu.memory_space<vmem>>, vector<1x128xf32>
    %310 = vector.broadcast %309 : vector<1x128xf32> to vector<8x128xf32>
    %311 = arith.addf %308, %310 : vector<8x128xf32>
    %c32_142 = arith.constant 32 : index
    %c0_143 = arith.constant 0 : index
    %312 = vector.load %arg9[%c32_142, %c0_143] : memref<152x128xf32, #tpu.memory_space<vmem>>, vector<8x128xf32>
    tpu.vector_store %arg9[%c32_142, %c0_143], %311 {strides = array<i32>} : memref<152x128xf32, #tpu.memory_space<vmem>>, vector<8x128xf32>,
    %c48 = arith.constant 48 : index
    %c0_144 = arith.constant 0 : index
    %313 = vector.load %arg10[%c48, %c0_144] : memref<152x128xf32, #tpu.memory_space<vmem>>, vector<8x128xf32>
    %314 = arith.truncf %278 : vector<8x32xf32> to vector<8x32xbf16>
    %c0_145 = arith.constant 0 : index
    %c0_146 = arith.constant 0 : index
    %315 = vector.load %arg2[%c0_145, %c0_146] : memref<32x128xbf16, #tpu.memory_space<vmem>>, vector<32x128xbf16>
    %cst_147 = arith.constant dense<0.000000e+00> : vector<8x128xf32>
    %316 = tpu.matmul %314, %315, %cst_147 {dimension_numbers = #tpu.dot_dimension_numbers<[1], [0], [0], [1], [0, 0, 1, 1], [], []>} : vector<8x32xbf16>, vector<32x128xbf16>, vector<8x128xf32> -> vector<8x128xf32>
    %317 = arith.addf %313, %316 : vector<8x128xf32>
    %cst_148 = arith.constant 5.000000e-01 : f32
    %318 = vector.broadcast %cst_148 : f32 to vector<8x128xf32>
    %319 = arith.mulf %318, %317 : vector<8x128xf32>
    %320 = math.tanh %319 : vector<8x128xf32>
    %cst_149 = arith.constant 5.000000e-01 : f32
    %321 = vector.broadcast %cst_149 : f32 to vector<8x128xf32>
    %322 = arith.mulf %321, %320 : vector<8x128xf32>
    %cst_150 = arith.constant 5.000000e-01 : f32
    %323 = vector.broadcast %cst_150 : f32 to vector<8x128xf32>
    %324 = arith.addf %322, %323 : vector<8x128xf32>
    %325 = math.tanh %317 : vector<8x128xf32>
    %326 = vector.extract_strided_slice %324 {offsets = [0, 0], sizes = [8, 32], strides = [1, 1]} : vector<8x128xf32> to vector<8x32xf32>
    %327 = vector.extract_strided_slice %324 {offsets = [0, 32], sizes = [8, 32], strides = [1, 1]} : vector<8x128xf32> to vector<8x32xf32>
    %328 = vector.extract_strided_slice %325 {offsets = [0, 64], sizes = [8, 32], strides = [1, 1]} : vector<8x128xf32> to vector<8x32xf32>
    %329 = vector.extract_strided_slice %324 {offsets = [0, 96], sizes = [8, 32], strides = [1, 1]} : vector<8x128xf32> to vector<8x32xf32>
    %330 = arith.mulf %327, %276 : vector<8x32xf32>
    %331 = arith.mulf %326, %328 : vector<8x32xf32>
    %332 = arith.addf %330, %331 : vector<8x32xf32>
    %333 = math.tanh %332 : vector<8x32xf32>
    %334 = arith.mulf %329, %333 : vector<8x32xf32>
    %335 = arith.truncf %278 : vector<8x32xf32> to vector<8x32xbf16>
    %c0_151 = arith.constant 0 : index
    %c0_152 = arith.constant 0 : index
    %336 = vector.load %arg4[%c0_151, %c0_152] : memref<32x128xbf16, #tpu.memory_space<vmem>>, vector<32x128xbf16>
    %cst_153 = arith.constant dense<0.000000e+00> : vector<8x128xf32>
    %337 = tpu.matmul %335, %336, %cst_153 {dimension_numbers = #tpu.dot_dimension_numbers<[1], [0], [0], [1], [0, 0, 1, 1], [], []>} : vector<8x32xbf16>, vector<32x128xbf16>, vector<8x128xf32> -> vector<8x128xf32>
    %c0_154 = arith.constant 0 : index
    %c0_155 = arith.constant 0 : index
    %338 = vector.load %arg6[%c0_154, %c0_155] : memref<1x128xf32, #tpu.memory_space<vmem>>, vector<1x128xf32>
    %339 = vector.broadcast %338 : vector<1x128xf32> to vector<8x128xf32>
    %340 = arith.addf %337, %339 : vector<8x128xf32>
    %341 = arith.truncf %305 : vector<8x32xf32> to vector<8x32xbf16>
    %c0_156 = arith.constant 0 : index
    %c0_157 = arith.constant 0 : index
    %342 = vector.load %arg5[%c0_156, %c0_157] : memref<32x128xbf16, #tpu.memory_space<vmem>>, vector<32x128xbf16>
    %cst_158 = arith.constant dense<0.000000e+00> : vector<8x128xf32>
    %343 = tpu.matmul %341, %342, %cst_158 {dimension_numbers = #tpu.dot_dimension_numbers<[1], [0], [0], [1], [0, 0, 1, 1], [], []>} : vector<8x32xbf16>, vector<32x128xbf16>, vector<8x128xf32> -> vector<8x128xf32>
    %344 = arith.addf %340, %343 : vector<8x128xf32>
    %cst_159 = arith.constant 5.000000e-01 : f32
    %345 = vector.broadcast %cst_159 : f32 to vector<8x128xf32>
    %346 = arith.mulf %345, %344 : vector<8x128xf32>
    %347 = math.tanh %346 : vector<8x128xf32>
    %cst_160 = arith.constant 5.000000e-01 : f32
    %348 = vector.broadcast %cst_160 : f32 to vector<8x128xf32>
    %349 = arith.mulf %348, %347 : vector<8x128xf32>
    %cst_161 = arith.constant 5.000000e-01 : f32
    %350 = vector.broadcast %cst_161 : f32 to vector<8x128xf32>
    %351 = arith.addf %349, %350 : vector<8x128xf32>
    %352 = math.tanh %344 : vector<8x128xf32>
    %353 = vector.extract_strided_slice %351 {offsets = [0, 0], sizes = [8, 32], strides = [1, 1]} : vector<8x128xf32> to vector<8x32xf32>
    %354 = vector.extract_strided_slice %351 {offsets = [0, 32], sizes = [8, 32], strides = [1, 1]} : vector<8x128xf32> to vector<8x32xf32>
    %355 = vector.extract_strided_slice %352 {offsets = [0, 64], sizes = [8, 32], strides = [1, 1]} : vector<8x128xf32> to vector<8x32xf32>
    %356 = vector.extract_strided_slice %351 {offsets = [0, 96], sizes = [8, 32], strides = [1, 1]} : vector<8x128xf32> to vector<8x32xf32>
    %357 = arith.mulf %354, %303 : vector<8x32xf32>
    %358 = arith.mulf %353, %355 : vector<8x32xf32>
    %359 = arith.addf %357, %358 : vector<8x32xf32>
    %360 = math.tanh %359 : vector<8x32xf32>
    %361 = arith.mulf %356, %360 : vector<8x32xf32>
    %362 = arith.truncf %361 : vector<8x32xf32> to vector<8x32xbf16>
    %c0_162 = arith.constant 0 : index
    %c0_163 = arith.constant 0 : index
    %363 = vector.load %arg7[%c0_162, %c0_163] : memref<32x128xbf16, #tpu.memory_space<vmem>>, vector<32x128xbf16>
    %cst_164 = arith.constant dense<0.000000e+00> : vector<8x128xf32>
    %364 = tpu.matmul %362, %363, %cst_164 {dimension_numbers = #tpu.dot_dimension_numbers<[1], [0], [0], [1], [0, 0, 1, 1], [], []>} : vector<8x32xbf16>, vector<32x128xbf16>, vector<8x128xf32> -> vector<8x128xf32>
    %c0_165 = arith.constant 0 : index
    %c0_166 = arith.constant 0 : index
    %365 = vector.load %arg8[%c0_165, %c0_166] : memref<1x128xf32, #tpu.memory_space<vmem>>, vector<1x128xf32>
    %366 = vector.broadcast %365 : vector<1x128xf32> to vector<8x128xf32>
    %367 = arith.addf %364, %366 : vector<8x128xf32>
    %c40_167 = arith.constant 40 : index
    %c0_168 = arith.constant 0 : index
    %368 = vector.load %arg9[%c40_167, %c0_168] : memref<152x128xf32, #tpu.memory_space<vmem>>, vector<8x128xf32>
    tpu.vector_store %arg9[%c40_167, %c0_168], %367 {strides = array<i32>} : memref<152x128xf32, #tpu.memory_space<vmem>>, vector<8x128xf32>,
    %c56 = arith.constant 56 : index
    %c0_169 = arith.constant 0 : index
    %369 = vector.load %arg10[%c56, %c0_169] : memref<152x128xf32, #tpu.memory_space<vmem>>, vector<8x128xf32>
    %370 = arith.truncf %334 : vector<8x32xf32> to vector<8x32xbf16>
    %c0_170 = arith.constant 0 : index
    %c0_171 = arith.constant 0 : index
    %371 = vector.load %arg2[%c0_170, %c0_171] : memref<32x128xbf16, #tpu.memory_space<vmem>>, vector<32x128xbf16>
    %cst_172 = arith.constant dense<0.000000e+00> : vector<8x128xf32>
    %372 = tpu.matmul %370, %371, %cst_172 {dimension_numbers = #tpu.dot_dimension_numbers<[1], [0], [0], [1], [0, 0, 1, 1], [], []>} : vector<8x32xbf16>, vector<32x128xbf16>, vector<8x128xf32> -> vector<8x128xf32>
    %373 = arith.addf %369, %372 : vector<8x128xf32>
    %cst_173 = arith.constant 5.000000e-01 : f32
    %374 = vector.broadcast %cst_173 : f32 to vector<8x128xf32>
    %375 = arith.mulf %374, %373 : vector<8x128xf32>
    %376 = math.tanh %375 : vector<8x128xf32>
    %cst_174 = arith.constant 5.000000e-01 : f32
    %377 = vector.broadcast %cst_174 : f32 to vector<8x128xf32>
    %378 = arith.mulf %377, %376 : vector<8x128xf32>
    %cst_175 = arith.constant 5.000000e-01 : f32
    %379 = vector.broadcast %cst_175 : f32 to vector<8x128xf32>
    %380 = arith.addf %378, %379 : vector<8x128xf32>
    %381 = math.tanh %373 : vector<8x128xf32>
    %382 = vector.extract_strided_slice %380 {offsets = [0, 0], sizes = [8, 32], strides = [1, 1]} : vector<8x128xf32> to vector<8x32xf32>
    %383 = vector.extract_strided_slice %380 {offsets = [0, 32], sizes = [8, 32], strides = [1, 1]} : vector<8x128xf32> to vector<8x32xf32>
    %384 = vector.extract_strided_slice %381 {offsets = [0, 64], sizes = [8, 32], strides = [1, 1]} : vector<8x128xf32> to vector<8x32xf32>
    %385 = vector.extract_strided_slice %380 {offsets = [0, 96], sizes = [8, 32], strides = [1, 1]} : vector<8x128xf32> to vector<8x32xf32>
    %386 = arith.mulf %383, %332 : vector<8x32xf32>
    %387 = arith.mulf %382, %384 : vector<8x32xf32>
    %388 = arith.addf %386, %387 : vector<8x32xf32>
    %389 = math.tanh %388 : vector<8x32xf32>
    %390 = arith.mulf %385, %389 : vector<8x32xf32>
    %391 = arith.truncf %334 : vector<8x32xf32> to vector<8x32xbf16>
    %c0_176 = arith.constant 0 : index
    %c0_177 = arith.constant 0 : index
    %392 = vector.load %arg4[%c0_176, %c0_177] : memref<32x128xbf16, #tpu.memory_space<vmem>>, vector<32x128xbf16>
    %cst_178 = arith.constant dense<0.000000e+00> : vector<8x128xf32>
    %393 = tpu.matmul %391, %392, %cst_178 {dimension_numbers = #tpu.dot_dimension_numbers<[1], [0], [0], [1], [0, 0, 1, 1], [], []>} : vector<8x32xbf16>, vector<32x128xbf16>, vector<8x128xf32> -> vector<8x128xf32>
    %c0_179 = arith.constant 0 : index
    %c0_180 = arith.constant 0 : index
    %394 = vector.load %arg6[%c0_179, %c0_180] : memref<1x128xf32, #tpu.memory_space<vmem>>, vector<1x128xf32>
    %395 = vector.broadcast %394 : vector<1x128xf32> to vector<8x128xf32>
    %396 = arith.addf %393, %395 : vector<8x128xf32>
    %397 = arith.truncf %361 : vector<8x32xf32> to vector<8x32xbf16>
    %c0_181 = arith.constant 0 : index
    %c0_182 = arith.constant 0 : index
    %398 = vector.load %arg5[%c0_181, %c0_182] : memref<32x128xbf16, #tpu.memory_space<vmem>>, vector<32x128xbf16>
    %cst_183 = arith.constant dense<0.000000e+00> : vector<8x128xf32>
    %399 = tpu.matmul %397, %398, %cst_183 {dimension_numbers = #tpu.dot_dimension_numbers<[1], [0], [0], [1], [0, 0, 1, 1], [], []>} : vector<8x32xbf16>, vector<32x128xbf16>, vector<8x128xf32> -> vector<8x128xf32>
    %400 = arith.addf %396, %399 : vector<8x128xf32>
    %cst_184 = arith.constant 5.000000e-01 : f32
    %401 = vector.broadcast %cst_184 : f32 to vector<8x128xf32>
    %402 = arith.mulf %401, %400 : vector<8x128xf32>
    %403 = math.tanh %402 : vector<8x128xf32>
    %cst_185 = arith.constant 5.000000e-01 : f32
    %404 = vector.broadcast %cst_185 : f32 to vector<8x128xf32>
    %405 = arith.mulf %404, %403 : vector<8x128xf32>
    %cst_186 = arith.constant 5.000000e-01 : f32
    %406 = vector.broadcast %cst_186 : f32 to vector<8x128xf32>
    %407 = arith.addf %405, %406 : vector<8x128xf32>
    %408 = math.tanh %400 : vector<8x128xf32>
    %409 = vector.extract_strided_slice %407 {offsets = [0, 0], sizes = [8, 32], strides = [1, 1]} : vector<8x128xf32> to vector<8x32xf32>
    %410 = vector.extract_strided_slice %407 {offsets = [0, 32], sizes = [8, 32], strides = [1, 1]} : vector<8x128xf32> to vector<8x32xf32>
    %411 = vector.extract_strided_slice %408 {offsets = [0, 64], sizes = [8, 32], strides = [1, 1]} : vector<8x128xf32> to vector<8x32xf32>
    %412 = vector.extract_strided_slice %407 {offsets = [0, 96], sizes = [8, 32], strides = [1, 1]} : vector<8x128xf32> to vector<8x32xf32>
    %413 = arith.mulf %410, %359 : vector<8x32xf32>
    %414 = arith.mulf %409, %411 : vector<8x32xf32>
    %415 = arith.addf %413, %414 : vector<8x32xf32>
    %416 = math.tanh %415 : vector<8x32xf32>
    %417 = arith.mulf %412, %416 : vector<8x32xf32>
    %418 = arith.truncf %417 : vector<8x32xf32> to vector<8x32xbf16>
    %c0_187 = arith.constant 0 : index
    %c0_188 = arith.constant 0 : index
    %419 = vector.load %arg7[%c0_187, %c0_188] : memref<32x128xbf16, #tpu.memory_space<vmem>>, vector<32x128xbf16>
    %cst_189 = arith.constant dense<0.000000e+00> : vector<8x128xf32>
    %420 = tpu.matmul %418, %419, %cst_189 {dimension_numbers = #tpu.dot_dimension_numbers<[1], [0], [0], [1], [0, 0, 1, 1], [], []>} : vector<8x32xbf16>, vector<32x128xbf16>, vector<8x128xf32> -> vector<8x128xf32>
    %c0_190 = arith.constant 0 : index
    %c0_191 = arith.constant 0 : index
    %421 = vector.load %arg8[%c0_190, %c0_191] : memref<1x128xf32, #tpu.memory_space<vmem>>, vector<1x128xf32>
    %422 = vector.broadcast %421 : vector<1x128xf32> to vector<8x128xf32>
    %423 = arith.addf %420, %422 : vector<8x128xf32>
    %c48_192 = arith.constant 48 : index
    %c0_193 = arith.constant 0 : index
    %424 = vector.load %arg9[%c48_192, %c0_193] : memref<152x128xf32, #tpu.memory_space<vmem>>, vector<8x128xf32>
    tpu.vector_store %arg9[%c48_192, %c0_193], %423 {strides = array<i32>} : memref<152x128xf32, #tpu.memory_space<vmem>>, vector<8x128xf32>,
    %c64 = arith.constant 64 : index
    %c0_194 = arith.constant 0 : index
    %425 = vector.load %arg10[%c64, %c0_194] : memref<152x128xf32, #tpu.memory_space<vmem>>, vector<8x128xf32>
    %426 = arith.truncf %390 : vector<8x32xf32> to vector<8x32xbf16>
    %c0_195 = arith.constant 0 : index
    %c0_196 = arith.constant 0 : index
    %427 = vector.load %arg2[%c0_195, %c0_196] : memref<32x128xbf16, #tpu.memory_space<vmem>>, vector<32x128xbf16>
    %cst_197 = arith.constant dense<0.000000e+00> : vector<8x128xf32>
    %428 = tpu.matmul %426, %427, %cst_197 {dimension_numbers = #tpu.dot_dimension_numbers<[1], [0], [0], [1], [0, 0, 1, 1], [], []>} : vector<8x32xbf16>, vector<32x128xbf16>, vector<8x128xf32> -> vector<8x128xf32>
    %429 = arith.addf %425, %428 : vector<8x128xf32>
    %cst_198 = arith.constant 5.000000e-01 : f32
    %430 = vector.broadcast %cst_198 : f32 to vector<8x128xf32>
    %431 = arith.mulf %430, %429 : vector<8x128xf32>
    %432 = math.tanh %431 : vector<8x128xf32>
    %cst_199 = arith.constant 5.000000e-01 : f32
    %433 = vector.broadcast %cst_199 : f32 to vector<8x128xf32>
    %434 = arith.mulf %433, %432 : vector<8x128xf32>
    %cst_200 = arith.constant 5.000000e-01 : f32
    %435 = vector.broadcast %cst_200 : f32 to vector<8x128xf32>
    %436 = arith.addf %434, %435 : vector<8x128xf32>
    %437 = math.tanh %429 : vector<8x128xf32>
    %438 = vector.extract_strided_slice %436 {offsets = [0, 0], sizes = [8, 32], strides = [1, 1]} : vector<8x128xf32> to vector<8x32xf32>
    %439 = vector.extract_strided_slice %436 {offsets = [0, 32], sizes = [8, 32], strides = [1, 1]} : vector<8x128xf32> to vector<8x32xf32>
    %440 = vector.extract_strided_slice %437 {offsets = [0, 64], sizes = [8, 32], strides = [1, 1]} : vector<8x128xf32> to vector<8x32xf32>
    %441 = vector.extract_strided_slice %436 {offsets = [0, 96], sizes = [8, 32], strides = [1, 1]} : vector<8x128xf32> to vector<8x32xf32>
    %442 = arith.mulf %439, %388 : vector<8x32xf32>
    %443 = arith.mulf %438, %440 : vector<8x32xf32>
    %444 = arith.addf %442, %443 : vector<8x32xf32>
    %445 = math.tanh %444 : vector<8x32xf32>
    %446 = arith.mulf %441, %445 : vector<8x32xf32>
    %447 = arith.truncf %390 : vector<8x32xf32> to vector<8x32xbf16>
    %c0_201 = arith.constant 0 : index
    %c0_202 = arith.constant 0 : index
    %448 = vector.load %arg4[%c0_201, %c0_202] : memref<32x128xbf16, #tpu.memory_space<vmem>>, vector<32x128xbf16>
    %cst_203 = arith.constant dense<0.000000e+00> : vector<8x128xf32>
    %449 = tpu.matmul %447, %448, %cst_203 {dimension_numbers = #tpu.dot_dimension_numbers<[1], [0], [0], [1], [0, 0, 1, 1], [], []>} : vector<8x32xbf16>, vector<32x128xbf16>, vector<8x128xf32> -> vector<8x128xf32>
    %c0_204 = arith.constant 0 : index
    %c0_205 = arith.constant 0 : index
    %450 = vector.load %arg6[%c0_204, %c0_205] : memref<1x128xf32, #tpu.memory_space<vmem>>, vector<1x128xf32>
    %451 = vector.broadcast %450 : vector<1x128xf32> to vector<8x128xf32>
    %452 = arith.addf %449, %451 : vector<8x128xf32>
    %453 = arith.truncf %417 : vector<8x32xf32> to vector<8x32xbf16>
    %c0_206 = arith.constant 0 : index
    %c0_207 = arith.constant 0 : index
    %454 = vector.load %arg5[%c0_206, %c0_207] : memref<32x128xbf16, #tpu.memory_space<vmem>>, vector<32x128xbf16>
    %cst_208 = arith.constant dense<0.000000e+00> : vector<8x128xf32>
    %455 = tpu.matmul %453, %454, %cst_208 {dimension_numbers = #tpu.dot_dimension_numbers<[1], [0], [0], [1], [0, 0, 1, 1], [], []>} : vector<8x32xbf16>, vector<32x128xbf16>, vector<8x128xf32> -> vector<8x128xf32>
    %456 = arith.addf %452, %455 : vector<8x128xf32>
    %cst_209 = arith.constant 5.000000e-01 : f32
    %457 = vector.broadcast %cst_209 : f32 to vector<8x128xf32>
    %458 = arith.mulf %457, %456 : vector<8x128xf32>
    %459 = math.tanh %458 : vector<8x128xf32>
    %cst_210 = arith.constant 5.000000e-01 : f32
    %460 = vector.broadcast %cst_210 : f32 to vector<8x128xf32>
    %461 = arith.mulf %460, %459 : vector<8x128xf32>
    %cst_211 = arith.constant 5.000000e-01 : f32
    %462 = vector.broadcast %cst_211 : f32 to vector<8x128xf32>
    %463 = arith.addf %461, %462 : vector<8x128xf32>
    %464 = math.tanh %456 : vector<8x128xf32>
    %465 = vector.extract_strided_slice %463 {offsets = [0, 0], sizes = [8, 32], strides = [1, 1]} : vector<8x128xf32> to vector<8x32xf32>
    %466 = vector.extract_strided_slice %463 {offsets = [0, 32], sizes = [8, 32], strides = [1, 1]} : vector<8x128xf32> to vector<8x32xf32>
    %467 = vector.extract_strided_slice %464 {offsets = [0, 64], sizes = [8, 32], strides = [1, 1]} : vector<8x128xf32> to vector<8x32xf32>
    %468 = vector.extract_strided_slice %463 {offsets = [0, 96], sizes = [8, 32], strides = [1, 1]} : vector<8x128xf32> to vector<8x32xf32>
    %469 = arith.mulf %466, %415 : vector<8x32xf32>
    %470 = arith.mulf %465, %467 : vector<8x32xf32>
    %471 = arith.addf %469, %470 : vector<8x32xf32>
    %472 = math.tanh %471 : vector<8x32xf32>
    %473 = arith.mulf %468, %472 : vector<8x32xf32>
    %474 = arith.truncf %473 : vector<8x32xf32> to vector<8x32xbf16>
    %c0_212 = arith.constant 0 : index
    %c0_213 = arith.constant 0 : index
    %475 = vector.load %arg7[%c0_212, %c0_213] : memref<32x128xbf16, #tpu.memory_space<vmem>>, vector<32x128xbf16>
    %cst_214 = arith.constant dense<0.000000e+00> : vector<8x128xf32>
    %476 = tpu.matmul %474, %475, %cst_214 {dimension_numbers = #tpu.dot_dimension_numbers<[1], [0], [0], [1], [0, 0, 1, 1], [], []>} : vector<8x32xbf16>, vector<32x128xbf16>, vector<8x128xf32> -> vector<8x128xf32>
    %c0_215 = arith.constant 0 : index
    %c0_216 = arith.constant 0 : index
    %477 = vector.load %arg8[%c0_215, %c0_216] : memref<1x128xf32, #tpu.memory_space<vmem>>, vector<1x128xf32>
    %478 = vector.broadcast %477 : vector<1x128xf32> to vector<8x128xf32>
    %479 = arith.addf %476, %478 : vector<8x128xf32>
    %c56_217 = arith.constant 56 : index
    %c0_218 = arith.constant 0 : index
    %480 = vector.load %arg9[%c56_217, %c0_218] : memref<152x128xf32, #tpu.memory_space<vmem>>, vector<8x128xf32>
    tpu.vector_store %arg9[%c56_217, %c0_218], %479 {strides = array<i32>} : memref<152x128xf32, #tpu.memory_space<vmem>>, vector<8x128xf32>,
    %c72 = arith.constant 72 : index
    %c0_219 = arith.constant 0 : index
    %481 = vector.load %arg10[%c72, %c0_219] : memref<152x128xf32, #tpu.memory_space<vmem>>, vector<8x128xf32>
    %482 = arith.truncf %446 : vector<8x32xf32> to vector<8x32xbf16>
    %c0_220 = arith.constant 0 : index
    %c0_221 = arith.constant 0 : index
    %483 = vector.load %arg2[%c0_220, %c0_221] : memref<32x128xbf16, #tpu.memory_space<vmem>>, vector<32x128xbf16>
    %cst_222 = arith.constant dense<0.000000e+00> : vector<8x128xf32>
    %484 = tpu.matmul %482, %483, %cst_222 {dimension_numbers = #tpu.dot_dimension_numbers<[1], [0], [0], [1], [0, 0, 1, 1], [], []>} : vector<8x32xbf16>, vector<32x128xbf16>, vector<8x128xf32> -> vector<8x128xf32>
    %485 = arith.addf %481, %484 : vector<8x128xf32>
    %cst_223 = arith.constant 5.000000e-01 : f32
    %486 = vector.broadcast %cst_223 : f32 to vector<8x128xf32>
    %487 = arith.mulf %486, %485 : vector<8x128xf32>
    %488 = math.tanh %487 : vector<8x128xf32>
    %cst_224 = arith.constant 5.000000e-01 : f32
    %489 = vector.broadcast %cst_224 : f32 to vector<8x128xf32>
    %490 = arith.mulf %489, %488 : vector<8x128xf32>
    %cst_225 = arith.constant 5.000000e-01 : f32
    %491 = vector.broadcast %cst_225 : f32 to vector<8x128xf32>
    %492 = arith.addf %490, %491 : vector<8x128xf32>
    %493 = math.tanh %485 : vector<8x128xf32>
    %494 = vector.extract_strided_slice %492 {offsets = [0, 0], sizes = [8, 32], strides = [1, 1]} : vector<8x128xf32> to vector<8x32xf32>
    %495 = vector.extract_strided_slice %492 {offsets = [0, 32], sizes = [8, 32], strides = [1, 1]} : vector<8x128xf32> to vector<8x32xf32>
    %496 = vector.extract_strided_slice %493 {offsets = [0, 64], sizes = [8, 32], strides = [1, 1]} : vector<8x128xf32> to vector<8x32xf32>
    %497 = vector.extract_strided_slice %492 {offsets = [0, 96], sizes = [8, 32], strides = [1, 1]} : vector<8x128xf32> to vector<8x32xf32>
    %498 = arith.mulf %495, %444 : vector<8x32xf32>
    %499 = arith.mulf %494, %496 : vector<8x32xf32>
    %500 = arith.addf %498, %499 : vector<8x32xf32>
    %501 = math.tanh %500 : vector<8x32xf32>
    %502 = arith.mulf %497, %501 : vector<8x32xf32>
    %503 = arith.truncf %446 : vector<8x32xf32> to vector<8x32xbf16>
    %c0_226 = arith.constant 0 : index
    %c0_227 = arith.constant 0 : index
    %504 = vector.load %arg4[%c0_226, %c0_227] : memref<32x128xbf16, #tpu.memory_space<vmem>>, vector<32x128xbf16>
    %cst_228 = arith.constant dense<0.000000e+00> : vector<8x128xf32>
    %505 = tpu.matmul %503, %504, %cst_228 {dimension_numbers = #tpu.dot_dimension_numbers<[1], [0], [0], [1], [0, 0, 1, 1], [], []>} : vector<8x32xbf16>, vector<32x128xbf16>, vector<8x128xf32> -> vector<8x128xf32>
    %c0_229 = arith.constant 0 : index
    %c0_230 = arith.constant 0 : index
    %506 = vector.load %arg6[%c0_229, %c0_230] : memref<1x128xf32, #tpu.memory_space<vmem>>, vector<1x128xf32>
    %507 = vector.broadcast %506 : vector<1x128xf32> to vector<8x128xf32>
    %508 = arith.addf %505, %507 : vector<8x128xf32>
    %509 = arith.truncf %473 : vector<8x32xf32> to vector<8x32xbf16>
    %c0_231 = arith.constant 0 : index
    %c0_232 = arith.constant 0 : index
    %510 = vector.load %arg5[%c0_231, %c0_232] : memref<32x128xbf16, #tpu.memory_space<vmem>>, vector<32x128xbf16>
    %cst_233 = arith.constant dense<0.000000e+00> : vector<8x128xf32>
    %511 = tpu.matmul %509, %510, %cst_233 {dimension_numbers = #tpu.dot_dimension_numbers<[1], [0], [0], [1], [0, 0, 1, 1], [], []>} : vector<8x32xbf16>, vector<32x128xbf16>, vector<8x128xf32> -> vector<8x128xf32>
    %512 = arith.addf %508, %511 : vector<8x128xf32>
    %cst_234 = arith.constant 5.000000e-01 : f32
    %513 = vector.broadcast %cst_234 : f32 to vector<8x128xf32>
    %514 = arith.mulf %513, %512 : vector<8x128xf32>
    %515 = math.tanh %514 : vector<8x128xf32>
    %cst_235 = arith.constant 5.000000e-01 : f32
    %516 = vector.broadcast %cst_235 : f32 to vector<8x128xf32>
    %517 = arith.mulf %516, %515 : vector<8x128xf32>
    %cst_236 = arith.constant 5.000000e-01 : f32
    %518 = vector.broadcast %cst_236 : f32 to vector<8x128xf32>
    %519 = arith.addf %517, %518 : vector<8x128xf32>
    %520 = math.tanh %512 : vector<8x128xf32>
    %521 = vector.extract_strided_slice %519 {offsets = [0, 0], sizes = [8, 32], strides = [1, 1]} : vector<8x128xf32> to vector<8x32xf32>
    %522 = vector.extract_strided_slice %519 {offsets = [0, 32], sizes = [8, 32], strides = [1, 1]} : vector<8x128xf32> to vector<8x32xf32>
    %523 = vector.extract_strided_slice %520 {offsets = [0, 64], sizes = [8, 32], strides = [1, 1]} : vector<8x128xf32> to vector<8x32xf32>
    %524 = vector.extract_strided_slice %519 {offsets = [0, 96], sizes = [8, 32], strides = [1, 1]} : vector<8x128xf32> to vector<8x32xf32>
    %525 = arith.mulf %522, %471 : vector<8x32xf32>
    %526 = arith.mulf %521, %523 : vector<8x32xf32>
    %527 = arith.addf %525, %526 : vector<8x32xf32>
    %528 = math.tanh %527 : vector<8x32xf32>
    %529 = arith.mulf %524, %528 : vector<8x32xf32>
    %530 = arith.truncf %529 : vector<8x32xf32> to vector<8x32xbf16>
    %c0_237 = arith.constant 0 : index
    %c0_238 = arith.constant 0 : index
    %531 = vector.load %arg7[%c0_237, %c0_238] : memref<32x128xbf16, #tpu.memory_space<vmem>>, vector<32x128xbf16>
    %cst_239 = arith.constant dense<0.000000e+00> : vector<8x128xf32>
    %532 = tpu.matmul %530, %531, %cst_239 {dimension_numbers = #tpu.dot_dimension_numbers<[1], [0], [0], [1], [0, 0, 1, 1], [], []>} : vector<8x32xbf16>, vector<32x128xbf16>, vector<8x128xf32> -> vector<8x128xf32>
    %c0_240 = arith.constant 0 : index
    %c0_241 = arith.constant 0 : index
    %533 = vector.load %arg8[%c0_240, %c0_241] : memref<1x128xf32, #tpu.memory_space<vmem>>, vector<1x128xf32>
    %534 = vector.broadcast %533 : vector<1x128xf32> to vector<8x128xf32>
    %535 = arith.addf %532, %534 : vector<8x128xf32>
    %c64_242 = arith.constant 64 : index
    %c0_243 = arith.constant 0 : index
    %536 = vector.load %arg9[%c64_242, %c0_243] : memref<152x128xf32, #tpu.memory_space<vmem>>, vector<8x128xf32>
    tpu.vector_store %arg9[%c64_242, %c0_243], %535 {strides = array<i32>} : memref<152x128xf32, #tpu.memory_space<vmem>>, vector<8x128xf32>,
    %c80 = arith.constant 80 : index
    %c0_244 = arith.constant 0 : index
    %537 = vector.load %arg10[%c80, %c0_244] : memref<152x128xf32, #tpu.memory_space<vmem>>, vector<8x128xf32>
    %538 = arith.truncf %502 : vector<8x32xf32> to vector<8x32xbf16>
    %c0_245 = arith.constant 0 : index
    %c0_246 = arith.constant 0 : index
    %539 = vector.load %arg2[%c0_245, %c0_246] : memref<32x128xbf16, #tpu.memory_space<vmem>>, vector<32x128xbf16>
    %cst_247 = arith.constant dense<0.000000e+00> : vector<8x128xf32>
    %540 = tpu.matmul %538, %539, %cst_247 {dimension_numbers = #tpu.dot_dimension_numbers<[1], [0], [0], [1], [0, 0, 1, 1], [], []>} : vector<8x32xbf16>, vector<32x128xbf16>, vector<8x128xf32> -> vector<8x128xf32>
    %541 = arith.addf %537, %540 : vector<8x128xf32>
    %cst_248 = arith.constant 5.000000e-01 : f32
    %542 = vector.broadcast %cst_248 : f32 to vector<8x128xf32>
    %543 = arith.mulf %542, %541 : vector<8x128xf32>
    %544 = math.tanh %543 : vector<8x128xf32>
    %cst_249 = arith.constant 5.000000e-01 : f32
    %545 = vector.broadcast %cst_249 : f32 to vector<8x128xf32>
    %546 = arith.mulf %545, %544 : vector<8x128xf32>
    %cst_250 = arith.constant 5.000000e-01 : f32
    %547 = vector.broadcast %cst_250 : f32 to vector<8x128xf32>
    %548 = arith.addf %546, %547 : vector<8x128xf32>
    %549 = math.tanh %541 : vector<8x128xf32>
    %550 = vector.extract_strided_slice %548 {offsets = [0, 0], sizes = [8, 32], strides = [1, 1]} : vector<8x128xf32> to vector<8x32xf32>
    %551 = vector.extract_strided_slice %548 {offsets = [0, 32], sizes = [8, 32], strides = [1, 1]} : vector<8x128xf32> to vector<8x32xf32>
    %552 = vector.extract_strided_slice %549 {offsets = [0, 64], sizes = [8, 32], strides = [1, 1]} : vector<8x128xf32> to vector<8x32xf32>
    %553 = vector.extract_strided_slice %548 {offsets = [0, 96], sizes = [8, 32], strides = [1, 1]} : vector<8x128xf32> to vector<8x32xf32>
    %554 = arith.mulf %551, %500 : vector<8x32xf32>
    %555 = arith.mulf %550, %552 : vector<8x32xf32>
    %556 = arith.addf %554, %555 : vector<8x32xf32>
    %557 = math.tanh %556 : vector<8x32xf32>
    %558 = arith.mulf %553, %557 : vector<8x32xf32>
    %559 = arith.truncf %502 : vector<8x32xf32> to vector<8x32xbf16>
    %c0_251 = arith.constant 0 : index
    %c0_252 = arith.constant 0 : index
    %560 = vector.load %arg4[%c0_251, %c0_252] : memref<32x128xbf16, #tpu.memory_space<vmem>>, vector<32x128xbf16>
    %cst_253 = arith.constant dense<0.000000e+00> : vector<8x128xf32>
    %561 = tpu.matmul %559, %560, %cst_253 {dimension_numbers = #tpu.dot_dimension_numbers<[1], [0], [0], [1], [0, 0, 1, 1], [], []>} : vector<8x32xbf16>, vector<32x128xbf16>, vector<8x128xf32> -> vector<8x128xf32>
    %c0_254 = arith.constant 0 : index
    %c0_255 = arith.constant 0 : index
    %562 = vector.load %arg6[%c0_254, %c0_255] : memref<1x128xf32, #tpu.memory_space<vmem>>, vector<1x128xf32>
    %563 = vector.broadcast %562 : vector<1x128xf32> to vector<8x128xf32>
    %564 = arith.addf %561, %563 : vector<8x128xf32>
    %565 = arith.truncf %529 : vector<8x32xf32> to vector<8x32xbf16>
    %c0_256 = arith.constant 0 : index
    %c0_257 = arith.constant 0 : index
    %566 = vector.load %arg5[%c0_256, %c0_257] : memref<32x128xbf16, #tpu.memory_space<vmem>>, vector<32x128xbf16>
    %cst_258 = arith.constant dense<0.000000e+00> : vector<8x128xf32>
    %567 = tpu.matmul %565, %566, %cst_258 {dimension_numbers = #tpu.dot_dimension_numbers<[1], [0], [0], [1], [0, 0, 1, 1], [], []>} : vector<8x32xbf16>, vector<32x128xbf16>, vector<8x128xf32> -> vector<8x128xf32>
    %568 = arith.addf %564, %567 : vector<8x128xf32>
    %cst_259 = arith.constant 5.000000e-01 : f32
    %569 = vector.broadcast %cst_259 : f32 to vector<8x128xf32>
    %570 = arith.mulf %569, %568 : vector<8x128xf32>
    %571 = math.tanh %570 : vector<8x128xf32>
    %cst_260 = arith.constant 5.000000e-01 : f32
    %572 = vector.broadcast %cst_260 : f32 to vector<8x128xf32>
    %573 = arith.mulf %572, %571 : vector<8x128xf32>
    %cst_261 = arith.constant 5.000000e-01 : f32
    %574 = vector.broadcast %cst_261 : f32 to vector<8x128xf32>
    %575 = arith.addf %573, %574 : vector<8x128xf32>
    %576 = math.tanh %568 : vector<8x128xf32>
    %577 = vector.extract_strided_slice %575 {offsets = [0, 0], sizes = [8, 32], strides = [1, 1]} : vector<8x128xf32> to vector<8x32xf32>
    %578 = vector.extract_strided_slice %575 {offsets = [0, 32], sizes = [8, 32], strides = [1, 1]} : vector<8x128xf32> to vector<8x32xf32>
    %579 = vector.extract_strided_slice %576 {offsets = [0, 64], sizes = [8, 32], strides = [1, 1]} : vector<8x128xf32> to vector<8x32xf32>
    %580 = vector.extract_strided_slice %575 {offsets = [0, 96], sizes = [8, 32], strides = [1, 1]} : vector<8x128xf32> to vector<8x32xf32>
    %581 = arith.mulf %578, %527 : vector<8x32xf32>
    %582 = arith.mulf %577, %579 : vector<8x32xf32>
    %583 = arith.addf %581, %582 : vector<8x32xf32>
    %584 = math.tanh %583 : vector<8x32xf32>
    %585 = arith.mulf %580, %584 : vector<8x32xf32>
    %586 = arith.truncf %585 : vector<8x32xf32> to vector<8x32xbf16>
    %c0_262 = arith.constant 0 : index
    %c0_263 = arith.constant 0 : index
    %587 = vector.load %arg7[%c0_262, %c0_263] : memref<32x128xbf16, #tpu.memory_space<vmem>>, vector<32x128xbf16>
    %cst_264 = arith.constant dense<0.000000e+00> : vector<8x128xf32>
    %588 = tpu.matmul %586, %587, %cst_264 {dimension_numbers = #tpu.dot_dimension_numbers<[1], [0], [0], [1], [0, 0, 1, 1], [], []>} : vector<8x32xbf16>, vector<32x128xbf16>, vector<8x128xf32> -> vector<8x128xf32>
    %c0_265 = arith.constant 0 : index
    %c0_266 = arith.constant 0 : index
    %589 = vector.load %arg8[%c0_265, %c0_266] : memref<1x128xf32, #tpu.memory_space<vmem>>, vector<1x128xf32>
    %590 = vector.broadcast %589 : vector<1x128xf32> to vector<8x128xf32>
    %591 = arith.addf %588, %590 : vector<8x128xf32>
    %c72_267 = arith.constant 72 : index
    %c0_268 = arith.constant 0 : index
    %592 = vector.load %arg9[%c72_267, %c0_268] : memref<152x128xf32, #tpu.memory_space<vmem>>, vector<8x128xf32>
    tpu.vector_store %arg9[%c72_267, %c0_268], %591 {strides = array<i32>} : memref<152x128xf32, #tpu.memory_space<vmem>>, vector<8x128xf32>,
    %c88 = arith.constant 88 : index
    %c0_269 = arith.constant 0 : index
    %593 = vector.load %arg10[%c88, %c0_269] : memref<152x128xf32, #tpu.memory_space<vmem>>, vector<8x128xf32>
    %594 = arith.truncf %558 : vector<8x32xf32> to vector<8x32xbf16>
    %c0_270 = arith.constant 0 : index
    %c0_271 = arith.constant 0 : index
    %595 = vector.load %arg2[%c0_270, %c0_271] : memref<32x128xbf16, #tpu.memory_space<vmem>>, vector<32x128xbf16>
    %cst_272 = arith.constant dense<0.000000e+00> : vector<8x128xf32>
    %596 = tpu.matmul %594, %595, %cst_272 {dimension_numbers = #tpu.dot_dimension_numbers<[1], [0], [0], [1], [0, 0, 1, 1], [], []>} : vector<8x32xbf16>, vector<32x128xbf16>, vector<8x128xf32> -> vector<8x128xf32>
    %597 = arith.addf %593, %596 : vector<8x128xf32>
    %cst_273 = arith.constant 5.000000e-01 : f32
    %598 = vector.broadcast %cst_273 : f32 to vector<8x128xf32>
    %599 = arith.mulf %598, %597 : vector<8x128xf32>
    %600 = math.tanh %599 : vector<8x128xf32>
    %cst_274 = arith.constant 5.000000e-01 : f32
    %601 = vector.broadcast %cst_274 : f32 to vector<8x128xf32>
    %602 = arith.mulf %601, %600 : vector<8x128xf32>
    %cst_275 = arith.constant 5.000000e-01 : f32
    %603 = vector.broadcast %cst_275 : f32 to vector<8x128xf32>
    %604 = arith.addf %602, %603 : vector<8x128xf32>
    %605 = math.tanh %597 : vector<8x128xf32>
    %606 = vector.extract_strided_slice %604 {offsets = [0, 0], sizes = [8, 32], strides = [1, 1]} : vector<8x128xf32> to vector<8x32xf32>
    %607 = vector.extract_strided_slice %604 {offsets = [0, 32], sizes = [8, 32], strides = [1, 1]} : vector<8x128xf32> to vector<8x32xf32>
    %608 = vector.extract_strided_slice %605 {offsets = [0, 64], sizes = [8, 32], strides = [1, 1]} : vector<8x128xf32> to vector<8x32xf32>
    %609 = vector.extract_strided_slice %604 {offsets = [0, 96], sizes = [8, 32], strides = [1, 1]} : vector<8x128xf32> to vector<8x32xf32>
    %610 = arith.mulf %607, %556 : vector<8x32xf32>
    %611 = arith.mulf %606, %608 : vector<8x32xf32>
    %612 = arith.addf %610, %611 : vector<8x32xf32>
    %613 = math.tanh %612 : vector<8x32xf32>
    %614 = arith.mulf %609, %613 : vector<8x32xf32>
    %615 = arith.truncf %558 : vector<8x32xf32> to vector<8x32xbf16>
    %c0_276 = arith.constant 0 : index
    %c0_277 = arith.constant 0 : index
    %616 = vector.load %arg4[%c0_276, %c0_277] : memref<32x128xbf16, #tpu.memory_space<vmem>>, vector<32x128xbf16>
    %cst_278 = arith.constant dense<0.000000e+00> : vector<8x128xf32>
    %617 = tpu.matmul %615, %616, %cst_278 {dimension_numbers = #tpu.dot_dimension_numbers<[1], [0], [0], [1], [0, 0, 1, 1], [], []>} : vector<8x32xbf16>, vector<32x128xbf16>, vector<8x128xf32> -> vector<8x128xf32>
    %c0_279 = arith.constant 0 : index
    %c0_280 = arith.constant 0 : index
    %618 = vector.load %arg6[%c0_279, %c0_280] : memref<1x128xf32, #tpu.memory_space<vmem>>, vector<1x128xf32>
    %619 = vector.broadcast %618 : vector<1x128xf32> to vector<8x128xf32>
    %620 = arith.addf %617, %619 : vector<8x128xf32>
    %621 = arith.truncf %585 : vector<8x32xf32> to vector<8x32xbf16>
    %c0_281 = arith.constant 0 : index
    %c0_282 = arith.constant 0 : index
    %622 = vector.load %arg5[%c0_281, %c0_282] : memref<32x128xbf16, #tpu.memory_space<vmem>>, vector<32x128xbf16>
    %cst_283 = arith.constant dense<0.000000e+00> : vector<8x128xf32>
    %623 = tpu.matmul %621, %622, %cst_283 {dimension_numbers = #tpu.dot_dimension_numbers<[1], [0], [0], [1], [0, 0, 1, 1], [], []>} : vector<8x32xbf16>, vector<32x128xbf16>, vector<8x128xf32> -> vector<8x128xf32>
    %624 = arith.addf %620, %623 : vector<8x128xf32>
    %cst_284 = arith.constant 5.000000e-01 : f32
    %625 = vector.broadcast %cst_284 : f32 to vector<8x128xf32>
    %626 = arith.mulf %625, %624 : vector<8x128xf32>
    %627 = math.tanh %626 : vector<8x128xf32>
    %cst_285 = arith.constant 5.000000e-01 : f32
    %628 = vector.broadcast %cst_285 : f32 to vector<8x128xf32>
    %629 = arith.mulf %628, %627 : vector<8x128xf32>
    %cst_286 = arith.constant 5.000000e-01 : f32
    %630 = vector.broadcast %cst_286 : f32 to vector<8x128xf32>
    %631 = arith.addf %629, %630 : vector<8x128xf32>
    %632 = math.tanh %624 : vector<8x128xf32>
    %633 = vector.extract_strided_slice %631 {offsets = [0, 0], sizes = [8, 32], strides = [1, 1]} : vector<8x128xf32> to vector<8x32xf32>
    %634 = vector.extract_strided_slice %631 {offsets = [0, 32], sizes = [8, 32], strides = [1, 1]} : vector<8x128xf32> to vector<8x32xf32>
    %635 = vector.extract_strided_slice %632 {offsets = [0, 64], sizes = [8, 32], strides = [1, 1]} : vector<8x128xf32> to vector<8x32xf32>
    %636 = vector.extract_strided_slice %631 {offsets = [0, 96], sizes = [8, 32], strides = [1, 1]} : vector<8x128xf32> to vector<8x32xf32>
    %637 = arith.mulf %634, %583 : vector<8x32xf32>
    %638 = arith.mulf %633, %635 : vector<8x32xf32>
    %639 = arith.addf %637, %638 : vector<8x32xf32>
    %640 = math.tanh %639 : vector<8x32xf32>
    %641 = arith.mulf %636, %640 : vector<8x32xf32>
    %642 = arith.truncf %641 : vector<8x32xf32> to vector<8x32xbf16>
    %c0_287 = arith.constant 0 : index
    %c0_288 = arith.constant 0 : index
    %643 = vector.load %arg7[%c0_287, %c0_288] : memref<32x128xbf16, #tpu.memory_space<vmem>>, vector<32x128xbf16>
    %cst_289 = arith.constant dense<0.000000e+00> : vector<8x128xf32>
    %644 = tpu.matmul %642, %643, %cst_289 {dimension_numbers = #tpu.dot_dimension_numbers<[1], [0], [0], [1], [0, 0, 1, 1], [], []>} : vector<8x32xbf16>, vector<32x128xbf16>, vector<8x128xf32> -> vector<8x128xf32>
    %c0_290 = arith.constant 0 : index
    %c0_291 = arith.constant 0 : index
    %645 = vector.load %arg8[%c0_290, %c0_291] : memref<1x128xf32, #tpu.memory_space<vmem>>, vector<1x128xf32>
    %646 = vector.broadcast %645 : vector<1x128xf32> to vector<8x128xf32>
    %647 = arith.addf %644, %646 : vector<8x128xf32>
    %c80_292 = arith.constant 80 : index
    %c0_293 = arith.constant 0 : index
    %648 = vector.load %arg9[%c80_292, %c0_293] : memref<152x128xf32, #tpu.memory_space<vmem>>, vector<8x128xf32>
    tpu.vector_store %arg9[%c80_292, %c0_293], %647 {strides = array<i32>} : memref<152x128xf32, #tpu.memory_space<vmem>>, vector<8x128xf32>,
    %c96 = arith.constant 96 : index
    %c0_294 = arith.constant 0 : index
    %649 = vector.load %arg10[%c96, %c0_294] : memref<152x128xf32, #tpu.memory_space<vmem>>, vector<8x128xf32>
    %650 = arith.truncf %614 : vector<8x32xf32> to vector<8x32xbf16>
    %c0_295 = arith.constant 0 : index
    %c0_296 = arith.constant 0 : index
    %651 = vector.load %arg2[%c0_295, %c0_296] : memref<32x128xbf16, #tpu.memory_space<vmem>>, vector<32x128xbf16>
    %cst_297 = arith.constant dense<0.000000e+00> : vector<8x128xf32>
    %652 = tpu.matmul %650, %651, %cst_297 {dimension_numbers = #tpu.dot_dimension_numbers<[1], [0], [0], [1], [0, 0, 1, 1], [], []>} : vector<8x32xbf16>, vector<32x128xbf16>, vector<8x128xf32> -> vector<8x128xf32>
    %653 = arith.addf %649, %652 : vector<8x128xf32>
    %cst_298 = arith.constant 5.000000e-01 : f32
    %654 = vector.broadcast %cst_298 : f32 to vector<8x128xf32>
    %655 = arith.mulf %654, %653 : vector<8x128xf32>
    %656 = math.tanh %655 : vector<8x128xf32>
    %cst_299 = arith.constant 5.000000e-01 : f32
    %657 = vector.broadcast %cst_299 : f32 to vector<8x128xf32>
    %658 = arith.mulf %657, %656 : vector<8x128xf32>
    %cst_300 = arith.constant 5.000000e-01 : f32
    %659 = vector.broadcast %cst_300 : f32 to vector<8x128xf32>
    %660 = arith.addf %658, %659 : vector<8x128xf32>
    %661 = math.tanh %653 : vector<8x128xf32>
    %662 = vector.extract_strided_slice %660 {offsets = [0, 0], sizes = [8, 32], strides = [1, 1]} : vector<8x128xf32> to vector<8x32xf32>
    %663 = vector.extract_strided_slice %660 {offsets = [0, 32], sizes = [8, 32], strides = [1, 1]} : vector<8x128xf32> to vector<8x32xf32>
    %664 = vector.extract_strided_slice %661 {offsets = [0, 64], sizes = [8, 32], strides = [1, 1]} : vector<8x128xf32> to vector<8x32xf32>
    %665 = vector.extract_strided_slice %660 {offsets = [0, 96], sizes = [8, 32], strides = [1, 1]} : vector<8x128xf32> to vector<8x32xf32>
    %666 = arith.mulf %663, %612 : vector<8x32xf32>
    %667 = arith.mulf %662, %664 : vector<8x32xf32>
    %668 = arith.addf %666, %667 : vector<8x32xf32>
    %669 = math.tanh %668 : vector<8x32xf32>
    %670 = arith.mulf %665, %669 : vector<8x32xf32>
    %671 = arith.truncf %614 : vector<8x32xf32> to vector<8x32xbf16>
    %c0_301 = arith.constant 0 : index
    %c0_302 = arith.constant 0 : index
    %672 = vector.load %arg4[%c0_301, %c0_302] : memref<32x128xbf16, #tpu.memory_space<vmem>>, vector<32x128xbf16>
    %cst_303 = arith.constant dense<0.000000e+00> : vector<8x128xf32>
    %673 = tpu.matmul %671, %672, %cst_303 {dimension_numbers = #tpu.dot_dimension_numbers<[1], [0], [0], [1], [0, 0, 1, 1], [], []>} : vector<8x32xbf16>, vector<32x128xbf16>, vector<8x128xf32> -> vector<8x128xf32>
    %c0_304 = arith.constant 0 : index
    %c0_305 = arith.constant 0 : index
    %674 = vector.load %arg6[%c0_304, %c0_305] : memref<1x128xf32, #tpu.memory_space<vmem>>, vector<1x128xf32>
    %675 = vector.broadcast %674 : vector<1x128xf32> to vector<8x128xf32>
    %676 = arith.addf %673, %675 : vector<8x128xf32>
    %677 = arith.truncf %641 : vector<8x32xf32> to vector<8x32xbf16>
    %c0_306 = arith.constant 0 : index
    %c0_307 = arith.constant 0 : index
    %678 = vector.load %arg5[%c0_306, %c0_307] : memref<32x128xbf16, #tpu.memory_space<vmem>>, vector<32x128xbf16>
    %cst_308 = arith.constant dense<0.000000e+00> : vector<8x128xf32>
    %679 = tpu.matmul %677, %678, %cst_308 {dimension_numbers = #tpu.dot_dimension_numbers<[1], [0], [0], [1], [0, 0, 1, 1], [], []>} : vector<8x32xbf16>, vector<32x128xbf16>, vector<8x128xf32> -> vector<8x128xf32>
    %680 = arith.addf %676, %679 : vector<8x128xf32>
    %cst_309 = arith.constant 5.000000e-01 : f32
    %681 = vector.broadcast %cst_309 : f32 to vector<8x128xf32>
    %682 = arith.mulf %681, %680 : vector<8x128xf32>
    %683 = math.tanh %682 : vector<8x128xf32>
    %cst_310 = arith.constant 5.000000e-01 : f32
    %684 = vector.broadcast %cst_310 : f32 to vector<8x128xf32>
    %685 = arith.mulf %684, %683 : vector<8x128xf32>
    %cst_311 = arith.constant 5.000000e-01 : f32
    %686 = vector.broadcast %cst_311 : f32 to vector<8x128xf32>
    %687 = arith.addf %685, %686 : vector<8x128xf32>
    %688 = math.tanh %680 : vector<8x128xf32>
    %689 = vector.extract_strided_slice %687 {offsets = [0, 0], sizes = [8, 32], strides = [1, 1]} : vector<8x128xf32> to vector<8x32xf32>
    %690 = vector.extract_strided_slice %687 {offsets = [0, 32], sizes = [8, 32], strides = [1, 1]} : vector<8x128xf32> to vector<8x32xf32>
    %691 = vector.extract_strided_slice %688 {offsets = [0, 64], sizes = [8, 32], strides = [1, 1]} : vector<8x128xf32> to vector<8x32xf32>
    %692 = vector.extract_strided_slice %687 {offsets = [0, 96], sizes = [8, 32], strides = [1, 1]} : vector<8x128xf32> to vector<8x32xf32>
    %693 = arith.mulf %690, %639 : vector<8x32xf32>
    %694 = arith.mulf %689, %691 : vector<8x32xf32>
    %695 = arith.addf %693, %694 : vector<8x32xf32>
    %696 = math.tanh %695 : vector<8x32xf32>
    %697 = arith.mulf %692, %696 : vector<8x32xf32>
    %698 = arith.truncf %697 : vector<8x32xf32> to vector<8x32xbf16>
    %c0_312 = arith.constant 0 : index
    %c0_313 = arith.constant 0 : index
    %699 = vector.load %arg7[%c0_312, %c0_313] : memref<32x128xbf16, #tpu.memory_space<vmem>>, vector<32x128xbf16>
    %cst_314 = arith.constant dense<0.000000e+00> : vector<8x128xf32>
    %700 = tpu.matmul %698, %699, %cst_314 {dimension_numbers = #tpu.dot_dimension_numbers<[1], [0], [0], [1], [0, 0, 1, 1], [], []>} : vector<8x32xbf16>, vector<32x128xbf16>, vector<8x128xf32> -> vector<8x128xf32>
    %c0_315 = arith.constant 0 : index
    %c0_316 = arith.constant 0 : index
    %701 = vector.load %arg8[%c0_315, %c0_316] : memref<1x128xf32, #tpu.memory_space<vmem>>, vector<1x128xf32>
    %702 = vector.broadcast %701 : vector<1x128xf32> to vector<8x128xf32>
    %703 = arith.addf %700, %702 : vector<8x128xf32>
    %c88_317 = arith.constant 88 : index
    %c0_318 = arith.constant 0 : index
    %704 = vector.load %arg9[%c88_317, %c0_318] : memref<152x128xf32, #tpu.memory_space<vmem>>, vector<8x128xf32>
    tpu.vector_store %arg9[%c88_317, %c0_318], %703 {strides = array<i32>} : memref<152x128xf32, #tpu.memory_space<vmem>>, vector<8x128xf32>,
    %c104 = arith.constant 104 : index
    %c0_319 = arith.constant 0 : index
    %705 = vector.load %arg10[%c104, %c0_319] : memref<152x128xf32, #tpu.memory_space<vmem>>, vector<8x128xf32>
    %706 = arith.truncf %670 : vector<8x32xf32> to vector<8x32xbf16>
    %c0_320 = arith.constant 0 : index
    %c0_321 = arith.constant 0 : index
    %707 = vector.load %arg2[%c0_320, %c0_321] : memref<32x128xbf16, #tpu.memory_space<vmem>>, vector<32x128xbf16>
    %cst_322 = arith.constant dense<0.000000e+00> : vector<8x128xf32>
    %708 = tpu.matmul %706, %707, %cst_322 {dimension_numbers = #tpu.dot_dimension_numbers<[1], [0], [0], [1], [0, 0, 1, 1], [], []>} : vector<8x32xbf16>, vector<32x128xbf16>, vector<8x128xf32> -> vector<8x128xf32>
    %709 = arith.addf %705, %708 : vector<8x128xf32>
    %cst_323 = arith.constant 5.000000e-01 : f32
    %710 = vector.broadcast %cst_323 : f32 to vector<8x128xf32>
    %711 = arith.mulf %710, %709 : vector<8x128xf32>
    %712 = math.tanh %711 : vector<8x128xf32>
    %cst_324 = arith.constant 5.000000e-01 : f32
    %713 = vector.broadcast %cst_324 : f32 to vector<8x128xf32>
    %714 = arith.mulf %713, %712 : vector<8x128xf32>
    %cst_325 = arith.constant 5.000000e-01 : f32
    %715 = vector.broadcast %cst_325 : f32 to vector<8x128xf32>
    %716 = arith.addf %714, %715 : vector<8x128xf32>
    %717 = math.tanh %709 : vector<8x128xf32>
    %718 = vector.extract_strided_slice %716 {offsets = [0, 0], sizes = [8, 32], strides = [1, 1]} : vector<8x128xf32> to vector<8x32xf32>
    %719 = vector.extract_strided_slice %716 {offsets = [0, 32], sizes = [8, 32], strides = [1, 1]} : vector<8x128xf32> to vector<8x32xf32>
    %720 = vector.extract_strided_slice %717 {offsets = [0, 64], sizes = [8, 32], strides = [1, 1]} : vector<8x128xf32> to vector<8x32xf32>
    %721 = vector.extract_strided_slice %716 {offsets = [0, 96], sizes = [8, 32], strides = [1, 1]} : vector<8x128xf32> to vector<8x32xf32>
    %722 = arith.mulf %719, %668 : vector<8x32xf32>
    %723 = arith.mulf %718, %720 : vector<8x32xf32>
    %724 = arith.addf %722, %723 : vector<8x32xf32>
    %725 = math.tanh %724 : vector<8x32xf32>
    %726 = arith.mulf %721, %725 : vector<8x32xf32>
    %727 = arith.truncf %670 : vector<8x32xf32> to vector<8x32xbf16>
    %c0_326 = arith.constant 0 : index
    %c0_327 = arith.constant 0 : index
    %728 = vector.load %arg4[%c0_326, %c0_327] : memref<32x128xbf16, #tpu.memory_space<vmem>>, vector<32x128xbf16>
    %cst_328 = arith.constant dense<0.000000e+00> : vector<8x128xf32>
    %729 = tpu.matmul %727, %728, %cst_328 {dimension_numbers = #tpu.dot_dimension_numbers<[1], [0], [0], [1], [0, 0, 1, 1], [], []>} : vector<8x32xbf16>, vector<32x128xbf16>, vector<8x128xf32> -> vector<8x128xf32>
    %c0_329 = arith.constant 0 : index
    %c0_330 = arith.constant 0 : index
    %730 = vector.load %arg6[%c0_329, %c0_330] : memref<1x128xf32, #tpu.memory_space<vmem>>, vector<1x128xf32>
    %731 = vector.broadcast %730 : vector<1x128xf32> to vector<8x128xf32>
    %732 = arith.addf %729, %731 : vector<8x128xf32>
    %733 = arith.truncf %697 : vector<8x32xf32> to vector<8x32xbf16>
    %c0_331 = arith.constant 0 : index
    %c0_332 = arith.constant 0 : index
    %734 = vector.load %arg5[%c0_331, %c0_332] : memref<32x128xbf16, #tpu.memory_space<vmem>>, vector<32x128xbf16>
    %cst_333 = arith.constant dense<0.000000e+00> : vector<8x128xf32>
    %735 = tpu.matmul %733, %734, %cst_333 {dimension_numbers = #tpu.dot_dimension_numbers<[1], [0], [0], [1], [0, 0, 1, 1], [], []>} : vector<8x32xbf16>, vector<32x128xbf16>, vector<8x128xf32> -> vector<8x128xf32>
    %736 = arith.addf %732, %735 : vector<8x128xf32>
    %cst_334 = arith.constant 5.000000e-01 : f32
    %737 = vector.broadcast %cst_334 : f32 to vector<8x128xf32>
    %738 = arith.mulf %737, %736 : vector<8x128xf32>
    %739 = math.tanh %738 : vector<8x128xf32>
    %cst_335 = arith.constant 5.000000e-01 : f32
    %740 = vector.broadcast %cst_335 : f32 to vector<8x128xf32>
    %741 = arith.mulf %740, %739 : vector<8x128xf32>
    %cst_336 = arith.constant 5.000000e-01 : f32
    %742 = vector.broadcast %cst_336 : f32 to vector<8x128xf32>
    %743 = arith.addf %741, %742 : vector<8x128xf32>
    %744 = math.tanh %736 : vector<8x128xf32>
    %745 = vector.extract_strided_slice %743 {offsets = [0, 0], sizes = [8, 32], strides = [1, 1]} : vector<8x128xf32> to vector<8x32xf32>
    %746 = vector.extract_strided_slice %743 {offsets = [0, 32], sizes = [8, 32], strides = [1, 1]} : vector<8x128xf32> to vector<8x32xf32>
    %747 = vector.extract_strided_slice %744 {offsets = [0, 64], sizes = [8, 32], strides = [1, 1]} : vector<8x128xf32> to vector<8x32xf32>
    %748 = vector.extract_strided_slice %743 {offsets = [0, 96], sizes = [8, 32], strides = [1, 1]} : vector<8x128xf32> to vector<8x32xf32>
    %749 = arith.mulf %746, %695 : vector<8x32xf32>
    %750 = arith.mulf %745, %747 : vector<8x32xf32>
    %751 = arith.addf %749, %750 : vector<8x32xf32>
    %752 = math.tanh %751 : vector<8x32xf32>
    %753 = arith.mulf %748, %752 : vector<8x32xf32>
    %754 = arith.truncf %753 : vector<8x32xf32> to vector<8x32xbf16>
    %c0_337 = arith.constant 0 : index
    %c0_338 = arith.constant 0 : index
    %755 = vector.load %arg7[%c0_337, %c0_338] : memref<32x128xbf16, #tpu.memory_space<vmem>>, vector<32x128xbf16>
    %cst_339 = arith.constant dense<0.000000e+00> : vector<8x128xf32>
    %756 = tpu.matmul %754, %755, %cst_339 {dimension_numbers = #tpu.dot_dimension_numbers<[1], [0], [0], [1], [0, 0, 1, 1], [], []>} : vector<8x32xbf16>, vector<32x128xbf16>, vector<8x128xf32> -> vector<8x128xf32>
    %c0_340 = arith.constant 0 : index
    %c0_341 = arith.constant 0 : index
    %757 = vector.load %arg8[%c0_340, %c0_341] : memref<1x128xf32, #tpu.memory_space<vmem>>, vector<1x128xf32>
    %758 = vector.broadcast %757 : vector<1x128xf32> to vector<8x128xf32>
    %759 = arith.addf %756, %758 : vector<8x128xf32>
    %c96_342 = arith.constant 96 : index
    %c0_343 = arith.constant 0 : index
    %760 = vector.load %arg9[%c96_342, %c0_343] : memref<152x128xf32, #tpu.memory_space<vmem>>, vector<8x128xf32>
    tpu.vector_store %arg9[%c96_342, %c0_343], %759 {strides = array<i32>} : memref<152x128xf32, #tpu.memory_space<vmem>>, vector<8x128xf32>,
    %c112 = arith.constant 112 : index
    %c0_344 = arith.constant 0 : index
    %761 = vector.load %arg10[%c112, %c0_344] : memref<152x128xf32, #tpu.memory_space<vmem>>, vector<8x128xf32>
    %762 = arith.truncf %726 : vector<8x32xf32> to vector<8x32xbf16>
    %c0_345 = arith.constant 0 : index
    %c0_346 = arith.constant 0 : index
    %763 = vector.load %arg2[%c0_345, %c0_346] : memref<32x128xbf16, #tpu.memory_space<vmem>>, vector<32x128xbf16>
    %cst_347 = arith.constant dense<0.000000e+00> : vector<8x128xf32>
    %764 = tpu.matmul %762, %763, %cst_347 {dimension_numbers = #tpu.dot_dimension_numbers<[1], [0], [0], [1], [0, 0, 1, 1], [], []>} : vector<8x32xbf16>, vector<32x128xbf16>, vector<8x128xf32> -> vector<8x128xf32>
    %765 = arith.addf %761, %764 : vector<8x128xf32>
    %cst_348 = arith.constant 5.000000e-01 : f32
    %766 = vector.broadcast %cst_348 : f32 to vector<8x128xf32>
    %767 = arith.mulf %766, %765 : vector<8x128xf32>
    %768 = math.tanh %767 : vector<8x128xf32>
    %cst_349 = arith.constant 5.000000e-01 : f32
    %769 = vector.broadcast %cst_349 : f32 to vector<8x128xf32>
    %770 = arith.mulf %769, %768 : vector<8x128xf32>
    %cst_350 = arith.constant 5.000000e-01 : f32
    %771 = vector.broadcast %cst_350 : f32 to vector<8x128xf32>
    %772 = arith.addf %770, %771 : vector<8x128xf32>
    %773 = math.tanh %765 : vector<8x128xf32>
    %774 = vector.extract_strided_slice %772 {offsets = [0, 0], sizes = [8, 32], strides = [1, 1]} : vector<8x128xf32> to vector<8x32xf32>
    %775 = vector.extract_strided_slice %772 {offsets = [0, 32], sizes = [8, 32], strides = [1, 1]} : vector<8x128xf32> to vector<8x32xf32>
    %776 = vector.extract_strided_slice %773 {offsets = [0, 64], sizes = [8, 32], strides = [1, 1]} : vector<8x128xf32> to vector<8x32xf32>
    %777 = vector.extract_strided_slice %772 {offsets = [0, 96], sizes = [8, 32], strides = [1, 1]} : vector<8x128xf32> to vector<8x32xf32>
    %778 = arith.mulf %775, %724 : vector<8x32xf32>
    %779 = arith.mulf %774, %776 : vector<8x32xf32>
    %780 = arith.addf %778, %779 : vector<8x32xf32>
    %781 = math.tanh %780 : vector<8x32xf32>
    %782 = arith.mulf %777, %781 : vector<8x32xf32>
    %783 = arith.truncf %726 : vector<8x32xf32> to vector<8x32xbf16>
    %c0_351 = arith.constant 0 : index
    %c0_352 = arith.constant 0 : index
    %784 = vector.load %arg4[%c0_351, %c0_352] : memref<32x128xbf16, #tpu.memory_space<vmem>>, vector<32x128xbf16>
    %cst_353 = arith.constant dense<0.000000e+00> : vector<8x128xf32>
    %785 = tpu.matmul %783, %784, %cst_353 {dimension_numbers = #tpu.dot_dimension_numbers<[1], [0], [0], [1], [0, 0, 1, 1], [], []>} : vector<8x32xbf16>, vector<32x128xbf16>, vector<8x128xf32> -> vector<8x128xf32>
    %c0_354 = arith.constant 0 : index
    %c0_355 = arith.constant 0 : index
    %786 = vector.load %arg6[%c0_354, %c0_355] : memref<1x128xf32, #tpu.memory_space<vmem>>, vector<1x128xf32>
    %787 = vector.broadcast %786 : vector<1x128xf32> to vector<8x128xf32>
    %788 = arith.addf %785, %787 : vector<8x128xf32>
    %789 = arith.truncf %753 : vector<8x32xf32> to vector<8x32xbf16>
    %c0_356 = arith.constant 0 : index
    %c0_357 = arith.constant 0 : index
    %790 = vector.load %arg5[%c0_356, %c0_357] : memref<32x128xbf16, #tpu.memory_space<vmem>>, vector<32x128xbf16>
    %cst_358 = arith.constant dense<0.000000e+00> : vector<8x128xf32>
    %791 = tpu.matmul %789, %790, %cst_358 {dimension_numbers = #tpu.dot_dimension_numbers<[1], [0], [0], [1], [0, 0, 1, 1], [], []>} : vector<8x32xbf16>, vector<32x128xbf16>, vector<8x128xf32> -> vector<8x128xf32>
    %792 = arith.addf %788, %791 : vector<8x128xf32>
    %cst_359 = arith.constant 5.000000e-01 : f32
    %793 = vector.broadcast %cst_359 : f32 to vector<8x128xf32>
    %794 = arith.mulf %793, %792 : vector<8x128xf32>
    %795 = math.tanh %794 : vector<8x128xf32>
    %cst_360 = arith.constant 5.000000e-01 : f32
    %796 = vector.broadcast %cst_360 : f32 to vector<8x128xf32>
    %797 = arith.mulf %796, %795 : vector<8x128xf32>
    %cst_361 = arith.constant 5.000000e-01 : f32
    %798 = vector.broadcast %cst_361 : f32 to vector<8x128xf32>
    %799 = arith.addf %797, %798 : vector<8x128xf32>
    %800 = math.tanh %792 : vector<8x128xf32>
    %801 = vector.extract_strided_slice %799 {offsets = [0, 0], sizes = [8, 32], strides = [1, 1]} : vector<8x128xf32> to vector<8x32xf32>
    %802 = vector.extract_strided_slice %799 {offsets = [0, 32], sizes = [8, 32], strides = [1, 1]} : vector<8x128xf32> to vector<8x32xf32>
    %803 = vector.extract_strided_slice %800 {offsets = [0, 64], sizes = [8, 32], strides = [1, 1]} : vector<8x128xf32> to vector<8x32xf32>
    %804 = vector.extract_strided_slice %799 {offsets = [0, 96], sizes = [8, 32], strides = [1, 1]} : vector<8x128xf32> to vector<8x32xf32>
    %805 = arith.mulf %802, %751 : vector<8x32xf32>
    %806 = arith.mulf %801, %803 : vector<8x32xf32>
    %807 = arith.addf %805, %806 : vector<8x32xf32>
    %808 = math.tanh %807 : vector<8x32xf32>
    %809 = arith.mulf %804, %808 : vector<8x32xf32>
    %810 = arith.truncf %809 : vector<8x32xf32> to vector<8x32xbf16>
    %c0_362 = arith.constant 0 : index
    %c0_363 = arith.constant 0 : index
    %811 = vector.load %arg7[%c0_362, %c0_363] : memref<32x128xbf16, #tpu.memory_space<vmem>>, vector<32x128xbf16>
    %cst_364 = arith.constant dense<0.000000e+00> : vector<8x128xf32>
    %812 = tpu.matmul %810, %811, %cst_364 {dimension_numbers = #tpu.dot_dimension_numbers<[1], [0], [0], [1], [0, 0, 1, 1], [], []>} : vector<8x32xbf16>, vector<32x128xbf16>, vector<8x128xf32> -> vector<8x128xf32>
    %c0_365 = arith.constant 0 : index
    %c0_366 = arith.constant 0 : index
    %813 = vector.load %arg8[%c0_365, %c0_366] : memref<1x128xf32, #tpu.memory_space<vmem>>, vector<1x128xf32>
    %814 = vector.broadcast %813 : vector<1x128xf32> to vector<8x128xf32>
    %815 = arith.addf %812, %814 : vector<8x128xf32>
    %c104_367 = arith.constant 104 : index
    %c0_368 = arith.constant 0 : index
    %816 = vector.load %arg9[%c104_367, %c0_368] : memref<152x128xf32, #tpu.memory_space<vmem>>, vector<8x128xf32>
    tpu.vector_store %arg9[%c104_367, %c0_368], %815 {strides = array<i32>} : memref<152x128xf32, #tpu.memory_space<vmem>>, vector<8x128xf32>,
    %c120 = arith.constant 120 : index
    %c0_369 = arith.constant 0 : index
    %817 = vector.load %arg10[%c120, %c0_369] : memref<152x128xf32, #tpu.memory_space<vmem>>, vector<8x128xf32>
    %818 = arith.truncf %782 : vector<8x32xf32> to vector<8x32xbf16>
    %c0_370 = arith.constant 0 : index
    %c0_371 = arith.constant 0 : index
    %819 = vector.load %arg2[%c0_370, %c0_371] : memref<32x128xbf16, #tpu.memory_space<vmem>>, vector<32x128xbf16>
    %cst_372 = arith.constant dense<0.000000e+00> : vector<8x128xf32>
    %820 = tpu.matmul %818, %819, %cst_372 {dimension_numbers = #tpu.dot_dimension_numbers<[1], [0], [0], [1], [0, 0, 1, 1], [], []>} : vector<8x32xbf16>, vector<32x128xbf16>, vector<8x128xf32> -> vector<8x128xf32>
    %821 = arith.addf %817, %820 : vector<8x128xf32>
    %cst_373 = arith.constant 5.000000e-01 : f32
    %822 = vector.broadcast %cst_373 : f32 to vector<8x128xf32>
    %823 = arith.mulf %822, %821 : vector<8x128xf32>
    %824 = math.tanh %823 : vector<8x128xf32>
    %cst_374 = arith.constant 5.000000e-01 : f32
    %825 = vector.broadcast %cst_374 : f32 to vector<8x128xf32>
    %826 = arith.mulf %825, %824 : vector<8x128xf32>
    %cst_375 = arith.constant 5.000000e-01 : f32
    %827 = vector.broadcast %cst_375 : f32 to vector<8x128xf32>
    %828 = arith.addf %826, %827 : vector<8x128xf32>
    %829 = math.tanh %821 : vector<8x128xf32>
    %830 = vector.extract_strided_slice %828 {offsets = [0, 0], sizes = [8, 32], strides = [1, 1]} : vector<8x128xf32> to vector<8x32xf32>
    %831 = vector.extract_strided_slice %828 {offsets = [0, 32], sizes = [8, 32], strides = [1, 1]} : vector<8x128xf32> to vector<8x32xf32>
    %832 = vector.extract_strided_slice %829 {offsets = [0, 64], sizes = [8, 32], strides = [1, 1]} : vector<8x128xf32> to vector<8x32xf32>
    %833 = vector.extract_strided_slice %828 {offsets = [0, 96], sizes = [8, 32], strides = [1, 1]} : vector<8x128xf32> to vector<8x32xf32>
    %834 = arith.mulf %831, %780 : vector<8x32xf32>
    %835 = arith.mulf %830, %832 : vector<8x32xf32>
    %836 = arith.addf %834, %835 : vector<8x32xf32>
    %837 = math.tanh %836 : vector<8x32xf32>
    %838 = arith.mulf %833, %837 : vector<8x32xf32>
    %839 = arith.truncf %782 : vector<8x32xf32> to vector<8x32xbf16>
    %c0_376 = arith.constant 0 : index
    %c0_377 = arith.constant 0 : index
    %840 = vector.load %arg4[%c0_376, %c0_377] : memref<32x128xbf16, #tpu.memory_space<vmem>>, vector<32x128xbf16>
    %cst_378 = arith.constant dense<0.000000e+00> : vector<8x128xf32>
    %841 = tpu.matmul %839, %840, %cst_378 {dimension_numbers = #tpu.dot_dimension_numbers<[1], [0], [0], [1], [0, 0, 1, 1], [], []>} : vector<8x32xbf16>, vector<32x128xbf16>, vector<8x128xf32> -> vector<8x128xf32>
    %c0_379 = arith.constant 0 : index
    %c0_380 = arith.constant 0 : index
    %842 = vector.load %arg6[%c0_379, %c0_380] : memref<1x128xf32, #tpu.memory_space<vmem>>, vector<1x128xf32>
    %843 = vector.broadcast %842 : vector<1x128xf32> to vector<8x128xf32>
    %844 = arith.addf %841, %843 : vector<8x128xf32>
    %845 = arith.truncf %809 : vector<8x32xf32> to vector<8x32xbf16>
    %c0_381 = arith.constant 0 : index
    %c0_382 = arith.constant 0 : index
    %846 = vector.load %arg5[%c0_381, %c0_382] : memref<32x128xbf16, #tpu.memory_space<vmem>>, vector<32x128xbf16>
    %cst_383 = arith.constant dense<0.000000e+00> : vector<8x128xf32>
    %847 = tpu.matmul %845, %846, %cst_383 {dimension_numbers = #tpu.dot_dimension_numbers<[1], [0], [0], [1], [0, 0, 1, 1], [], []>} : vector<8x32xbf16>, vector<32x128xbf16>, vector<8x128xf32> -> vector<8x128xf32>
    %848 = arith.addf %844, %847 : vector<8x128xf32>
    %cst_384 = arith.constant 5.000000e-01 : f32
    %849 = vector.broadcast %cst_384 : f32 to vector<8x128xf32>
    %850 = arith.mulf %849, %848 : vector<8x128xf32>
    %851 = math.tanh %850 : vector<8x128xf32>
    %cst_385 = arith.constant 5.000000e-01 : f32
    %852 = vector.broadcast %cst_385 : f32 to vector<8x128xf32>
    %853 = arith.mulf %852, %851 : vector<8x128xf32>
    %cst_386 = arith.constant 5.000000e-01 : f32
    %854 = vector.broadcast %cst_386 : f32 to vector<8x128xf32>
    %855 = arith.addf %853, %854 : vector<8x128xf32>
    %856 = math.tanh %848 : vector<8x128xf32>
    %857 = vector.extract_strided_slice %855 {offsets = [0, 0], sizes = [8, 32], strides = [1, 1]} : vector<8x128xf32> to vector<8x32xf32>
    %858 = vector.extract_strided_slice %855 {offsets = [0, 32], sizes = [8, 32], strides = [1, 1]} : vector<8x128xf32> to vector<8x32xf32>
    %859 = vector.extract_strided_slice %856 {offsets = [0, 64], sizes = [8, 32], strides = [1, 1]} : vector<8x128xf32> to vector<8x32xf32>
    %860 = vector.extract_strided_slice %855 {offsets = [0, 96], sizes = [8, 32], strides = [1, 1]} : vector<8x128xf32> to vector<8x32xf32>
    %861 = arith.mulf %858, %807 : vector<8x32xf32>
    %862 = arith.mulf %857, %859 : vector<8x32xf32>
    %863 = arith.addf %861, %862 : vector<8x32xf32>
    %864 = math.tanh %863 : vector<8x32xf32>
    %865 = arith.mulf %860, %864 : vector<8x32xf32>
    %866 = arith.truncf %865 : vector<8x32xf32> to vector<8x32xbf16>
    %c0_387 = arith.constant 0 : index
    %c0_388 = arith.constant 0 : index
    %867 = vector.load %arg7[%c0_387, %c0_388] : memref<32x128xbf16, #tpu.memory_space<vmem>>, vector<32x128xbf16>
    %cst_389 = arith.constant dense<0.000000e+00> : vector<8x128xf32>
    %868 = tpu.matmul %866, %867, %cst_389 {dimension_numbers = #tpu.dot_dimension_numbers<[1], [0], [0], [1], [0, 0, 1, 1], [], []>} : vector<8x32xbf16>, vector<32x128xbf16>, vector<8x128xf32> -> vector<8x128xf32>
    %c0_390 = arith.constant 0 : index
    %c0_391 = arith.constant 0 : index
    %869 = vector.load %arg8[%c0_390, %c0_391] : memref<1x128xf32, #tpu.memory_space<vmem>>, vector<1x128xf32>
    %870 = vector.broadcast %869 : vector<1x128xf32> to vector<8x128xf32>
    %871 = arith.addf %868, %870 : vector<8x128xf32>
    %c112_392 = arith.constant 112 : index
    %c0_393 = arith.constant 0 : index
    %872 = vector.load %arg9[%c112_392, %c0_393] : memref<152x128xf32, #tpu.memory_space<vmem>>, vector<8x128xf32>
    tpu.vector_store %arg9[%c112_392, %c0_393], %871 {strides = array<i32>} : memref<152x128xf32, #tpu.memory_space<vmem>>, vector<8x128xf32>,
    %c128 = arith.constant 128 : index
    %c0_394 = arith.constant 0 : index
    %873 = vector.load %arg10[%c128, %c0_394] : memref<152x128xf32, #tpu.memory_space<vmem>>, vector<8x128xf32>
    %874 = arith.truncf %838 : vector<8x32xf32> to vector<8x32xbf16>
    %c0_395 = arith.constant 0 : index
    %c0_396 = arith.constant 0 : index
    %875 = vector.load %arg2[%c0_395, %c0_396] : memref<32x128xbf16, #tpu.memory_space<vmem>>, vector<32x128xbf16>
    %cst_397 = arith.constant dense<0.000000e+00> : vector<8x128xf32>
    %876 = tpu.matmul %874, %875, %cst_397 {dimension_numbers = #tpu.dot_dimension_numbers<[1], [0], [0], [1], [0, 0, 1, 1], [], []>} : vector<8x32xbf16>, vector<32x128xbf16>, vector<8x128xf32> -> vector<8x128xf32>
    %877 = arith.addf %873, %876 : vector<8x128xf32>
    %cst_398 = arith.constant 5.000000e-01 : f32
    %878 = vector.broadcast %cst_398 : f32 to vector<8x128xf32>
    %879 = arith.mulf %878, %877 : vector<8x128xf32>
    %880 = math.tanh %879 : vector<8x128xf32>
    %cst_399 = arith.constant 5.000000e-01 : f32
    %881 = vector.broadcast %cst_399 : f32 to vector<8x128xf32>
    %882 = arith.mulf %881, %880 : vector<8x128xf32>
    %cst_400 = arith.constant 5.000000e-01 : f32
    %883 = vector.broadcast %cst_400 : f32 to vector<8x128xf32>
    %884 = arith.addf %882, %883 : vector<8x128xf32>
    %885 = math.tanh %877 : vector<8x128xf32>
    %886 = vector.extract_strided_slice %884 {offsets = [0, 0], sizes = [8, 32], strides = [1, 1]} : vector<8x128xf32> to vector<8x32xf32>
    %887 = vector.extract_strided_slice %884 {offsets = [0, 32], sizes = [8, 32], strides = [1, 1]} : vector<8x128xf32> to vector<8x32xf32>
    %888 = vector.extract_strided_slice %885 {offsets = [0, 64], sizes = [8, 32], strides = [1, 1]} : vector<8x128xf32> to vector<8x32xf32>
    %889 = vector.extract_strided_slice %884 {offsets = [0, 96], sizes = [8, 32], strides = [1, 1]} : vector<8x128xf32> to vector<8x32xf32>
    %890 = arith.mulf %887, %836 : vector<8x32xf32>
    %891 = arith.mulf %886, %888 : vector<8x32xf32>
    %892 = arith.addf %890, %891 : vector<8x32xf32>
    %893 = math.tanh %892 : vector<8x32xf32>
    %894 = arith.mulf %889, %893 : vector<8x32xf32>
    %895 = arith.truncf %838 : vector<8x32xf32> to vector<8x32xbf16>
    %c0_401 = arith.constant 0 : index
    %c0_402 = arith.constant 0 : index
    %896 = vector.load %arg4[%c0_401, %c0_402] : memref<32x128xbf16, #tpu.memory_space<vmem>>, vector<32x128xbf16>
    %cst_403 = arith.constant dense<0.000000e+00> : vector<8x128xf32>
    %897 = tpu.matmul %895, %896, %cst_403 {dimension_numbers = #tpu.dot_dimension_numbers<[1], [0], [0], [1], [0, 0, 1, 1], [], []>} : vector<8x32xbf16>, vector<32x128xbf16>, vector<8x128xf32> -> vector<8x128xf32>
    %c0_404 = arith.constant 0 : index
    %c0_405 = arith.constant 0 : index
    %898 = vector.load %arg6[%c0_404, %c0_405] : memref<1x128xf32, #tpu.memory_space<vmem>>, vector<1x128xf32>
    %899 = vector.broadcast %898 : vector<1x128xf32> to vector<8x128xf32>
    %900 = arith.addf %897, %899 : vector<8x128xf32>
    %901 = arith.truncf %865 : vector<8x32xf32> to vector<8x32xbf16>
    %c0_406 = arith.constant 0 : index
    %c0_407 = arith.constant 0 : index
    %902 = vector.load %arg5[%c0_406, %c0_407] : memref<32x128xbf16, #tpu.memory_space<vmem>>, vector<32x128xbf16>
    %cst_408 = arith.constant dense<0.000000e+00> : vector<8x128xf32>
    %903 = tpu.matmul %901, %902, %cst_408 {dimension_numbers = #tpu.dot_dimension_numbers<[1], [0], [0], [1], [0, 0, 1, 1], [], []>} : vector<8x32xbf16>, vector<32x128xbf16>, vector<8x128xf32> -> vector<8x128xf32>
    %904 = arith.addf %900, %903 : vector<8x128xf32>
    %cst_409 = arith.constant 5.000000e-01 : f32
    %905 = vector.broadcast %cst_409 : f32 to vector<8x128xf32>
    %906 = arith.mulf %905, %904 : vector<8x128xf32>
    %907 = math.tanh %906 : vector<8x128xf32>
    %cst_410 = arith.constant 5.000000e-01 : f32
    %908 = vector.broadcast %cst_410 : f32 to vector<8x128xf32>
    %909 = arith.mulf %908, %907 : vector<8x128xf32>
    %cst_411 = arith.constant 5.000000e-01 : f32
    %910 = vector.broadcast %cst_411 : f32 to vector<8x128xf32>
    %911 = arith.addf %909, %910 : vector<8x128xf32>
    %912 = math.tanh %904 : vector<8x128xf32>
    %913 = vector.extract_strided_slice %911 {offsets = [0, 0], sizes = [8, 32], strides = [1, 1]} : vector<8x128xf32> to vector<8x32xf32>
    %914 = vector.extract_strided_slice %911 {offsets = [0, 32], sizes = [8, 32], strides = [1, 1]} : vector<8x128xf32> to vector<8x32xf32>
    %915 = vector.extract_strided_slice %912 {offsets = [0, 64], sizes = [8, 32], strides = [1, 1]} : vector<8x128xf32> to vector<8x32xf32>
    %916 = vector.extract_strided_slice %911 {offsets = [0, 96], sizes = [8, 32], strides = [1, 1]} : vector<8x128xf32> to vector<8x32xf32>
    %917 = arith.mulf %914, %863 : vector<8x32xf32>
    %918 = arith.mulf %913, %915 : vector<8x32xf32>
    %919 = arith.addf %917, %918 : vector<8x32xf32>
    %920 = math.tanh %919 : vector<8x32xf32>
    %921 = arith.mulf %916, %920 : vector<8x32xf32>
    %922 = arith.truncf %921 : vector<8x32xf32> to vector<8x32xbf16>
    %c0_412 = arith.constant 0 : index
    %c0_413 = arith.constant 0 : index
    %923 = vector.load %arg7[%c0_412, %c0_413] : memref<32x128xbf16, #tpu.memory_space<vmem>>, vector<32x128xbf16>
    %cst_414 = arith.constant dense<0.000000e+00> : vector<8x128xf32>
    %924 = tpu.matmul %922, %923, %cst_414 {dimension_numbers = #tpu.dot_dimension_numbers<[1], [0], [0], [1], [0, 0, 1, 1], [], []>} : vector<8x32xbf16>, vector<32x128xbf16>, vector<8x128xf32> -> vector<8x128xf32>
    %c0_415 = arith.constant 0 : index
    %c0_416 = arith.constant 0 : index
    %925 = vector.load %arg8[%c0_415, %c0_416] : memref<1x128xf32, #tpu.memory_space<vmem>>, vector<1x128xf32>
    %926 = vector.broadcast %925 : vector<1x128xf32> to vector<8x128xf32>
    %927 = arith.addf %924, %926 : vector<8x128xf32>
    %c120_417 = arith.constant 120 : index
    %c0_418 = arith.constant 0 : index
    %928 = vector.load %arg9[%c120_417, %c0_418] : memref<152x128xf32, #tpu.memory_space<vmem>>, vector<8x128xf32>
    tpu.vector_store %arg9[%c120_417, %c0_418], %927 {strides = array<i32>} : memref<152x128xf32, #tpu.memory_space<vmem>>, vector<8x128xf32>,
    %c136 = arith.constant 136 : index
    %c0_419 = arith.constant 0 : index
    %929 = vector.load %arg10[%c136, %c0_419] : memref<152x128xf32, #tpu.memory_space<vmem>>, vector<8x128xf32>
    %930 = arith.truncf %894 : vector<8x32xf32> to vector<8x32xbf16>
    %c0_420 = arith.constant 0 : index
    %c0_421 = arith.constant 0 : index
    %931 = vector.load %arg2[%c0_420, %c0_421] : memref<32x128xbf16, #tpu.memory_space<vmem>>, vector<32x128xbf16>
    %cst_422 = arith.constant dense<0.000000e+00> : vector<8x128xf32>
    %932 = tpu.matmul %930, %931, %cst_422 {dimension_numbers = #tpu.dot_dimension_numbers<[1], [0], [0], [1], [0, 0, 1, 1], [], []>} : vector<8x32xbf16>, vector<32x128xbf16>, vector<8x128xf32> -> vector<8x128xf32>
    %933 = arith.addf %929, %932 : vector<8x128xf32>
    %cst_423 = arith.constant 5.000000e-01 : f32
    %934 = vector.broadcast %cst_423 : f32 to vector<8x128xf32>
    %935 = arith.mulf %934, %933 : vector<8x128xf32>
    %936 = math.tanh %935 : vector<8x128xf32>
    %cst_424 = arith.constant 5.000000e-01 : f32
    %937 = vector.broadcast %cst_424 : f32 to vector<8x128xf32>
    %938 = arith.mulf %937, %936 : vector<8x128xf32>
    %cst_425 = arith.constant 5.000000e-01 : f32
    %939 = vector.broadcast %cst_425 : f32 to vector<8x128xf32>
    %940 = arith.addf %938, %939 : vector<8x128xf32>
    %941 = math.tanh %933 : vector<8x128xf32>
    %942 = vector.extract_strided_slice %940 {offsets = [0, 0], sizes = [8, 32], strides = [1, 1]} : vector<8x128xf32> to vector<8x32xf32>
    %943 = vector.extract_strided_slice %940 {offsets = [0, 32], sizes = [8, 32], strides = [1, 1]} : vector<8x128xf32> to vector<8x32xf32>
    %944 = vector.extract_strided_slice %941 {offsets = [0, 64], sizes = [8, 32], strides = [1, 1]} : vector<8x128xf32> to vector<8x32xf32>
    %945 = vector.extract_strided_slice %940 {offsets = [0, 96], sizes = [8, 32], strides = [1, 1]} : vector<8x128xf32> to vector<8x32xf32>
    %946 = arith.mulf %943, %892 : vector<8x32xf32>
    %947 = arith.mulf %942, %944 : vector<8x32xf32>
    %948 = arith.addf %946, %947 : vector<8x32xf32>
    %949 = math.tanh %948 : vector<8x32xf32>
    %950 = arith.mulf %945, %949 : vector<8x32xf32>
    %951 = arith.truncf %894 : vector<8x32xf32> to vector<8x32xbf16>
    %c0_426 = arith.constant 0 : index
    %c0_427 = arith.constant 0 : index
    %952 = vector.load %arg4[%c0_426, %c0_427] : memref<32x128xbf16, #tpu.memory_space<vmem>>, vector<32x128xbf16>
    %cst_428 = arith.constant dense<0.000000e+00> : vector<8x128xf32>
    %953 = tpu.matmul %951, %952, %cst_428 {dimension_numbers = #tpu.dot_dimension_numbers<[1], [0], [0], [1], [0, 0, 1, 1], [], []>} : vector<8x32xbf16>, vector<32x128xbf16>, vector<8x128xf32> -> vector<8x128xf32>
    %c0_429 = arith.constant 0 : index
    %c0_430 = arith.constant 0 : index
    %954 = vector.load %arg6[%c0_429, %c0_430] : memref<1x128xf32, #tpu.memory_space<vmem>>, vector<1x128xf32>
    %955 = vector.broadcast %954 : vector<1x128xf32> to vector<8x128xf32>
    %956 = arith.addf %953, %955 : vector<8x128xf32>
    %957 = arith.truncf %921 : vector<8x32xf32> to vector<8x32xbf16>
    %c0_431 = arith.constant 0 : index
    %c0_432 = arith.constant 0 : index
    %958 = vector.load %arg5[%c0_431, %c0_432] : memref<32x128xbf16, #tpu.memory_space<vmem>>, vector<32x128xbf16>
    %cst_433 = arith.constant dense<0.000000e+00> : vector<8x128xf32>
    %959 = tpu.matmul %957, %958, %cst_433 {dimension_numbers = #tpu.dot_dimension_numbers<[1], [0], [0], [1], [0, 0, 1, 1], [], []>} : vector<8x32xbf16>, vector<32x128xbf16>, vector<8x128xf32> -> vector<8x128xf32>
    %960 = arith.addf %956, %959 : vector<8x128xf32>
    %cst_434 = arith.constant 5.000000e-01 : f32
    %961 = vector.broadcast %cst_434 : f32 to vector<8x128xf32>
    %962 = arith.mulf %961, %960 : vector<8x128xf32>
    %963 = math.tanh %962 : vector<8x128xf32>
    %cst_435 = arith.constant 5.000000e-01 : f32
    %964 = vector.broadcast %cst_435 : f32 to vector<8x128xf32>
    %965 = arith.mulf %964, %963 : vector<8x128xf32>
    %cst_436 = arith.constant 5.000000e-01 : f32
    %966 = vector.broadcast %cst_436 : f32 to vector<8x128xf32>
    %967 = arith.addf %965, %966 : vector<8x128xf32>
    %968 = math.tanh %960 : vector<8x128xf32>
    %969 = vector.extract_strided_slice %967 {offsets = [0, 0], sizes = [8, 32], strides = [1, 1]} : vector<8x128xf32> to vector<8x32xf32>
    %970 = vector.extract_strided_slice %967 {offsets = [0, 32], sizes = [8, 32], strides = [1, 1]} : vector<8x128xf32> to vector<8x32xf32>
    %971 = vector.extract_strided_slice %968 {offsets = [0, 64], sizes = [8, 32], strides = [1, 1]} : vector<8x128xf32> to vector<8x32xf32>
    %972 = vector.extract_strided_slice %967 {offsets = [0, 96], sizes = [8, 32], strides = [1, 1]} : vector<8x128xf32> to vector<8x32xf32>
    %973 = arith.mulf %970, %919 : vector<8x32xf32>
    %974 = arith.mulf %969, %971 : vector<8x32xf32>
    %975 = arith.addf %973, %974 : vector<8x32xf32>
    %976 = math.tanh %975 : vector<8x32xf32>
    %977 = arith.mulf %972, %976 : vector<8x32xf32>
    %978 = arith.truncf %977 : vector<8x32xf32> to vector<8x32xbf16>
    %c0_437 = arith.constant 0 : index
    %c0_438 = arith.constant 0 : index
    %979 = vector.load %arg7[%c0_437, %c0_438] : memref<32x128xbf16, #tpu.memory_space<vmem>>, vector<32x128xbf16>
    %cst_439 = arith.constant dense<0.000000e+00> : vector<8x128xf32>
    %980 = tpu.matmul %978, %979, %cst_439 {dimension_numbers = #tpu.dot_dimension_numbers<[1], [0], [0], [1], [0, 0, 1, 1], [], []>} : vector<8x32xbf16>, vector<32x128xbf16>, vector<8x128xf32> -> vector<8x128xf32>
    %c0_440 = arith.constant 0 : index
    %c0_441 = arith.constant 0 : index
    %981 = vector.load %arg8[%c0_440, %c0_441] : memref<1x128xf32, #tpu.memory_space<vmem>>, vector<1x128xf32>
    %982 = vector.broadcast %981 : vector<1x128xf32> to vector<8x128xf32>
    %983 = arith.addf %980, %982 : vector<8x128xf32>
    %c128_442 = arith.constant 128 : index
    %c0_443 = arith.constant 0 : index
    %984 = vector.load %arg9[%c128_442, %c0_443] : memref<152x128xf32, #tpu.memory_space<vmem>>, vector<8x128xf32>
    tpu.vector_store %arg9[%c128_442, %c0_443], %983 {strides = array<i32>} : memref<152x128xf32, #tpu.memory_space<vmem>>, vector<8x128xf32>,
    %c144 = arith.constant 144 : index
    %c0_444 = arith.constant 0 : index
    %985 = vector.load %arg10[%c144, %c0_444] : memref<152x128xf32, #tpu.memory_space<vmem>>, vector<8x128xf32>
    %986 = arith.truncf %950 : vector<8x32xf32> to vector<8x32xbf16>
    %c0_445 = arith.constant 0 : index
    %c0_446 = arith.constant 0 : index
    %987 = vector.load %arg2[%c0_445, %c0_446] : memref<32x128xbf16, #tpu.memory_space<vmem>>, vector<32x128xbf16>
    %cst_447 = arith.constant dense<0.000000e+00> : vector<8x128xf32>
    %988 = tpu.matmul %986, %987, %cst_447 {dimension_numbers = #tpu.dot_dimension_numbers<[1], [0], [0], [1], [0, 0, 1, 1], [], []>} : vector<8x32xbf16>, vector<32x128xbf16>, vector<8x128xf32> -> vector<8x128xf32>
    %989 = arith.addf %985, %988 : vector<8x128xf32>
    %cst_448 = arith.constant 5.000000e-01 : f32
    %990 = vector.broadcast %cst_448 : f32 to vector<8x128xf32>
    %991 = arith.mulf %990, %989 : vector<8x128xf32>
    %992 = math.tanh %991 : vector<8x128xf32>
    %cst_449 = arith.constant 5.000000e-01 : f32
    %993 = vector.broadcast %cst_449 : f32 to vector<8x128xf32>
    %994 = arith.mulf %993, %992 : vector<8x128xf32>
    %cst_450 = arith.constant 5.000000e-01 : f32
    %995 = vector.broadcast %cst_450 : f32 to vector<8x128xf32>
    %996 = arith.addf %994, %995 : vector<8x128xf32>
    %997 = math.tanh %989 : vector<8x128xf32>
    %998 = vector.extract_strided_slice %996 {offsets = [0, 0], sizes = [8, 32], strides = [1, 1]} : vector<8x128xf32> to vector<8x32xf32>
    %999 = vector.extract_strided_slice %996 {offsets = [0, 32], sizes = [8, 32], strides = [1, 1]} : vector<8x128xf32> to vector<8x32xf32>
    %1000 = vector.extract_strided_slice %997 {offsets = [0, 64], sizes = [8, 32], strides = [1, 1]} : vector<8x128xf32> to vector<8x32xf32>
    %1001 = vector.extract_strided_slice %996 {offsets = [0, 96], sizes = [8, 32], strides = [1, 1]} : vector<8x128xf32> to vector<8x32xf32>
    %1002 = arith.mulf %999, %948 : vector<8x32xf32>
    %1003 = arith.mulf %998, %1000 : vector<8x32xf32>
    %1004 = arith.addf %1002, %1003 : vector<8x32xf32>
    %1005 = math.tanh %1004 : vector<8x32xf32>
    %1006 = arith.mulf %1001, %1005 : vector<8x32xf32>
    %1007 = arith.truncf %950 : vector<8x32xf32> to vector<8x32xbf16>
    %c0_451 = arith.constant 0 : index
    %c0_452 = arith.constant 0 : index
    %1008 = vector.load %arg4[%c0_451, %c0_452] : memref<32x128xbf16, #tpu.memory_space<vmem>>, vector<32x128xbf16>
    %cst_453 = arith.constant dense<0.000000e+00> : vector<8x128xf32>
    %1009 = tpu.matmul %1007, %1008, %cst_453 {dimension_numbers = #tpu.dot_dimension_numbers<[1], [0], [0], [1], [0, 0, 1, 1], [], []>} : vector<8x32xbf16>, vector<32x128xbf16>, vector<8x128xf32> -> vector<8x128xf32>
    %c0_454 = arith.constant 0 : index
    %c0_455 = arith.constant 0 : index
    %1010 = vector.load %arg6[%c0_454, %c0_455] : memref<1x128xf32, #tpu.memory_space<vmem>>, vector<1x128xf32>
    %1011 = vector.broadcast %1010 : vector<1x128xf32> to vector<8x128xf32>
    %1012 = arith.addf %1009, %1011 : vector<8x128xf32>
    %1013 = arith.truncf %977 : vector<8x32xf32> to vector<8x32xbf16>
    %c0_456 = arith.constant 0 : index
    %c0_457 = arith.constant 0 : index
    %1014 = vector.load %arg5[%c0_456, %c0_457] : memref<32x128xbf16, #tpu.memory_space<vmem>>, vector<32x128xbf16>
    %cst_458 = arith.constant dense<0.000000e+00> : vector<8x128xf32>
    %1015 = tpu.matmul %1013, %1014, %cst_458 {dimension_numbers = #tpu.dot_dimension_numbers<[1], [0], [0], [1], [0, 0, 1, 1], [], []>} : vector<8x32xbf16>, vector<32x128xbf16>, vector<8x128xf32> -> vector<8x128xf32>
    %1016 = arith.addf %1012, %1015 : vector<8x128xf32>
    %cst_459 = arith.constant 5.000000e-01 : f32
    %1017 = vector.broadcast %cst_459 : f32 to vector<8x128xf32>
    %1018 = arith.mulf %1017, %1016 : vector<8x128xf32>
    %1019 = math.tanh %1018 : vector<8x128xf32>
    %cst_460 = arith.constant 5.000000e-01 : f32
    %1020 = vector.broadcast %cst_460 : f32 to vector<8x128xf32>
    %1021 = arith.mulf %1020, %1019 : vector<8x128xf32>
    %cst_461 = arith.constant 5.000000e-01 : f32
    %1022 = vector.broadcast %cst_461 : f32 to vector<8x128xf32>
    %1023 = arith.addf %1021, %1022 : vector<8x128xf32>
    %1024 = math.tanh %1016 : vector<8x128xf32>
    %1025 = vector.extract_strided_slice %1023 {offsets = [0, 0], sizes = [8, 32], strides = [1, 1]} : vector<8x128xf32> to vector<8x32xf32>
    %1026 = vector.extract_strided_slice %1023 {offsets = [0, 32], sizes = [8, 32], strides = [1, 1]} : vector<8x128xf32> to vector<8x32xf32>
    %1027 = vector.extract_strided_slice %1024 {offsets = [0, 64], sizes = [8, 32], strides = [1, 1]} : vector<8x128xf32> to vector<8x32xf32>
    %1028 = vector.extract_strided_slice %1023 {offsets = [0, 96], sizes = [8, 32], strides = [1, 1]} : vector<8x128xf32> to vector<8x32xf32>
    %1029 = arith.mulf %1026, %975 : vector<8x32xf32>
    %1030 = arith.mulf %1025, %1027 : vector<8x32xf32>
    %1031 = arith.addf %1029, %1030 : vector<8x32xf32>
    %1032 = math.tanh %1031 : vector<8x32xf32>
    %1033 = arith.mulf %1028, %1032 : vector<8x32xf32>
    %1034 = arith.truncf %1033 : vector<8x32xf32> to vector<8x32xbf16>
    %c0_462 = arith.constant 0 : index
    %c0_463 = arith.constant 0 : index
    %1035 = vector.load %arg7[%c0_462, %c0_463] : memref<32x128xbf16, #tpu.memory_space<vmem>>, vector<32x128xbf16>
    %cst_464 = arith.constant dense<0.000000e+00> : vector<8x128xf32>
    %1036 = tpu.matmul %1034, %1035, %cst_464 {dimension_numbers = #tpu.dot_dimension_numbers<[1], [0], [0], [1], [0, 0, 1, 1], [], []>} : vector<8x32xbf16>, vector<32x128xbf16>, vector<8x128xf32> -> vector<8x128xf32>
    %c0_465 = arith.constant 0 : index
    %c0_466 = arith.constant 0 : index
    %1037 = vector.load %arg8[%c0_465, %c0_466] : memref<1x128xf32, #tpu.memory_space<vmem>>, vector<1x128xf32>
    %1038 = vector.broadcast %1037 : vector<1x128xf32> to vector<8x128xf32>
    %1039 = arith.addf %1036, %1038 : vector<8x128xf32>
    %c136_467 = arith.constant 136 : index
    %c0_468 = arith.constant 0 : index
    %1040 = vector.load %arg9[%c136_467, %c0_468] : memref<152x128xf32, #tpu.memory_space<vmem>>, vector<8x128xf32>
    tpu.vector_store %arg9[%c136_467, %c0_468], %1039 {strides = array<i32>} : memref<152x128xf32, #tpu.memory_space<vmem>>, vector<8x128xf32>,
    %1041 = arith.truncf %1006 : vector<8x32xf32> to vector<8x32xbf16>
    %c0_469 = arith.constant 0 : index
    %c0_470 = arith.constant 0 : index
    %1042 = vector.load %arg4[%c0_469, %c0_470] : memref<32x128xbf16, #tpu.memory_space<vmem>>, vector<32x128xbf16>
    %cst_471 = arith.constant dense<0.000000e+00> : vector<8x128xf32>
    %1043 = tpu.matmul %1041, %1042, %cst_471 {dimension_numbers = #tpu.dot_dimension_numbers<[1], [0], [0], [1], [0, 0, 1, 1], [], []>} : vector<8x32xbf16>, vector<32x128xbf16>, vector<8x128xf32> -> vector<8x128xf32>
    %c0_472 = arith.constant 0 : index
    %c0_473 = arith.constant 0 : index
    %1044 = vector.load %arg6[%c0_472, %c0_473] : memref<1x128xf32, #tpu.memory_space<vmem>>, vector<1x128xf32>
    %1045 = vector.broadcast %1044 : vector<1x128xf32> to vector<8x128xf32>
    %1046 = arith.addf %1043, %1045 : vector<8x128xf32>
    %1047 = arith.truncf %1033 : vector<8x32xf32> to vector<8x32xbf16>
    %c0_474 = arith.constant 0 : index
    %c0_475 = arith.constant 0 : index
    %1048 = vector.load %arg5[%c0_474, %c0_475] : memref<32x128xbf16, #tpu.memory_space<vmem>>, vector<32x128xbf16>
    %cst_476 = arith.constant dense<0.000000e+00> : vector<8x128xf32>
    %1049 = tpu.matmul %1047, %1048, %cst_476 {dimension_numbers = #tpu.dot_dimension_numbers<[1], [0], [0], [1], [0, 0, 1, 1], [], []>} : vector<8x32xbf16>, vector<32x128xbf16>, vector<8x128xf32> -> vector<8x128xf32>
    %1050 = arith.addf %1046, %1049 : vector<8x128xf32>
    %cst_477 = arith.constant 5.000000e-01 : f32
    %1051 = vector.broadcast %cst_477 : f32 to vector<8x128xf32>
    %1052 = arith.mulf %1051, %1050 : vector<8x128xf32>
    %1053 = math.tanh %1052 : vector<8x128xf32>
    %cst_478 = arith.constant 5.000000e-01 : f32
    %1054 = vector.broadcast %cst_478 : f32 to vector<8x128xf32>
    %1055 = arith.mulf %1054, %1053 : vector<8x128xf32>
    %cst_479 = arith.constant 5.000000e-01 : f32
    %1056 = vector.broadcast %cst_479 : f32 to vector<8x128xf32>
    %1057 = arith.addf %1055, %1056 : vector<8x128xf32>
    %1058 = math.tanh %1050 : vector<8x128xf32>
    %1059 = vector.extract_strided_slice %1057 {offsets = [0, 0], sizes = [8, 32], strides = [1, 1]} : vector<8x128xf32> to vector<8x32xf32>
    %1060 = vector.extract_strided_slice %1057 {offsets = [0, 32], sizes = [8, 32], strides = [1, 1]} : vector<8x128xf32> to vector<8x32xf32>
    %1061 = vector.extract_strided_slice %1058 {offsets = [0, 64], sizes = [8, 32], strides = [1, 1]} : vector<8x128xf32> to vector<8x32xf32>
    %1062 = vector.extract_strided_slice %1057 {offsets = [0, 96], sizes = [8, 32], strides = [1, 1]} : vector<8x128xf32> to vector<8x32xf32>
    %1063 = arith.mulf %1060, %1031 : vector<8x32xf32>
    %1064 = arith.mulf %1059, %1061 : vector<8x32xf32>
    %1065 = arith.addf %1063, %1064 : vector<8x32xf32>
    %1066 = math.tanh %1065 : vector<8x32xf32>
    %1067 = arith.mulf %1062, %1066 : vector<8x32xf32>
    %1068 = arith.truncf %1067 : vector<8x32xf32> to vector<8x32xbf16>
    %c0_480 = arith.constant 0 : index
    %c0_481 = arith.constant 0 : index
    %1069 = vector.load %arg7[%c0_480, %c0_481] : memref<32x128xbf16, #tpu.memory_space<vmem>>, vector<32x128xbf16>
    %cst_482 = arith.constant dense<0.000000e+00> : vector<8x128xf32>
    %1070 = tpu.matmul %1068, %1069, %cst_482 {dimension_numbers = #tpu.dot_dimension_numbers<[1], [0], [0], [1], [0, 0, 1, 1], [], []>} : vector<8x32xbf16>, vector<32x128xbf16>, vector<8x128xf32> -> vector<8x128xf32>
    %c0_483 = arith.constant 0 : index
    %c0_484 = arith.constant 0 : index
    %1071 = vector.load %arg8[%c0_483, %c0_484] : memref<1x128xf32, #tpu.memory_space<vmem>>, vector<1x128xf32>
    %1072 = vector.broadcast %1071 : vector<1x128xf32> to vector<8x128xf32>
    %1073 = arith.addf %1070, %1072 : vector<8x128xf32>
    %c144_485 = arith.constant 144 : index
    %c0_486 = arith.constant 0 : index
    %1074 = vector.load %arg9[%c144_485, %c0_486] : memref<152x128xf32, #tpu.memory_space<vmem>>, vector<8x128xf32>
    tpu.vector_store %arg9[%c144_485, %c0_486], %1073 {strides = array<i32>} : memref<152x128xf32, #tpu.memory_space<vmem>>, vector<8x128xf32>,
    return
  }
}

</mosaic_0001>

<bundles_post_ra>
// kernel: flow_lstm_forward.1
= control target key start
LH: loop header
LB: loop body
LE: loop exit
PB: predicated region body
PF: predicated region fallthrough
CT: control target
= control target key end

     0   :  { %v4962_v6 = vmov 0   ;;  %s4964_s12 = smov 32   ;;  %vm272_vm0 = vcmask 261120   ;;  %s6110_s1 = inlined_call_operand.vmem [shape: bf16[128,128], index: 1, kind: input, shape index: {}]   ;;  %s6111_s2 = inlined_call_operand.vmem [shape: bf16[32,128], index: 2, kind: input, shape index: {}]   ;;  %s6112_s3 = inlined_call_operand.vmem [shape: f32[1,128], index: 3, kind: input, shape index: {}]   ;;  %s6113_s0 = inlined_call_operand.vmem [shape: bf16[152,128], index: 0, kind: input, shape index: {}]   ;;  %s6114_s5 = inlined_call_operand.vmem [shape: bf16[32,128], index: 5, kind: input, shape index: {}]   ;;  %s6115_s4 = inlined_call_operand.vmem [shape: bf16[32,128], index: 4, kind: input, shape index: {}]   ;;  %s6116_s6 = inlined_call_operand.vmem [shape: f32[1,128], index: 6, kind: input, shape index: {}]   ;;  %s6117_s7 = inlined_call_operand.vmem [shape: bf16[32,128], index: 7, kind: input, shape index: {}]   ;;  %s6118_s8 = inlined_call_operand.vmem [shape: f32[1,128], index: 8, kind: input, shape index: {}]   ;;  %s6119_s9 = inlined_call_operand.vmem [shape: f32[152,128], index: 9, kind: output, shape index: {}]  }
   0x1   :  { %v4539_v0 = vld [vmem:[%s6110_s1 + $0x38] sm:$0xff]  ;;  %v4541_v1 = vld [vmem:[%s6111_s2 + $0x8] sm:$0xff]  ;;  %v4538_v2 = vld [vmem:[%s6110_s1 + $0x30] sm:$0xff] }
   0x2   :  { %178 = vmatpush.bf16.msra.mxu0 %v4539_v0  ;;  %282 = vmatpush.bf16.msra.mxu1 %v4541_v1  ;;  %v4540_v3 = vld [vmem:[%s6111_s2] sm:$0xff]  ;;  %v4537_v4 = vld [vmem:[%s6110_s1 + $0x28] sm:$0xff]  ;;  %v4535_v7 = vld [vmem:[%s6110_s1 + $0x18] sm:$0xff] }
   0x3   :  { %326 = vmatpush.bf16.msra.mxu2 %v4541_v1  ;;  %v4536_v5 = vld [vmem:[%s6110_s1 + $0x20] sm:$0xff]  ;;  %v4534_v8 = vld [vmem:[%s6110_s1 + $0x10] sm:$0xff]  ;;  %v4533_v9 = vld [vmem:[%s6110_s1 + $0x8] sm:$0xff] }
   0x4   :  { %v4532_v10 = vld [vmem:[%s6110_s1] sm:$0xff]  ;;  %s4963_s1 = smov 64   ;;  %v4545_v29 = vld [vmem:[%s6114_s5 + $0x8] sm:$0xff] }
   0x5   :  { %v4523_v11 = vld [vmem:[%s6113_s0] sm:$0xff]  ;;  %v4543_v30 = vld [vmem:[%s6115_s4 + $0x8] sm:$0xff] }
   0x6   :  { %179 = vmatpush.bf16.msra.mxu0 %v4538_v2  ;;  %283 = vmatpush.bf16.msra.mxu1 %v4540_v3  ;;  %v5051_v14 = vld [vmem:[%s6112_s3] ss:$0 sm:$0xff] }
   0x7   :  { %327 = vmatpush.bf16.msra.mxu2 %v4540_v3  ;;  %382 = vmatpush.bf16.msra.mxu3 %v4543_v30  ;;  %v4542_v31 = vld [vmem:[%s6115_s4] sm:$0xff] }
   0x8   :  { %v4544_v32 = vld [vmem:[%s6114_s5] sm:$0xff] }
   0x9   :  { %284 = vmatmul.bf16.vlgmr.msra.gmra.mxu1 %v4962_v6  ;;  %v4694_v39 = vld [vmem:[%s6116_s6] ss:$0 sm:$0xff] }
   0xa   :  { %180 = vmatpush.bf16.msra.mxu0 %v4537_v4  ;;  %411 = vmatpush.bf16.msrb.mxu1 %v4545_v29 }
   0xb   :  { %383 = vmatpush.bf16.msra.mxu3 %v4542_v31 }
   0xe   :  { %181 = vmatpush.bf16.msra.mxu0 %v4536_v5  ;;  %412 = vmatpush.bf16.msrb.mxu1 %v4544_v32 }
  0x12   :  { %182 = vmatpush.bf16.msra.mxu0 %v4535_v7 }
  0x16   :  { %183 = vmatpush.bf16.msra.mxu0 %v4534_v8 }
  0x19   :  { %413 = vmatmul.bf16.vlgmr.msrb.gmra.mxu1 %v4962_v6 }
  0x1a   :  { %184 = vmatpush.bf16.msra.mxu0 %v4533_v9 }
  0x1e   :  { %185 = vmatpush.bf16.msra.mxu0 %v4532_v10  ;;  %v4547_v10 = vld [vmem:[%s6117_s7 + $0x8] sm:$0xff] }
  0x1f   :  { %474 = vmatpush.bf16.msrb.mxu2 %v4547_v10  ;;  %v4554_v10 = vld [vmem:[%s6117_s7] sm:$0xff] }
  0x21   :  { %186 = vmatmul.bf16.vlgmr.msra.gmra.mxu0 %v4523_v11  ;;  %v4546_v11 = vld [vmem:[%s6117_s7] sm:$0xff] }
  0x23   :  { %475 = vmatpush.bf16.msrb.mxu2 %v4546_v11  ;;  %v4561_v11 = vld [vmem:[%s6114_s5 + $0x8] sm:$0xff] }
  0x86   :  { %v285_v12 = vpop.f32.mrf.mxu1 }
  0x8e   :  { %v287_v13 = vpop.f32.mrf.mxu1 }
  0x96   :  { %v414_v36 = vpop.f32.mrf.mxu1 }
  0x9e   :  { %v187_v15 = vpop.f32.mrf.mxu0  ;;  %v416_v37 = vpop.f32.mrf.mxu1 }
  0x9f   :  { %v188_v16 = vadd.f32 %v5051_v14, %v187_v15 }
  0xa1   :  { %v289_v17 = vadd.f32 %v285_v12, %v188_v16  ;;  %v4549_v16 = vld [vmem:[%s6111_s2 + $0x8] sm:$0xff] }
  0xa2   :  { %512 = vmatpush.bf16.msrb.mxu3 %v4549_v16 }
  0xa3   :  { %4732 = vtanh.f32 %v289_v17  ;;  %v290_v19 = vmul.f32 0.5, %v289_v17  ;;  %v4551_v17 = vld [vmem:[%s6115_s4 + $0x8] sm:$0xff] }
  0xa4   :  { %568 = vmatpush.bf16.msra.mxu1 %v4551_v17 }
  0xa5   :  { %4734 = vtanh.f32 %v290_v19  ;;  %v4548_v19 = vld [vmem:[%s6111_s2] sm:$0xff] }
  0xa6   :  { %v189_v44 = vpop.f32.mrf.mxu0  ;;  %513 = vmatpush.bf16.msrb.mxu3 %v4548_v19 }
  0xa7   :  { %v190_v45 = vadd.f32 %v5051_v14, %v189_v44 }
  0xa9   :  { %v4733_v18 = vpop.eup %4732 }
  0xaa   :  { %297 = vrot.lane.b32.xlu0 %v4733_v18, %s4963_s1  ;;  %v4553_v18 = vld [vmem:[%s6114_s5 + $0x8] sm:$0xff] }
  0xab   :  { %v4735_v20 = vpop.eup %4734 }
  0xac   :  { %v292_v21 = vmul.f32 0.5, %v4735_v20  ;;  %v4550_v20 = vld [vmem:[%s6115_s4] sm:$0xff] }
  0xad   :  { %569 = vmatpush.bf16.msra.mxu1 %v4550_v20 }
  0xae   :  { %v293_v22 = vadd.f32 0.5, %v292_v21  ;;  %v4552_v21 = vld [vmem:[%s6114_s5] sm:$0xff] }
  0xb0   :  { %v295_v25 = vmul.f32 0.0, %v293_v22 }
 0x11c   :  { %v298_v23 = vpop.permute.xlu0 %297 }
 0x11d   :  { %v300_v24 = vmul.f32 %v298_v23, %v293_v22 }
 0x11f   :  { %302 = vrot.lane.b32.xlu0 %v300_v24, %s4964_s12 }
 0x191   :  { %v303_v26 = vpop.permute.xlu0 %302 }
 0x192   :  { %v305_v27 = vadd.f32 %v303_v26, %v295_v25  ;;  %v4695_v25 = vld [vmem:[%s6118_s8] ss:$0 sm:$0xff] }
 0x194   :  { %4736 = vtanh.f32 %v305_v27 }
 0x19a   :  { %v4737_v28 = vpop.eup %4736 }
 0x19b   :  { %308 = vrot.lane.b32.xlu1 %v4737_v28, %s4963_s1 }
 0x20d   :  { %v309_v33 = vpop.permute.xlu1 %308 }
 0x20e   :  { %v311_v34 = vmul.f32 %v309_v33, %v293_v22  ;;  %v4524_v22 = vld [vmem:[%s6113_s0 + $0x8] sm:$0xff] }
 0x20f   :  { %191 = vmatmul.bf16.gmra.mxu0 %v4524_v22 }
 0x210   :  { %v313_v35 = vpack.c.bf16 %v311_v34, %v311_v34 }
 0x212   :  { %315 = vrot.lane.b32.xlu1 %v313_v35, %s4964_s12  ;;  %v4696_v35 = vld [vmem:[%s6116_s6] ss:$0 sm:$0xff] }
 0x284   :  { %v316_v38 = vpop.permute.xlu1 %315 }
 0x285   :  { %3857 = vmatmul.msk.bf16.vlgmr.msra.gmra.mxu2 %vm272_vm0, %v316_v38  ;;  %3866 = vmatmul.msk.bf16.vlgmr.msra.gmra.mxu3 %vm272_vm0, %v316_v38 }
 0x286   :  { %597 = vmatpush.bf16.msra.mxu2 %v4553_v18 }
 0x28a   :  { %598 = vmatpush.bf16.msra.mxu2 %v4552_v21 }
 0x28c   :  { %v192_v29 = vpop.f32.mrf.mxu0 }
 0x28d   :  { %v193_v30 = vadd.f32 %v5051_v14, %v192_v29 }
 0x294   :  { %v194_v16 = vpop.f32.mrf.mxu0 }
 0x295   :  { %v195_v17 = vadd.f32 %v5051_v14, %v194_v16 }
 0x308   :  { %v329_v40 = vpop.f32.mrf.mxu2  ;;  %v385_v41 = vpop.f32.mrf.mxu3 }
 0x309   :  { %v386_v42 = vadd.f32 %v4694_v39, %v385_v41  ;;  %v333_v48 = vadd.f32 %v329_v40, %v190_v45 }
 0x30b   :  { %v418_v43 = vadd.f32 %v414_v36, %v386_v42  ;;  %v334_v52 = vmul.f32 0.5, %v333_v48 }
 0x30d   :  { %4738 = vtanh.f32 %v418_v43  ;;  %v419_v51 = vmul.f32 0.5, %v418_v43 }
 0x30e   :  { %4740 = vtanh.f32 %v333_v48 }
 0x30f   :  { %4742 = vtanh.f32 %v419_v51 }
 0x310   :  { %v331_v46 = vpop.f32.mrf.mxu2  ;;  %v387_v47 = vpop.f32.mrf.mxu3  ;;  %4744 = vtanh.f32 %v334_v52 }
 0x313   :  { %v4739_v49 = vpop.eup %4738 }
 0x314   :  { %426 = vrot.lane.b32.xlu2 %v4739_v49, %s4963_s1  ;;  %v4741_v50 = vpop.eup %4740 }
 0x315   :  { %v4743_v53 = vpop.eup %4742 }
 0x316   :  { %v421_v54 = vmul.f32 0.5, %v4743_v53  ;;  %v4745_v56 = vpop.eup %4744 }
 0x317   :  { %v336_v59 = vmul.f32 0.5, %v4745_v56 }
 0x318   :  { %v422_v55 = vadd.f32 0.5, %v421_v54 }
 0x319   :  { %v337_v60 = vadd.f32 0.5, %v336_v59 }
 0x31a   :  { %v424_v63 = vmul.f32 0.0, %v422_v55 }
 0x31b   :  { %v339_v2 = vmul.f32 %v337_v60, %v305_v27 }
 0x31c   :  { %341 = vrot.lane.b32.xlu2 %v4741_v50, %s4963_s1 }
 0x36e   :  { %v427_v57 = vpop.permute.xlu2 %426 }
 0x36f   :  { %v429_v58 = vmul.f32 %v427_v57, %v422_v55 }
 0x371   :  { %431 = vrot.lane.b32.xlu0 %v429_v58, %s4964_s12 }
 0x376   :  { %v342_v61 = vpop.permute.xlu2 %341 }
 0x377   :  { %v344_v62 = vmul.f32 %v342_v61, %v337_v60 }
 0x379   :  { %346 = vrot.lane.b32.xlu1 %v344_v62, %s4964_s12 }
 0x3e3   :  { %v432_v0 = vpop.permute.xlu0 %431 }
 0x3e4   :  { %v5080_v1 = vadd.f32 %v432_v0, %v424_v63  ;;  %v4555_v63 = vld [vmem:[%s6117_s7 + $0x8] sm:$0xff] }
 0x3e5   :  { %v4557_v0 = vld [vmem:[%s6111_s2 + $0x8] sm:$0xff]  ;;  %660 = vmatpush.bf16.msra.mxu3 %v4555_v63 }
 0x3e6   :  { %4746 = vtanh.f32 %v5080_v1  ;;  %698 = vmatpush.bf16.msrb.mxu1 %v4557_v0 }
 0x3e9   :  { %661 = vmatpush.bf16.msra.mxu3 %v4554_v10 }
 0x3eb   :  { %v347_v3 = vpop.permute.xlu1 %346 }
 0x3ec   :  { %v4747_v4 = vpop.eup %4746  ;;  %v5083_v5 = vadd.f32 %v347_v3, %v339_v2  ;;  %v4556_v2 = vld [vmem:[%s6111_s2] sm:$0xff] }
 0x3ed   :  { %437 = vrot.lane.b32.xlu2 %v4747_v4, %s4963_s1  ;;  %v4558_v3 = vld [vmem:[%s6115_s4] sm:$0xff]  ;;  %699 = vmatpush.bf16.msrb.mxu1 %v4556_v2  ;;  %v4525_v2 = vld [vmem:[%s6113_s0 + $0x10] sm:$0xff] }
 0x3ee   :  { %4748 = vtanh.f32 %v5083_v5  ;;  %196 = vmatmul.bf16.gmra.mxu0 %v4525_v2 }
 0x3f4   :  { %v4749_v6 = vpop.eup %4748 }
 0x3f5   :  { %352 = vrot.lane.b32.xlu0 %v4749_v6, %s4963_s1 }
 0x447   :  { %v438_v7 = vpop.permute.xlu2 %437 }
 0x448   :  { %v440_v8 = vmul.f32 %v438_v7, %v422_v55 }
 0x44a   :  { %v441_v9 = vpack.c.bf16 %v440_v8, %v440_v8 }
 0x44c   :  { %451 = vrot.lane.b32.xlu1 %v441_v9, %s4964_s12 }
 0x467   :  { %v353_v12 = vpop.permute.xlu0 %352 }
 0x468   :  { %v355_v13 = vmul.f32 %v353_v12, %v337_v60  ;;  %v4560_v12 = vld [vmem:[%s6114_s5] sm:$0xff] }
 0x46a   :  { %v483_v15 = vpack.c.bf16 %v355_v13, %v355_v13 }
 0x46c   :  { %489 = vrot.lane.b32.xlu2 %v483_v15, %s4964_s12 }
 0x4be   :  { %v452_v23 = vpop.permute.xlu1 %451 }
 0x4bf   :  { %3883 = vmatmul.msk.bf16.vlgmr.msrb.gmra.mxu2 %vm272_vm0, %v452_v23 }
 0x4c6   :  { %v490_v24 = vpop.permute.xlu2 %489 }
 0x4c7   :  { %3892 = vmatmul.msk.bf16.vlgmr.msrb.gmra.mxu3 %vm272_vm0, %v490_v24  ;;  %3901 = vmatmul.msk.bf16.vlgmr.msra.gmra.mxu1 %vm272_vm0, %v490_v24 }
 0x4c8   :  { %783 = vmatpush.bf16.msrb.mxu3 %v4561_v11 }
 0x4cc   :  { %784 = vmatpush.bf16.msrb.mxu3 %v4560_v12 }
 0x4cf   :  { %3910 = vmatmul.msk.bf16.vlgmr.msra.gmra.mxu2 %vm272_vm0, %v452_v23  ;;  %v4698_v23 = vld [vmem:[%s6118_s8] ss:$0 sm:$0xff] }
 0x542   :  { %v477_v26 = vpop.f32.mrf.mxu2 }
 0x543   :  { %v478_v27 = vadd.f32 %v4695_v25, %v477_v26 }
 0x544   :  { %v571_v28 = vpop.f32.mrf.mxu1 }
 0x545   :  { %481 = vst [vmem:[%s6119_s9] sm:$0xff] %v478_v27  ;;  %v572_v36 = vadd.f32 %v4696_v35, %v571_v28  ;;  %v4697_v28 = vld [vmem:[%s6116_s6] ss:$0 sm:$0xff] }
 0x54a   :  { %v479_v31 = vpop.f32.mrf.mxu2  ;;  %v515_v32 = vpop.f32.mrf.mxu3 }
 0x54b   :  { %v519_v33 = vadd.f32 %v515_v32, %v193_v30 }
 0x54c   :  { %v573_v34 = vpop.f32.mrf.mxu1 }
 0x54d   :  { %4750 = vtanh.f32 %v519_v33  ;;  %v520_v43 = vmul.f32 0.5, %v519_v33 }
 0x552   :  { %v517_v37 = vpop.f32.mrf.mxu3  ;;  %v600_v38 = vpop.f32.mrf.mxu2 }
 0x553   :  { %v4751_v39 = vpop.eup %4750  ;;  %v604_v40 = vadd.f32 %v600_v38, %v572_v36 }
 0x554   :  { %527 = vrot.lane.b32.xlu1 %v4751_v39, %s4963_s1 }
 0x555   :  { %4752 = vtanh.f32 %v604_v40  ;;  %v605_v44 = vmul.f32 0.5, %v604_v40 }
 0x556   :  { %4754 = vtanh.f32 %v520_v43 }
 0x557   :  { %4756 = vtanh.f32 %v605_v44 }
 0x55a   :  { %v602_v41 = vpop.f32.mrf.mxu2 }
 0x55b   :  { %v4753_v42 = vpop.eup %4752 }
 0x55c   :  { %612 = vrot.lane.b32.xlu0 %v4753_v42, %s4963_s1  ;;  %v4755_v45 = vpop.eup %4754 }
 0x55d   :  { %v522_v46 = vmul.f32 0.5, %v4755_v45  ;;  %v4757_v48 = vpop.eup %4756 }
 0x55e   :  { %v607_v51 = vmul.f32 0.5, %v4757_v48 }
 0x55f   :  { %v523_v47 = vadd.f32 0.5, %v522_v46 }
 0x560   :  { %v608_v52 = vadd.f32 0.5, %v607_v51 }
 0x561   :  { %v525_v59 = vmul.f32 %v523_v47, %v5083_v5 }
 0x562   :  { %v610_v55 = vmul.f32 %v608_v52, %v5080_v1  ;;  %v4559_v1 = vld [vmem:[%s6115_s4 + $0x8] sm:$0xff] }
 0x563   :  { %754 = vmatpush.bf16.msrb.mxu2 %v4559_v1 }
 0x567   :  { %755 = vmatpush.bf16.msrb.mxu2 %v4558_v3  ;;  %v4569_v3 = vld [vmem:[%s6114_s5 + $0x8] sm:$0xff] }
 0x5c6   :  { %v528_v49 = vpop.permute.xlu1 %527 }
 0x5c7   :  { %v530_v50 = vmul.f32 %v528_v49, %v523_v47 }
 0x5c9   :  { %532 = vrot.lane.b32.xlu0 %v530_v50, %s4964_s12 }
 0x5ce   :  { %v613_v53 = vpop.permute.xlu0 %612 }
 0x5cf   :  { %v615_v54 = vmul.f32 %v613_v53, %v608_v52 }
 0x5d1   :  { %617 = vrot.lane.b32.xlu2 %v615_v54, %s4964_s12 }
 0x62b   :  { %v618_v56 = vpop.permute.xlu2 %617 }
 0x62c   :  { %v5136_v57 = vadd.f32 %v618_v56, %v610_v55 }
 0x62e   :  { %4758 = vtanh.f32 %v5136_v57 }
 0x634   :  { %v4759_v58 = vpop.eup %4758 }
 0x635   :  { %623 = vrot.lane.b32.xlu1 %v4759_v58, %s4963_s1  ;;  %v4563_v58 = vld [vmem:[%s6117_s7 + $0x8] sm:$0xff] }
 0x636   :  { %846 = vmatpush.bf16.msra.mxu1 %v4563_v58  ;;  %v4570_v58 = vld [vmem:[%s6117_s7] sm:$0xff] }
 0x63b   :  { %v533_v60 = vpop.permute.xlu0 %532 }
 0x63c   :  { %v5141_v61 = vadd.f32 %v533_v60, %v525_v59  ;;  %v4565_v59 = vld [vmem:[%s6111_s2 + $0x8] sm:$0xff]  ;;  %v4562_v60 = vld [vmem:[%s6117_s7] sm:$0xff] }
 0x63d   :  { %884 = vmatpush.bf16.msra.mxu2 %v4565_v59  ;;  %847 = vmatpush.bf16.msra.mxu1 %v4562_v60  ;;  %v4576_v60 = vld [vmem:[%s6114_s5] sm:$0xff] }
 0x63e   :  { %4760 = vtanh.f32 %v5141_v61 }
 0x644   :  { %v4761_v62 = vpop.eup %4760 }
 0x645   :  { %538 = vrot.lane.b32.xlu2 %v4761_v62, %s4963_s1  ;;  %v4566_v62 = vld [vmem:[%s6115_s4] sm:$0xff] }
 0x69f   :  { %v539_v4 = vpop.permute.xlu2 %538 }
 0x6a0   :  { %v541_v5 = vmul.f32 %v539_v4, %v523_v47  ;;  %v4568_v4 = vld [vmem:[%s6114_s5] sm:$0xff] }
 0x6a2   :  { %v669_v6 = vpack.c.bf16 %v541_v5, %v541_v5 }
 0x6a4   :  { %675 = vrot.lane.b32.xlu1 %v669_v6, %s4964_s12 }
 0x6a7   :  { %v624_v7 = vpop.permute.xlu1 %623 }
 0x6a8   :  { %v626_v8 = vmul.f32 %v624_v7, %v608_v52  ;;  %v197_v7 = vpop.f32.mrf.mxu0 }
 0x6aa   :  { %v627_v9 = vpack.c.bf16 %v626_v8, %v626_v8  ;;  %v198_v8 = vadd.f32 %v5051_v14, %v197_v7 }
 0x6ac   :  { %637 = vrot.lane.b32.xlu0 %v627_v9, %s4964_s12  ;;  %v4699_v9 = vld [vmem:[%s6118_s8] ss:$0 sm:$0xff] }
 0x716   :  { %v676_v13 = vpop.permute.xlu1 %675 }
 0x717   :  { %3928 = vmatmul.msk.bf16.vlgmr.msrb.gmra.mxu1 %vm272_vm0, %v676_v13  ;;  %3937 = vmatmul.msk.bf16.vlgmr.msrb.gmra.mxu2 %vm272_vm0, %v676_v13 }
 0x718   :  { %969 = vmatpush.bf16.msrb.mxu1 %v4569_v3 }
 0x71c   :  { %970 = vmatpush.bf16.msrb.mxu1 %v4568_v4 }
 0x71e   :  { %v638_v15 = vpop.permute.xlu0 %637 }
 0x71f   :  { %3919 = vmatmul.msk.bf16.vlgmr.msra.gmra.mxu3 %vm272_vm0, %v638_v15 }
 0x72f   :  { %3946 = vmatmul.msk.bf16.vlgmr.msrb.gmra.mxu3 %vm272_vm0, %v638_v15 }
 0x794   :  { %v701_v18 = vpop.f32.mrf.mxu1 }
 0x795   :  { %v705_v19 = vadd.f32 %v701_v18, %v195_v17 }
 0x797   :  { %4762 = vtanh.f32 %v705_v19  ;;  %v706_v34 = vmul.f32 0.5, %v705_v19 }
 0x79a   :  { %v757_v20 = vpop.f32.mrf.mxu2 }
 0x79b   :  { %v758_v29 = vadd.f32 %v4697_v28, %v757_v20  ;;  %v4700_v20 = vld [vmem:[%s6116_s6] ss:$0 sm:$0xff] }
 0x79c   :  { %v703_v21 = vpop.f32.mrf.mxu1 }
 0x79d   :  { %v4763_v22 = vpop.eup %4762 }
 0x79e   :  { %713 = vrot.lane.b32.xlu0 %v4763_v22, %s4963_s1 }
 0x7a2   :  { %v663_v24 = vpop.f32.mrf.mxu3  ;;  %v759_v25 = vpop.f32.mrf.mxu2 }
 0x7a3   :  { %v664_v26 = vadd.f32 %v4698_v23, %v663_v24 }
 0x7a5   :  { %667 = vst [vmem:[%s6119_s9 + $0x8] sm:$0xff] %v664_v26 }
 0x7aa   :  { %v665_v27 = vpop.f32.mrf.mxu3 }
 0x7b2   :  { %v786_v30 = vpop.f32.mrf.mxu3 }
 0x7b3   :  { %v790_v31 = vadd.f32 %v786_v30, %v758_v29 }
 0x7b5   :  { %4764 = vtanh.f32 %v790_v31  ;;  %v791_v35 = vmul.f32 0.5, %v790_v31 }
 0x7b6   :  { %4766 = vtanh.f32 %v706_v34 }
 0x7b7   :  { %4768 = vtanh.f32 %v791_v35 }
 0x7ba   :  { %v788_v32 = vpop.f32.mrf.mxu3 }
 0x7bb   :  { %v4765_v33 = vpop.eup %4764 }
 0x7bc   :  { %798 = vrot.lane.b32.xlu2 %v4765_v33, %s4963_s1  ;;  %v4767_v36 = vpop.eup %4766 }
 0x7bd   :  { %v708_v37 = vmul.f32 0.5, %v4767_v36  ;;  %v4769_v38 = vpop.eup %4768 }
 0x7be   :  { %v793_v41 = vmul.f32 0.5, %v4769_v38 }
 0x7bf   :  { %v709_v39 = vadd.f32 0.5, %v708_v37 }
 0x7c0   :  { %v794_v43 = vadd.f32 0.5, %v793_v41 }
 0x7c1   :  { %v711_v46 = vmul.f32 %v709_v39, %v5141_v61  ;;  %v4564_v61 = vld [vmem:[%s6111_s2] sm:$0xff] }
 0x7c2   :  { %v796_v50 = vmul.f32 %v794_v43, %v5136_v57  ;;  %v4567_v57 = vld [vmem:[%s6115_s4 + $0x8] sm:$0xff]  ;;  %885 = vmatpush.bf16.msra.mxu2 %v4564_v61 }
 0x7c3   :  { %940 = vmatpush.bf16.msra.mxu3 %v4567_v57  ;;  %v4577_v57 = vld [vmem:[%s6114_s5 + $0x8] sm:$0xff] }
 0x7c7   :  { %941 = vmatpush.bf16.msra.mxu3 %v4566_v62 }
 0x810   :  { %v714_v40 = vpop.permute.xlu0 %713 }
 0x811   :  { %v716_v42 = vmul.f32 %v714_v40, %v709_v39 }
 0x813   :  { %718 = vrot.lane.b32.xlu2 %v716_v42, %s4964_s12 }
 0x816   :  { %v799_v44 = vpop.permute.xlu2 %798 }
 0x817   :  { %v801_v45 = vmul.f32 %v799_v44, %v794_v43 }
 0x819   :  { %803 = vrot.lane.b32.xlu1 %v801_v45, %s4964_s12 }
 0x86d   :  { %v719_v47 = vpop.permute.xlu2 %718 }
 0x86e   :  { %v5190_v48 = vadd.f32 %v719_v47, %v711_v46  ;;  %v4573_v46 = vld [vmem:[%s6111_s2 + $0x8] sm:$0xff] }
 0x86f   :  { %v4575_v47 = vld [vmem:[%s6115_s4 + $0x8] sm:$0xff]  ;;  %1070 = vmatpush.bf16.msrb.mxu3 %v4573_v46 }
 0x870   :  { %4770 = vtanh.f32 %v5190_v48 }
 0x876   :  { %v4771_v49 = vpop.eup %4770 }
 0x877   :  { %724 = vrot.lane.b32.xlu1 %v4771_v49, %s4963_s1  ;;  %v4574_v49 = vld [vmem:[%s6115_s4] sm:$0xff] }
 0x88b   :  { %v804_v51 = vpop.permute.xlu1 %803 }
 0x88c   :  { %v5195_v52 = vadd.f32 %v804_v51, %v796_v50 }
 0x88e   :  { %4772 = vtanh.f32 %v5195_v52 }
 0x894   :  { %v4773_v53 = vpop.eup %4772 }
 0x895   :  { %809 = vrot.lane.b32.xlu0 %v4773_v53, %s4963_s1 }
 0x8e9   :  { %v725_v54 = vpop.permute.xlu1 %724 }
 0x8ea   :  { %v727_v55 = vmul.f32 %v725_v54, %v709_v39 }
 0x8ec   :  { %v855_v56 = vpack.c.bf16 %v727_v55, %v727_v55 }
 0x8ee   :  { %861 = vrot.lane.b32.xlu0 %v855_v56, %s4964_s12  ;;  %v4571_v56 = vld [vmem:[%s6117_s7 + $0x8] sm:$0xff] }
 0x8ef   :  { %1032 = vmatpush.bf16.msrb.mxu2 %v4571_v56 }
 0x8f3   :  { %1033 = vmatpush.bf16.msrb.mxu2 %v4570_v58 }
 0x907   :  { %v810_v63 = vpop.permute.xlu0 %809 }
 0x908   :  { %v812_v0 = vmul.f32 %v810_v63, %v794_v43  ;;  %v199_v63 = vpop.f32.mrf.mxu0 }
 0x90a   :  { %v813_v1 = vpack.c.bf16 %v812_v0, %v812_v0  ;;  %v200_v0 = vadd.f32 %v5051_v14, %v199_v63 }
 0x90c   :  { %823 = vrot.lane.b32.xlu2 %v813_v1, %s4964_s12 }
 0x960   :  { %v862_v5 = vpop.permute.xlu0 %861 }
 0x961   :  { %3964 = vmatmul.msk.bf16.vlgmr.msra.gmra.mxu2 %vm272_vm0, %v862_v5  ;;  %3973 = vmatmul.msk.bf16.vlgmr.msra.gmra.mxu3 %vm272_vm0, %v862_v5 }
 0x962   :  { %1155 = vmatpush.bf16.msra.mxu2 %v4577_v57 }
 0x966   :  { %v824_v6 = vpop.permute.xlu2 %823  ;;  %1156 = vmatpush.bf16.msra.mxu2 %v4576_v60 }
 0x967   :  { %3955 = vmatmul.msk.bf16.vlgmr.msra.gmra.mxu1 %vm272_vm0, %v824_v6 }
 0x968   :  { %1126 = vmatpush.bf16.msra.mxu1 %v4575_v47 }
 0x96c   :  { %1127 = vmatpush.bf16.msra.mxu1 %v4574_v49  ;;  %v4578_v49 = vld [vmem:[%s6117_s7] sm:$0xff] }
 0x977   :  { %3982 = vmatmul.msk.bf16.vlgmr.msrb.gmra.mxu1 %vm272_vm0, %v824_v6  ;;  %v4702_v6 = vld [vmem:[%s6118_s8] ss:$0 sm:$0xff] }
 0x9e4   :  { %v849_v10 = vpop.f32.mrf.mxu1  ;;  %v887_v11 = vpop.f32.mrf.mxu2 }
 0x9e5   :  { %v850_v12 = vadd.f32 %v4699_v9, %v849_v10  ;;  %v891_v13 = vadd.f32 %v887_v11, %v198_v8  ;;  %v943_v15 = vpop.f32.mrf.mxu3  ;;  %v4701_v10 = vld [vmem:[%s6116_s6] ss:$0 sm:$0xff] }
 0x9e6   :  { %v944_v21 = vadd.f32 %v4700_v20, %v943_v15 }
 0x9e7   :  { %853 = vst [vmem:[%s6119_s9 + $0x10] sm:$0xff] %v850_v12  ;;  %4774 = vtanh.f32 %v891_v13  ;;  %v892_v26 = vmul.f32 0.5, %v891_v13 }
 0x9ec   :  { %v851_v16 = vpop.f32.mrf.mxu1  ;;  %v889_v17 = vpop.f32.mrf.mxu2 }
 0x9ed   :  { %v4775_v18 = vpop.eup %4774  ;;  %v945_v19 = vpop.f32.mrf.mxu3 }
 0x9ee   :  { %899 = vrot.lane.b32.xlu2 %v4775_v18, %s4963_s1 }
 0x9f4   :  { %v972_v22 = vpop.f32.mrf.mxu1 }
 0x9f5   :  { %v976_v23 = vadd.f32 %v972_v22, %v944_v21 }
 0x9f7   :  { %4776 = vtanh.f32 %v976_v23  ;;  %v977_v32 = vmul.f32 0.5, %v976_v23 }
 0x9f8   :  { %4778 = vtanh.f32 %v892_v26 }
 0x9f9   :  { %4780 = vtanh.f32 %v977_v32 }
 0x9fc   :  { %v974_v24 = vpop.f32.mrf.mxu1 }
 0x9fd   :  { %v4777_v25 = vpop.eup %4776 }
 0x9fe   :  { %984 = vrot.lane.b32.xlu1 %v4777_v25, %s4963_s1  ;;  %v4779_v27 = vpop.eup %4778 }
 0x9ff   :  { %v894_v28 = vmul.f32 0.5, %v4779_v27  ;;  %v4781_v33 = vpop.eup %4780 }
 0xa00   :  { %v979_v34 = vmul.f32 0.5, %v4781_v33 }
 0xa01   :  { %v895_v29 = vadd.f32 0.5, %v894_v28 }
 0xa02   :  { %v980_v35 = vadd.f32 0.5, %v979_v34 }
 0xa03   :  { %v897_v38 = vmul.f32 %v895_v29, %v5190_v48  ;;  %v4572_v48 = vld [vmem:[%s6111_s2] sm:$0xff] }
 0xa04   :  { %v982_v42 = vmul.f32 %v980_v35, %v5195_v52  ;;  %1071 = vmatpush.bf16.msrb.mxu3 %v4572_v48  ;;  %v4579_v48 = vld [vmem:[%s6117_s7 + $0x8] sm:$0xff] }
 0xa08   :  { %1218 = vmatpush.bf16.msra.mxu3 %v4579_v48 }
 0xa0c   :  { %1219 = vmatpush.bf16.msra.mxu3 %v4578_v49 }
 0xa48   :  { %v900_v30 = vpop.permute.xlu2 %899 }
 0xa49   :  { %v902_v31 = vmul.f32 %v900_v30, %v895_v29 }
 0xa4b   :  { %904 = vrot.lane.b32.xlu1 %v902_v31, %s4964_s12 }
 0xa70   :  { %v985_v36 = vpop.permute.xlu1 %984 }
 0xa71   :  { %v987_v37 = vmul.f32 %v985_v36, %v980_v35 }
 0xa73   :  { %989 = vrot.lane.b32.xlu0 %v987_v37, %s4964_s12 }
 0xabd   :  { %v905_v39 = vpop.permute.xlu1 %904 }
 0xabe   :  { %v5247_v40 = vadd.f32 %v905_v39, %v897_v38 }
 0xac0   :  { %4782 = vtanh.f32 %v5247_v40 }
 0xac6   :  { %v4783_v41 = vpop.eup %4782 }
 0xac7   :  { %910 = vrot.lane.b32.xlu0 %v4783_v41, %s4963_s1  ;;  %v4583_v41 = vld [vmem:[%s6115_s4 + $0x8] sm:$0xff] }
 0xae5   :  { %v990_v43 = vpop.permute.xlu0 %989 }
 0xae6   :  { %v5252_v44 = vadd.f32 %v990_v43, %v982_v42  ;;  %v4526_v42 = vld [vmem:[%s6113_s0 + $0x18] sm:$0xff]  ;;  %v4580_v43 = vld [vmem:[%s6111_s2] sm:$0xff] }
 0xae7   :  { %201 = vmatmul.bf16.gmra.mxu0 %v4526_v42  ;;  %v4592_v42 = vld [vmem:[%s6114_s5] sm:$0xff] }
 0xae8   :  { %4784 = vtanh.f32 %v5252_v44 }
 0xaee   :  { %v4785_v45 = vpop.eup %4784 }
 0xaef   :  { %995 = vrot.lane.b32.xlu2 %v4785_v45, %s4963_s1 }
 0xb39   :  { %v911_v50 = vpop.permute.xlu0 %910 }
 0xb3a   :  { %v913_v51 = vmul.f32 %v911_v50, %v895_v29 }
 0xb3c   :  { %v1041_v52 = vpack.c.bf16 %v913_v51, %v913_v51  ;;  %v4585_v51 = vld [vmem:[%s6114_s5 + $0x8] sm:$0xff] }
 0xb3e   :  { %1047 = vrot.lane.b32.xlu2 %v1041_v52, %s4964_s12  ;;  %v4584_v52 = vld [vmem:[%s6114_s5] sm:$0xff] }
 0xb49   :  { %v996_v53 = vpop.permute.xlu2 %995 }
 0xb4a   :  { %v998_v54 = vmul.f32 %v996_v53, %v980_v35 }
 0xb4c   :  { %v999_v55 = vpack.c.bf16 %v998_v54, %v998_v54 }
 0xb4e   :  { %1009 = vrot.lane.b32.xlu1 %v999_v55, %s4964_s12 }
 0xb64   :  { %v202_v54 = vpop.f32.mrf.mxu0 }
 0xb65   :  { %v203_v55 = vadd.f32 %v5051_v14, %v202_v54 }
 0xb98   :  { %v1048_v59 = vpop.permute.xlu2 %1047 }
 0xb99   :  { %4000 = vmatmul.msk.bf16.vlgmr.msrb.gmra.mxu3 %vm272_vm0, %v1048_v59  ;;  %4009 = vmatmul.msk.bf16.vlgmr.msra.gmra.mxu1 %vm272_vm0, %v1048_v59 }
 0xb9a   :  { %1341 = vmatpush.bf16.msrb.mxu3 %v4585_v51 }
 0xb9e   :  { %1342 = vmatpush.bf16.msrb.mxu3 %v4584_v52 }
 0xbc0   :  { %v1010_v61 = vpop.permute.xlu1 %1009 }
 0xbc1   :  { %3991 = vmatmul.msk.bf16.vlgmr.msrb.gmra.mxu2 %vm272_vm0, %v1010_v61 }
 0xbc2   :  { %1312 = vmatpush.bf16.msrb.mxu2 %v4583_v41  ;;  %v4593_v41 = vld [vmem:[%s6114_s5 + $0x8] sm:$0xff] }
 0xbd1   :  { %4018 = vmatmul.msk.bf16.vlgmr.msra.gmra.mxu2 %vm272_vm0, %v1010_v61 }
 0xc16   :  { %v1129_v62 = vpop.f32.mrf.mxu1 }
 0xc17   :  { %v1130_v11 = vadd.f32 %v4701_v10, %v1129_v62  ;;  %v4704_v62 = vld [vmem:[%s6118_s8] ss:$0 sm:$0xff] }
 0xc1c   :  { %v1073_v1 = vpop.f32.mrf.mxu3 }
 0xc1d   :  { %v1077_v2 = vadd.f32 %v1073_v1, %v200_v0  ;;  %v4703_v1 = vld [vmem:[%s6116_s6] ss:$0 sm:$0xff] }
 0xc1e   :  { %v1131_v3 = vpop.f32.mrf.mxu1 }
 0xc1f   :  { %4786 = vtanh.f32 %v1077_v2  ;;  %v1078_v17 = vmul.f32 0.5, %v1077_v2 }
 0xc24   :  { %v1075_v4 = vpop.f32.mrf.mxu3 }
 0xc25   :  { %v4787_v5 = vpop.eup %4786 }
 0xc26   :  { %1085 = vrot.lane.b32.xlu1 %v4787_v5, %s4963_s1 }
 0xc44   :  { %v1035_v7 = vpop.f32.mrf.mxu2 }
 0xc45   :  { %v1036_v8 = vadd.f32 %v4702_v6, %v1035_v7 }
 0xc47   :  { %1039 = vst [vmem:[%s6119_s9 + $0x18] sm:$0xff] %v1036_v8 }
 0xc4c   :  { %v1037_v9 = vpop.f32.mrf.mxu2 }
 0xc54   :  { %v1158_v12 = vpop.f32.mrf.mxu2 }
 0xc55   :  { %v1162_v13 = vadd.f32 %v1158_v12, %v1130_v11 }
 0xc57   :  { %4788 = vtanh.f32 %v1162_v13  ;;  %v1163_v23 = vmul.f32 0.5, %v1162_v13 }
 0xc58   :  { %4790 = vtanh.f32 %v1078_v17 }
 0xc59   :  { %4792 = vtanh.f32 %v1163_v23 }
 0xc5c   :  { %v1160_v15 = vpop.f32.mrf.mxu2 }
 0xc5d   :  { %v4789_v16 = vpop.eup %4788 }
 0xc5e   :  { %1170 = vrot.lane.b32.xlu0 %v4789_v16, %s4963_s1  ;;  %v4791_v18 = vpop.eup %4790 }
 0xc5f   :  { %v1080_v19 = vmul.f32 0.5, %v4791_v18  ;;  %v4793_v24 = vpop.eup %4792 }
 0xc60   :  { %v1165_v25 = vmul.f32 0.5, %v4793_v24 }
 0xc61   :  { %v1081_v20 = vadd.f32 0.5, %v1080_v19 }
 0xc62   :  { %v1166_v26 = vadd.f32 0.5, %v1165_v25 }
 0xc63   :  { %v1083_v29 = vmul.f32 %v1081_v20, %v5247_v40  ;;  %v4581_v40 = vld [vmem:[%s6111_s2 + $0x8] sm:$0xff] }
 0xc64   :  { %v1168_v33 = vmul.f32 %v1166_v26, %v5252_v44  ;;  %1256 = vmatpush.bf16.msrb.mxu1 %v4581_v40  ;;  %v4582_v44 = vld [vmem:[%s6115_s4] sm:$0xff] }
 0xc65   :  { %1313 = vmatpush.bf16.msrb.mxu2 %v4582_v44  ;;  %v204_v44 = vpop.f32.mrf.mxu0 }
 0xc68   :  { %1257 = vmatpush.bf16.msrb.mxu1 %v4580_v43 }
 0xc98   :  { %v1086_v21 = vpop.permute.xlu1 %1085 }
 0xc99   :  { %v1088_v22 = vmul.f32 %v1086_v21, %v1081_v20 }
 0xc9b   :  { %1090 = vrot.lane.b32.xlu0 %v1088_v22, %s4964_s12 }
 0xcd0   :  { %v1171_v27 = vpop.permute.xlu0 %1170 }
 0xcd1   :  { %v1173_v28 = vmul.f32 %v1171_v27, %v1166_v26 }
 0xcd3   :  { %1175 = vrot.lane.b32.xlu2 %v1173_v28, %s4964_s12 }
 0xd0d   :  { %v1091_v30 = vpop.permute.xlu0 %1090 }
 0xd0e   :  { %v5301_v31 = vadd.f32 %v1091_v30, %v1083_v29 }
 0xd10   :  { %4794 = vtanh.f32 %v5301_v31 }
 0xd16   :  { %v4795_v32 = vpop.eup %4794 }
 0xd17   :  { %1096 = vrot.lane.b32.xlu2 %v4795_v32, %s4963_s1  ;;  %v4591_v32 = vld [vmem:[%s6115_s4 + $0x8] sm:$0xff] }
 0xd2d   :  { %v1176_v34 = vpop.permute.xlu2 %1175 }
 0xd2e   :  { %v5306_v35 = vadd.f32 %v1176_v34, %v1168_v33  ;;  %v4588_v33 = vld [vmem:[%s6111_s2] sm:$0xff] }
 0xd2f   :  { %v4590_v34 = vld [vmem:[%s6115_s4] sm:$0xff] }
 0xd30   :  { %4796 = vtanh.f32 %v5306_v35 }
 0xd36   :  { %v4797_v36 = vpop.eup %4796 }
 0xd37   :  { %1181 = vrot.lane.b32.xlu1 %v4797_v36, %s4963_s1 }
 0xd71   :  { %v1097_v37 = vpop.permute.xlu2 %1096 }
 0xd72   :  { %v1099_v38 = vmul.f32 %v1097_v37, %v1081_v20 }
 0xd74   :  { %v1227_v39 = vpack.c.bf16 %v1099_v38, %v1099_v38  ;;  %v4587_v38 = vld [vmem:[%s6117_s7 + $0x8] sm:$0xff] }
 0xd75   :  { %1404 = vmatpush.bf16.msra.mxu1 %v4587_v38 }
 0xd76   :  { %1233 = vrot.lane.b32.xlu1 %v1227_v39, %s4964_s12  ;;  %v4586_v39 = vld [vmem:[%s6117_s7] sm:$0xff] }
 0xd79   :  { %1405 = vmatpush.bf16.msra.mxu1 %v4586_v39 }
 0xda9   :  { %v1182_v45 = vpop.permute.xlu1 %1181 }
 0xdaa   :  { %v1184_v46 = vmul.f32 %v1182_v45, %v1166_v26  ;;  %v5400_v45 = vld [vmem:[%s6112_s3] ss:$0 sm:$0xff] }
 0xdac   :  { %v1185_v47 = vpack.c.bf16 %v1184_v46, %v1184_v46  ;;  %v205_v46 = vadd.f32 %v5400_v45, %v204_v44  ;;  %v4708_v44 = vld [vmem:[%s6118_s8] ss:$0 sm:$0xff] }
 0xdae   :  { %1195 = vrot.lane.b32.xlu0 %v1185_v47, %s4964_s12 }
 0xde8   :  { %v1234_v50 = vpop.permute.xlu1 %1233 }
 0xde9   :  { %4036 = vmatmul.msk.bf16.vlgmr.msrb.gmra.mxu1 %vm272_vm0, %v1234_v50  ;;  %4045 = vmatmul.msk.bf16.vlgmr.msrb.gmra.mxu2 %vm272_vm0, %v1234_v50 }
 0xdea   :  { %1527 = vmatpush.bf16.msrb.mxu1 %v4593_v41 }
 0xdee   :  { %1528 = vmatpush.bf16.msrb.mxu1 %v4592_v42 }
 0xe20   :  { %v1196_v53 = vpop.permute.xlu0 %1195 }
 0xe21   :  { %4027 = vmatmul.msk.bf16.vlgmr.msra.gmra.mxu3 %vm272_vm0, %v1196_v53 }
 0xe22   :  { %1498 = vmatpush.bf16.msra.mxu3 %v4591_v32 }
 0xe26   :  { %1499 = vmatpush.bf16.msra.mxu3 %v4590_v34  ;;  %v4600_v34 = vld [vmem:[%s6114_s5] sm:$0xff] }
 0xe31   :  { %4054 = vmatmul.msk.bf16.vlgmr.msrb.gmra.mxu3 %vm272_vm0, %v1196_v53  ;;  %v4706_v53 = vld [vmem:[%s6118_s8] ss:$0 sm:$0xff] }
 0xe66   :  { %v1259_v56 = vpop.f32.mrf.mxu1 }
 0xe67   :  { %v1263_v58 = vadd.f32 %v1259_v56, %v203_v55 }
 0xe69   :  { %4798 = vtanh.f32 %v1263_v58  ;;  %v1264_v7 = vmul.f32 0.5, %v1263_v58  ;;  %v4705_v58 = vld [vmem:[%s6116_s6] ss:$0 sm:$0xff] }
 0xe6c   :  { %v1315_v59 = vpop.f32.mrf.mxu2 }
 0xe6d   :  { %v1316_v2 = vadd.f32 %v4703_v1, %v1315_v59 }
 0xe6e   :  { %v1261_v57 = vpop.f32.mrf.mxu1 }
 0xe6f   :  { %v4799_v60 = vpop.eup %4798 }
 0xe70   :  { %1271 = vrot.lane.b32.xlu0 %v4799_v60, %s4963_s1 }
 0xe74   :  { %v1317_v61 = vpop.f32.mrf.mxu2 }
 0xea4   :  { %v1221_v63 = vpop.f32.mrf.mxu3 }
 0xea5   :  { %v1222_v0 = vadd.f32 %v4704_v62, %v1221_v63 }
 0xea7   :  { %1225 = vst [vmem:[%s6119_s9 + $0x20] sm:$0xff] %v1222_v0 }
 0xeac   :  { %v1223_v14 = vpop.f32.mrf.mxu3 }
 0xeb4   :  { %v1344_v3 = vpop.f32.mrf.mxu3 }
 0xeb5   :  { %v1348_v4 = vadd.f32 %v1344_v3, %v1316_v2 }
 0xeb7   :  { %4800 = vtanh.f32 %v1348_v4  ;;  %v1349_v13 = vmul.f32 0.5, %v1348_v4 }
 0xeb8   :  { %4802 = vtanh.f32 %v1264_v7 }
 0xeb9   :  { %4804 = vtanh.f32 %v1349_v13 }
 0xebc   :  { %v1346_v5 = vpop.f32.mrf.mxu3 }
 0xebd   :  { %v4801_v6 = vpop.eup %4800 }
 0xebe   :  { %1356 = vrot.lane.b32.xlu2 %v4801_v6, %s4963_s1  ;;  %v4803_v8 = vpop.eup %4802 }
 0xebf   :  { %v1266_v9 = vmul.f32 0.5, %v4803_v8  ;;  %v4805_v15 = vpop.eup %4804 }
 0xec0   :  { %v1351_v16 = vmul.f32 0.5, %v4805_v15 }
 0xec1   :  { %v1267_v10 = vadd.f32 0.5, %v1266_v9 }
 0xec2   :  { %v1352_v17 = vadd.f32 0.5, %v1351_v16 }
 0xec3   :  { %v1269_v20 = vmul.f32 %v1267_v10, %v5301_v31  ;;  %v4589_v31 = vld [vmem:[%s6111_s2 + $0x8] sm:$0xff] }
 0xec4   :  { %v1354_v24 = vmul.f32 %v1352_v17, %v5306_v35  ;;  %1442 = vmatpush.bf16.msra.mxu2 %v4589_v31 }
 0xec8   :  { %1443 = vmatpush.bf16.msra.mxu2 %v4588_v33  ;;  %v4601_v33 = vld [vmem:[%s6114_s5 + $0x8] sm:$0xff] }
 0xee2   :  { %v1272_v11 = vpop.permute.xlu0 %1271 }
 0xee3   :  { %v1274_v12 = vmul.f32 %v1272_v11, %v1267_v10 }
 0xee5   :  { %1276 = vrot.lane.b32.xlu2 %v1274_v12, %s4964_s12 }
 0xf18   :  { %v1357_v18 = vpop.permute.xlu2 %1356 }
 0xf19   :  { %v1359_v19 = vmul.f32 %v1357_v18, %v1352_v17 }
 0xf1b   :  { %1361 = vrot.lane.b32.xlu1 %v1359_v19, %s4964_s12 }
 0xf3f   :  { %v1277_v21 = vpop.permute.xlu2 %1276 }
 0xf40   :  { %v5358_v22 = vadd.f32 %v1277_v21, %v1269_v20 }
 0xf42   :  { %4806 = vtanh.f32 %v5358_v22 }
 0xf48   :  { %v4807_v23 = vpop.eup %4806 }
 0xf49   :  { %1282 = vrot.lane.b32.xlu1 %v4807_v23, %s4963_s1  ;;  %v4599_v23 = vld [vmem:[%s6115_s4 + $0x8] sm:$0xff] }
 0xf8d   :  { %v1362_v25 = vpop.permute.xlu1 %1361 }
 0xf8e   :  { %v5363_v26 = vadd.f32 %v1362_v25, %v1354_v24  ;;  %v4596_v24 = vld [vmem:[%s6111_s2] sm:$0xff] }
 0xf8f   :  { %v4598_v25 = vld [vmem:[%s6115_s4] sm:$0xff] }
 0xf90   :  { %4808 = vtanh.f32 %v5363_v26 }
 0xf96   :  { %v4809_v27 = vpop.eup %4808 }
 0xf97   :  { %1367 = vrot.lane.b32.xlu0 %v4809_v27, %s4963_s1  ;;  %v4527_v27 = vld [vmem:[%s6113_s0 + $0x20] sm:$0xff] }
 0xf98   :  { %206 = vmatmul.bf16.gmra.mxu0 %v4527_v27 }
 0xfbb   :  { %v1283_v28 = vpop.permute.xlu1 %1282 }
 0xfbc   :  { %v1285_v29 = vmul.f32 %v1283_v28, %v1267_v10  ;;  %v4595_v28 = vld [vmem:[%s6117_s7 + $0x8] sm:$0xff] }
 0xfbd   :  { %1590 = vmatpush.bf16.msrb.mxu2 %v4595_v28 }
 0xfbe   :  { %v1413_v30 = vpack.c.bf16 %v1285_v29, %v1285_v29 }
 0xfc0   :  { %1419 = vrot.lane.b32.xlu0 %v1413_v30, %s4964_s12  ;;  %v4594_v30 = vld [vmem:[%s6117_s7] sm:$0xff] }
 0xfc1   :  { %1591 = vmatpush.bf16.msrb.mxu2 %v4594_v30 }
0x1009   :  { %v1368_v35 = vpop.permute.xlu0 %1367 }
0x100a   :  { %v1370_v36 = vmul.f32 %v1368_v35, %v1352_v17 }
0x100c   :  { %v1371_v37 = vpack.c.bf16 %v1370_v36, %v1370_v36 }
0x100e   :  { %1381 = vrot.lane.b32.xlu2 %v1371_v37, %s4964_s12 }
0x1015   :  { %v207_v37 = vpop.f32.mrf.mxu0 }
0x1016   :  { %v208_v38 = vadd.f32 %v5400_v45, %v207_v37 }
0x101d   :  { %v209_v27 = vpop.f32.mrf.mxu0 }
0x101e   :  { %v210_v28 = vadd.f32 %v5400_v45, %v209_v27 }
0x1032   :  { %v1420_v40 = vpop.permute.xlu0 %1419 }
0x1033   :  { %4072 = vmatmul.msk.bf16.vlgmr.msra.gmra.mxu2 %vm272_vm0, %v1420_v40  ;;  %4081 = vmatmul.msk.bf16.vlgmr.msra.gmra.mxu3 %vm272_vm0, %v1420_v40 }
0x1034   :  { %1713 = vmatpush.bf16.msra.mxu2 %v4601_v33 }
0x1038   :  { %1714 = vmatpush.bf16.msra.mxu2 %v4600_v34 }
0x1068   :  { %v1382_v43 = vpop.permute.xlu2 %1381 }
0x1069   :  { %4063 = vmatmul.msk.bf16.vlgmr.msra.gmra.mxu1 %vm272_vm0, %v1382_v43 }
0x106a   :  { %1684 = vmatpush.bf16.msra.mxu1 %v4599_v23 }
0x106e   :  { %1685 = vmatpush.bf16.msra.mxu1 %v4598_v25  ;;  %v4608_v25 = vld [vmem:[%s6114_s5] sm:$0xff] }
0x1079   :  { %4090 = vmatmul.msk.bf16.vlgmr.msrb.gmra.mxu1 %vm272_vm0, %v1382_v43 }
0x10b6   :  { %v1445_v47 = vpop.f32.mrf.mxu2  ;;  %v1501_v48 = vpop.f32.mrf.mxu3 }
0x10b7   :  { %v1449_v49 = vadd.f32 %v1445_v47, %v205_v46  ;;  %v1502_v59 = vadd.f32 %v4705_v58, %v1501_v48 }
0x10b9   :  { %4810 = vtanh.f32 %v1449_v49  ;;  %v1450_v63 = vmul.f32 0.5, %v1449_v49  ;;  %v4707_v49 = vld [vmem:[%s6116_s6] ss:$0 sm:$0xff] }
0x10be   :  { %v1447_v50 = vpop.f32.mrf.mxu2  ;;  %v1503_v51 = vpop.f32.mrf.mxu3 }
0x10bf   :  { %v4811_v52 = vpop.eup %4810 }
0x10c0   :  { %1457 = vrot.lane.b32.xlu2 %v4811_v52, %s4963_s1 }
0x10e6   :  { %v1407_v54 = vpop.f32.mrf.mxu1 }
0x10e7   :  { %v1408_v55 = vadd.f32 %v4706_v53, %v1407_v54 }
0x10e9   :  { %1411 = vst [vmem:[%s6119_s9 + $0x28] sm:$0xff] %v1408_v55 }
0x10ee   :  { %v1409_v56 = vpop.f32.mrf.mxu1 }
0x10f6   :  { %v1530_v57 = vpop.f32.mrf.mxu1 }
0x10f7   :  { %v1534_v60 = vadd.f32 %v1530_v57, %v1502_v59 }
0x10f9   :  { %4812 = vtanh.f32 %v1534_v60  ;;  %v1535_v4 = vmul.f32 0.5, %v1534_v60 }
0x10fa   :  { %4814 = vtanh.f32 %v1450_v63 }
0x10fb   :  { %4816 = vtanh.f32 %v1535_v4 }
0x10fe   :  { %v1532_v61 = vpop.f32.mrf.mxu1 }
0x10ff   :  { %v4813_v62 = vpop.eup %4812 }
0x1100   :  { %1542 = vrot.lane.b32.xlu1 %v4813_v62, %s4963_s1  ;;  %v4815_v0 = vpop.eup %4814 }
0x1101   :  { %v1452_v14 = vmul.f32 0.5, %v4815_v0  ;;  %v4817_v5 = vpop.eup %4816 }
0x1102   :  { %v1537_v6 = vmul.f32 0.5, %v4817_v5 }
0x1103   :  { %v1453_v1 = vadd.f32 0.5, %v1452_v14 }
0x1104   :  { %v1538_v7 = vadd.f32 0.5, %v1537_v6 }
0x1105   :  { %v1455_v10 = vmul.f32 %v1453_v1, %v5358_v22  ;;  %v4597_v22 = vld [vmem:[%s6111_s2 + $0x8] sm:$0xff] }
0x1106   :  { %v1540_v15 = vmul.f32 %v1538_v7, %v5363_v26  ;;  %1628 = vmatpush.bf16.msrb.mxu3 %v4597_v22 }
0x110a   :  { %1629 = vmatpush.bf16.msrb.mxu3 %v4596_v24  ;;  %v4609_v24 = vld [vmem:[%s6114_s5 + $0x8] sm:$0xff] }
0x111a   :  { %v1458_v2 = vpop.permute.xlu2 %1457 }
0x111b   :  { %v1460_v3 = vmul.f32 %v1458_v2, %v1453_v1 }
0x111d   :  { %1462 = vrot.lane.b32.xlu1 %v1460_v3, %s4964_s12 }
0x1172   :  { %v1543_v8 = vpop.permute.xlu1 %1542 }
0x1173   :  { %v1545_v9 = vmul.f32 %v1543_v8, %v1538_v7 }
0x1175   :  { %1547 = vrot.lane.b32.xlu0 %v1545_v9, %s4964_s12 }
0x118f   :  { %v1463_v11 = vpop.permute.xlu1 %1462 }
0x1190   :  { %v5417_v12 = vadd.f32 %v1463_v11, %v1455_v10 }
0x1192   :  { %4818 = vtanh.f32 %v5417_v12 }
0x1198   :  { %v4819_v13 = vpop.eup %4818 }
0x1199   :  { %1468 = vrot.lane.b32.xlu0 %v4819_v13, %s4963_s1  ;;  %v4605_v13 = vld [vmem:[%s6111_s2 + $0x8] sm:$0xff] }
0x119a   :  { %1814 = vmatpush.bf16.msrb.mxu1 %v4605_v13 }
0x11e7   :  { %v1548_v16 = vpop.permute.xlu0 %1547 }
0x11e8   :  { %v5422_v17 = vadd.f32 %v1548_v16, %v1540_v15  ;;  %v4607_v15 = vld [vmem:[%s6115_s4 + $0x8] sm:$0xff]  ;;  %v4604_v16 = vld [vmem:[%s6111_s2] sm:$0xff] }
0x11e9   :  { %1815 = vmatpush.bf16.msrb.mxu1 %v4604_v16  ;;  %v4531_v16 = vld [vmem:[%s6113_s0 + $0x40] sm:$0xff] }
0x11ea   :  { %4820 = vtanh.f32 %v5422_v17 }
0x11f0   :  { %v4821_v18 = vpop.eup %4820 }
0x11f1   :  { %1553 = vrot.lane.b32.xlu2 %v4821_v18, %s4963_s1  ;;  %v4603_v18 = vld [vmem:[%s6117_s7 + $0x8] sm:$0xff] }
0x11f2   :  { %1776 = vmatpush.bf16.msra.mxu3 %v4603_v18 }
0x120b   :  { %v1469_v19 = vpop.permute.xlu0 %1468 }
0x120c   :  { %v1471_v20 = vmul.f32 %v1469_v19, %v1453_v1  ;;  %v4602_v19 = vld [vmem:[%s6117_s7] sm:$0xff] }
0x120d   :  { %1777 = vmatpush.bf16.msra.mxu3 %v4602_v19 }
0x120e   :  { %v1599_v21 = vpack.c.bf16 %v1471_v20, %v1471_v20 }
0x1210   :  { %1605 = vrot.lane.b32.xlu2 %v1599_v21, %s4964_s12 }
0x124b   :  { %v1554_v26 = vpop.permute.xlu2 %1553 }
0x124c   :  { %v1556_v29 = vmul.f32 %v1554_v26, %v1538_v7 }
0x124e   :  { %v1557_v31 = vpack.c.bf16 %v1556_v29, %v1556_v29 }
0x1250   :  { %1567 = vrot.lane.b32.xlu1 %v1557_v31, %s4964_s12 }
0x126a   :  { %v1606_v32 = vpop.permute.xlu2 %1605 }
0x126b   :  { %4108 = vmatmul.msk.bf16.vlgmr.msrb.gmra.mxu3 %vm272_vm0, %v1606_v32  ;;  %4117 = vmatmul.msk.bf16.vlgmr.msra.gmra.mxu1 %vm272_vm0, %v1606_v32 }
0x126c   :  { %1899 = vmatpush.bf16.msrb.mxu3 %v4609_v24 }
0x1270   :  { %1900 = vmatpush.bf16.msrb.mxu3 %v4608_v25 }
0x12c2   :  { %v1568_v35 = vpop.permute.xlu1 %1567 }
0x12c3   :  { %4099 = vmatmul.msk.bf16.vlgmr.msrb.gmra.mxu2 %vm272_vm0, %v1568_v35 }
0x12c4   :  { %1870 = vmatpush.bf16.msrb.mxu2 %v4607_v15 }
0x12d3   :  { %4126 = vmatmul.msk.bf16.vlgmr.msra.gmra.mxu2 %vm272_vm0, %v1568_v35 }
0x12e8   :  { %v1687_v36 = vpop.f32.mrf.mxu1 }
0x12e9   :  { %v1688_v50 = vadd.f32 %v4707_v49, %v1687_v36 }
0x12ee   :  { %v1631_v39 = vpop.f32.mrf.mxu3 }
0x12ef   :  { %v1635_v40 = vadd.f32 %v1631_v39, %v208_v38 }
0x12f0   :  { %v1689_v41 = vpop.f32.mrf.mxu1 }
0x12f1   :  { %4822 = vtanh.f32 %v1635_v40  ;;  %v1636_v53 = vmul.f32 0.5, %v1635_v40  ;;  %v4710_v41 = vld [vmem:[%s6118_s8] ss:$0 sm:$0xff] }
0x12f6   :  { %v1633_v42 = vpop.f32.mrf.mxu3 }
0x12f7   :  { %v4823_v43 = vpop.eup %4822 }
0x12f8   :  { %1643 = vrot.lane.b32.xlu1 %v4823_v43, %s4963_s1 }
0x1346   :  { %v1593_v46 = vpop.f32.mrf.mxu2 }
0x1347   :  { %v1594_v47 = vadd.f32 %v4708_v44, %v1593_v46  ;;  %v4709_v46 = vld [vmem:[%s6116_s6] ss:$0 sm:$0xff] }
0x1349   :  { %1597 = vst [vmem:[%s6119_s9 + $0x30] sm:$0xff] %v1594_v47 }
0x134e   :  { %v1595_v48 = vpop.f32.mrf.mxu2 }
0x1356   :  { %v1716_v51 = vpop.f32.mrf.mxu2 }
0x1357   :  { %v1720_v52 = vadd.f32 %v1716_v51, %v1688_v50 }
0x1359   :  { %4824 = vtanh.f32 %v1720_v52  ;;  %v1721_v61 = vmul.f32 0.5, %v1720_v52 }
0x135a   :  { %4826 = vtanh.f32 %v1636_v53 }
0x135b   :  { %4828 = vtanh.f32 %v1721_v61 }
0x135e   :  { %v1718_v54 = vpop.f32.mrf.mxu2 }
0x135f   :  { %v4825_v55 = vpop.eup %4824 }
0x1360   :  { %1728 = vrot.lane.b32.xlu0 %v4825_v55, %s4963_s1  ;;  %v4827_v56 = vpop.eup %4826 }
0x1361   :  { %v1638_v58 = vmul.f32 0.5, %v4827_v56  ;;  %v4829_v62 = vpop.eup %4828 }
0x1362   :  { %v1723_v63 = vmul.f32 0.5, %v4829_v62  ;;  %v4613_v62 = vld [vmem:[%s6111_s2 + $0x8] sm:$0xff] }
0x1363   :  { %v1639_v59 = vadd.f32 0.5, %v1638_v58  ;;  %2000 = vmatpush.bf16.msra.mxu1 %v4613_v62 }
0x1364   :  { %v1724_v0 = vadd.f32 0.5, %v1723_v63  ;;  %v4615_v63 = vld [vmem:[%s6115_s4 + $0x8] sm:$0xff] }
0x1365   :  { %v1641_v2 = vmul.f32 %v1639_v59, %v5417_v12 }
0x1366   :  { %v1726_v6 = vmul.f32 %v1724_v0, %v5422_v17  ;;  %v4606_v17 = vld [vmem:[%s6115_s4] sm:$0xff] }
0x1367   :  { %1871 = vmatpush.bf16.msrb.mxu2 %v4606_v17  ;;  %v51_v17 = vld [vmem:[%s6113_s0 + $0x48] sm:$0xf] }
0x1368   :  { %v109_v18 = vunpack.c.l.b16 %v51_v17 }
0x136a   :  { %v1644_v57 = vpop.permute.xlu1 %1643  ;;  %v119_v19 = vpack.c.b16 %v109_v18, %v109_v18  ;;  %v4625_v18 = vld [vmem:[%s6114_s5 + $0x8] sm:$0xff] }
0x136b   :  { %v1646_v60 = vmul.f32 %v1644_v57, %v1639_v59  ;;  %2056 = vmatpush.bf16.msra.mxu2 %v4615_v63 }
0x136d   :  { %1648 = vrot.lane.b32.xlu0 %v1646_v60, %s4964_s12 }
0x13d2   :  { %v1729_v14 = vpop.permute.xlu0 %1728 }
0x13d3   :  { %v1731_v1 = vmul.f32 %v1729_v14, %v1724_v0  ;;  %v4612_v14 = vld [vmem:[%s6111_s2] sm:$0xff] }
0x13d4   :  { %2001 = vmatpush.bf16.msra.mxu1 %v4612_v14 }
0x13d5   :  { %1733 = vrot.lane.b32.xlu2 %v1731_v1, %s4964_s12  ;;  %v4614_v1 = vld [vmem:[%s6115_s4] sm:$0xff] }
0x13d6   :  { %2057 = vmatpush.bf16.msra.mxu2 %v4614_v1 }
0x13df   :  { %v1649_v3 = vpop.permute.xlu0 %1648 }
0x13e0   :  { %v5474_v4 = vadd.f32 %v1649_v3, %v1641_v2 }
0x13e2   :  { %4830 = vtanh.f32 %v5474_v4 }
0x13e8   :  { %v4831_v5 = vpop.eup %4830 }
0x13e9   :  { %1654 = vrot.lane.b32.xlu2 %v4831_v5, %s4963_s1 }
0x142f   :  { %v1734_v7 = vpop.permute.xlu2 %1733 }
0x1430   :  { %v5479_v8 = vadd.f32 %v1734_v7, %v1726_v6 }
0x1432   :  { %4832 = vtanh.f32 %v5479_v8 }
0x1438   :  { %v4833_v9 = vpop.eup %4832 }
0x1439   :  { %1739 = vrot.lane.b32.xlu1 %v4833_v9, %s4963_s1 }
0x1443   :  { %v1655_v10 = vpop.permute.xlu2 %1654 }
0x1444   :  { %v1657_v11 = vmul.f32 %v1655_v10, %v1639_v59 }
0x1446   :  { %v1785_v12 = vpack.c.bf16 %v1657_v11, %v1657_v11  ;;  %v4530_v11 = vld [vmem:[%s6113_s0 + $0x38] sm:$0xff] }
0x1448   :  { %1791 = vrot.lane.b32.xlu1 %v1785_v12, %s4964_s12 }
0x14ab   :  { %v1740_v20 = vpop.permute.xlu1 %1739 }
0x14ac   :  { %v1742_v21 = vmul.f32 %v1740_v20, %v1724_v0  ;;  %v4528_v0 = vld [vmem:[%s6113_s0 + $0x28] sm:$0xff] }
0x14ad   :  { %211 = vmatmul.bf16.gmra.mxu0 %v4528_v0  ;;  %v4617_v20 = vld [vmem:[%s6114_s5 + $0x8] sm:$0xff] }
0x14ae   :  { %v1743_v22 = vpack.c.bf16 %v1742_v21, %v1742_v21  ;;  %v4616_v21 = vld [vmem:[%s6114_s5] sm:$0xff] }
0x14b0   :  { %1753 = vrot.lane.b32.xlu0 %v1743_v22, %s4964_s12  ;;  %v4611_v22 = vld [vmem:[%s6117_s7 + $0x8] sm:$0xff] }
0x14b1   :  { %1962 = vmatpush.bf16.msrb.mxu0 %v4611_v22 }
0x14ba   :  { %v1792_v23 = vpop.permute.xlu1 %1791 }
0x14bb   :  { %4144 = vmatmul.msk.bf16.vlgmr.msrb.gmra.mxu1 %vm272_vm0, %v1792_v23  ;;  %4153 = vmatmul.msk.bf16.vlgmr.msrb.gmra.mxu2 %vm272_vm0, %v1792_v23  ;;  %v4610_v23 = vld [vmem:[%s6117_s7] sm:$0xff] }
0x14bc   :  { %1963 = vmatpush.bf16.msrb.mxu0 %v4610_v23  ;;  %v4618_v23 = vld [vmem:[%s6117_s7] sm:$0xff] }
0x1522   :  { %v1754_v26 = vpop.permute.xlu0 %1753 }
0x1523   :  { %4135 = vmatmul.msk.bf16.vlgmr.msra.gmra.mxu3 %vm272_vm0, %v1754_v26 }
0x1524   :  { %2085 = vmatpush.bf16.msra.mxu3 %v4617_v20 }
0x1528   :  { %2086 = vmatpush.bf16.msra.mxu3 %v4616_v21 }
0x152a   :  { %v212_v24 = vpop.f32.mrf.mxu0 }
0x152b   :  { %v213_v25 = vadd.f32 %v5400_v45, %v212_v24 }
0x1533   :  { %4162 = vmatmul.msk.bf16.vlgmr.msrb.gmra.mxu3 %vm272_vm0, %v1754_v26 }
0x1534   :  { %2271 = vmatpush.bf16.msrb.mxu3 %v4625_v18 }
0x1538   :  { %v1817_v29 = vpop.f32.mrf.mxu1 }
0x1539   :  { %v1821_v30 = vadd.f32 %v1817_v29, %v210_v28 }
0x153b   :  { %4834 = vtanh.f32 %v1821_v30  ;;  %v1822_v35 = vmul.f32 0.5, %v1821_v30 }
0x153d   :  { %4836 = vtanh.f32 %v1822_v35 }
0x153e   :  { %v1873_v31 = vpop.f32.mrf.mxu2 }
0x153f   :  { %v1874_v47 = vadd.f32 %v4709_v46, %v1873_v31 }
0x1540   :  { %v1819_v32 = vpop.f32.mrf.mxu1 }
0x1541   :  { %v4835_v33 = vpop.eup %4834 }
0x1542   :  { %1829 = vrot.lane.b32.xlu2 %v4835_v33, %s4963_s1  ;;  %v5584_v33 = vpop.f32.mrf.mxu0 }
0x1543   :  { %v4837_v36 = vpop.eup %4836  ;;  %v215_v24 = vadd.f32 %v5400_v45, %v5584_v33 }
0x1544   :  { %v1824_v37 = vmul.f32 0.5, %v4837_v36 }
0x1546   :  { %v1875_v34 = vpop.f32.mrf.mxu2  ;;  %v1825_v38 = vadd.f32 0.5, %v1824_v37 }
0x1548   :  { %v1827_v52 = vmul.f32 %v1825_v38, %v5474_v4 }
0x159c   :  { %v1830_v39 = vpop.permute.xlu2 %1829 }
0x159d   :  { %v1832_v40 = vmul.f32 %v1830_v39, %v1825_v38 }
0x159f   :  { %1834 = vrot.lane.b32.xlu1 %v1832_v40, %s4964_s12 }
0x15a6   :  { %v1779_v42 = vpop.f32.mrf.mxu3 }
0x15a7   :  { %v1780_v43 = vadd.f32 %v4710_v41, %v1779_v42 }
0x15a9   :  { %1783 = vst [vmem:[%s6119_s9 + $0x38] sm:$0xff] %v1780_v43 }
0x15ae   :  { %v1781_v44 = vpop.f32.mrf.mxu3 }
0x15b6   :  { %v1902_v48 = vpop.f32.mrf.mxu3 }
0x15b7   :  { %v1906_v49 = vadd.f32 %v1902_v48, %v1874_v47 }
0x15b9   :  { %4838 = vtanh.f32 %v1906_v49  ;;  %v1907_v56 = vmul.f32 0.5, %v1906_v49  ;;  %v4712_v49 = vld [vmem:[%s6118_s8] ss:$0 sm:$0xff] }
0x15be   :  { %v1904_v50 = vpop.f32.mrf.mxu3 }
0x15bf   :  { %v4839_v51 = vpop.eup %4838 }
0x15c0   :  { %1914 = vrot.lane.b32.xlu0 %v4839_v51, %s4963_s1  ;;  %v4711_v51 = vld [vmem:[%s6116_s6] ss:$0 sm:$0xff] }
0x1611   :  { %v1835_v53 = vpop.permute.xlu1 %1834 }
0x1612   :  { %v5527_v54 = vadd.f32 %v1835_v53, %v1827_v52 }
0x1614   :  { %4840 = vtanh.f32 %v5527_v54 }
0x1615   :  { %4842 = vtanh.f32 %v1907_v56 }
0x161a   :  { %v4841_v55 = vpop.eup %4840 }
0x161b   :  { %1840 = vrot.lane.b32.xlu0 %v4841_v55, %s4963_s1  ;;  %v4843_v58 = vpop.eup %4842 }
0x161c   :  { %v1909_v59 = vmul.f32 0.5, %v4843_v58 }
0x161e   :  { %v1910_v57 = vadd.f32 0.5, %v1909_v59 }
0x1620   :  { %v1912_v4 = vmul.f32 %v1910_v57, %v5479_v8  ;;  %v4529_v8 = vld [vmem:[%s6113_s0 + $0x30] sm:$0xff] }
0x1621   :  { %216 = vmatmul.bf16.gmra.mxu0 %v4529_v8  ;;  %v4620_v8 = vld [vmem:[%s6111_s2] sm:$0xff] }
0x1631   :  { %221 = vmatmul.bf16.gmra.mxu0 %v4530_v11  ;;  %v4622_v11 = vld [vmem:[%s6115_s4] sm:$0xff] }
0x1632   :  { %v1915_v60 = vpop.permute.xlu0 %1914 }
0x1633   :  { %v1917_v61 = vmul.f32 %v1915_v60, %v1910_v57 }
0x1635   :  { %1919 = vrot.lane.b32.xlu2 %v1917_v61, %s4964_s12 }
0x1641   :  { %226 = vmatmul.bf16.gmra.mxu0 %v4531_v16 }
0x1651   :  { %231 = vmatmul.bf16.gmra.mxu0 %v119_v19  ;;  %v4624_v19 = vld [vmem:[%s6114_s5] sm:$0xff] }
0x1652   :  { %2272 = vmatpush.bf16.msrb.mxu3 %v4624_v19  ;;  %v4632_v19 = vld [vmem:[%s6114_s5] sm:$0xff] }
0x168d   :  { %v1841_v2 = vpop.permute.xlu0 %1840 }
0x168e   :  { %v1843_v3 = vmul.f32 %v1841_v2, %v1825_v38 }
0x168f   :  { %v1920_v5 = vpop.permute.xlu2 %1919 }
0x1690   :  { %v1971_v6 = vpack.c.bf16 %v1843_v3, %v1843_v3  ;;  %v5548_v7 = vadd.f32 %v1920_v5, %v1912_v4 }
0x1692   :  { %4844 = vtanh.f32 %v5548_v7  ;;  %1977 = vrot.lane.b32.xlu2 %v1971_v6, %s4964_s12 }
0x1698   :  { %v4845_v9 = vpop.eup %4844 }
0x1699   :  { %1925 = vrot.lane.b32.xlu1 %v4845_v9, %s4963_s1 }
0x169e   :  { %v5586_v34 = vpop.f32.mrf.mxu0 }
0x16a6   :  { %v5588_v35 = vpop.f32.mrf.mxu0 }
0x16ae   :  { %v5590_v36 = vpop.f32.mrf.mxu0 }
0x16b6   :  { %v5592_v37 = vpop.f32.mrf.mxu0 }
0x16be   :  { %v5594_v38 = vpop.f32.mrf.mxu0 }
0x16c6   :  { %v5596_v39 = vpop.f32.mrf.mxu0 }
0x16ce   :  { %v5598_v40 = vpop.f32.mrf.mxu0 }
0x16d6   :  { %v234_v42 = vpop.f32.mrf.mxu0 }
0x16ec   :  { %v1978_v10 = vpop.permute.xlu2 %1977 }
0x16ed   :  { %4180 = vmatmul.msk.bf16.vlgmr.msra.gmra.mxu1 %vm272_vm0, %v1978_v10  ;;  %4189 = vmatmul.msk.bf16.vlgmr.msra.gmra.mxu2 %vm272_vm0, %v1978_v10  ;;  %v4623_v10 = vld [vmem:[%s6115_s4 + $0x8] sm:$0xff] }
0x16ee   :  { %2242 = vmatpush.bf16.msrb.mxu2 %v4623_v10 }
0x16f2   :  { %2243 = vmatpush.bf16.msrb.mxu2 %v4622_v11 }
0x170b   :  { %v1926_v12 = vpop.permute.xlu1 %1925 }
0x170c   :  { %v1928_v13 = vmul.f32 %v1926_v12, %v1910_v57 }
0x170e   :  { %v1929_v15 = vpack.c.bf16 %v1928_v13, %v1928_v13 }
0x1710   :  { %1939 = vrot.lane.b32.xlu0 %v1929_v15, %s4964_s12 }
0x176a   :  { %v2003_v26 = vpop.f32.mrf.mxu1 }
0x176b   :  { %v2007_v27 = vadd.f32 %v2003_v26, %v213_v25 }
0x176d   :  { %4846 = vtanh.f32 %v2007_v27  ;;  %v2008_v41 = vmul.f32 0.5, %v2007_v27 }
0x176f   :  { %4848 = vtanh.f32 %v2008_v41 }
0x1770   :  { %v2059_v28 = vpop.f32.mrf.mxu2 }
0x1771   :  { %v2060_v53 = vadd.f32 %v4711_v51, %v2059_v28 }
0x1772   :  { %v2005_v29 = vpop.f32.mrf.mxu1 }
0x1773   :  { %v4847_v30 = vpop.eup %4846 }
0x1774   :  { %2015 = vrot.lane.b32.xlu1 %v4847_v30, %s4963_s1 }
0x1775   :  { %v4849_v43 = vpop.eup %4848 }
0x1776   :  { %v2010_v44 = vmul.f32 0.5, %v4849_v43 }
0x1778   :  { %v2061_v31 = vpop.f32.mrf.mxu2  ;;  %v2011_v46 = vadd.f32 0.5, %v2010_v44 }
0x177a   :  { %v2013_v61 = vmul.f32 %v2011_v46, %v5527_v54  ;;  %v4621_v54 = vld [vmem:[%s6111_s2 + $0x8] sm:$0xff] }
0x177b   :  { %2186 = vmatpush.bf16.msrb.mxu1 %v4621_v54  ;;  %v4630_v54 = vld [vmem:[%s6115_s4] sm:$0xff] }
0x177f   :  { %2187 = vmatpush.bf16.msrb.mxu1 %v4620_v8 }
0x1782   :  { %v1940_v32 = vpop.permute.xlu0 %1939 }
0x1783   :  { %4171 = vmatmul.msk.bf16.vlgmr.msrb.gmra.mxu0 %vm272_vm0, %v1940_v32  ;;  %4198 = vmatmul.msk.bf16.vlgmr.msra.gmra.mxu3 %vm272_vm0, %v1940_v32 }
0x17e6   :  { %v2016_v47 = vpop.permute.xlu1 %2015 }
0x17e7   :  { %v2018_v48 = vmul.f32 %v2016_v47, %v2011_v46 }
0x17e9   :  { %2020 = vrot.lane.b32.xlu0 %v2018_v48, %s4964_s12  ;;  %v4713_v48 = vld [vmem:[%s6116_s6] ss:$0 sm:$0xff] }
0x1800   :  { %v1965_v50 = vpop.f32.mrf.mxu0 }
0x1801   :  { %v1966_v52 = vadd.f32 %v4712_v49, %v1965_v50 }
0x1803   :  { %1969 = vst [vmem:[%s6119_s9 + $0x40] sm:$0xff] %v1966_v52 }
0x1806   :  { %v2088_v55 = vpop.f32.mrf.mxu3 }
0x1807   :  { %v2092_v56 = vadd.f32 %v2088_v55, %v2060_v53 }
0x1808   :  { %v1967_v58 = vpop.f32.mrf.mxu0 }
0x1809   :  { %4850 = vtanh.f32 %v2092_v56  ;;  %v2093_v60 = vmul.f32 0.5, %v2092_v56 }
0x180b   :  { %4852 = vtanh.f32 %v2093_v60 }
0x180e   :  { %v2090_v59 = vpop.f32.mrf.mxu3 }
0x180f   :  { %v4851_v57 = vpop.eup %4850 }
0x1810   :  { %2100 = vrot.lane.b32.xlu2 %v4851_v57, %s4963_s1 }
0x1811   :  { %v4853_v0 = vpop.eup %4852 }
0x1812   :  { %v2095_v1 = vmul.f32 0.5, %v4853_v0 }
0x1814   :  { %v2096_v2 = vadd.f32 0.5, %v2095_v1 }
0x1816   :  { %v2098_v12 = vmul.f32 %v2096_v2, %v5548_v7  ;;  %v4619_v7 = vld [vmem:[%s6117_s7 + $0x8] sm:$0xff] }
0x1817   :  { %2148 = vmatpush.bf16.msra.mxu0 %v4619_v7  ;;  %v4627_v7 = vld [vmem:[%s6117_s7 + $0x8] sm:$0xff] }
0x181b   :  { %2149 = vmatpush.bf16.msra.mxu0 %v4618_v23 }
0x181f   :  { %2334 = vmatpush.bf16.msrb.mxu0 %v4627_v7 }
0x185b   :  { %v2021_v62 = vpop.permute.xlu0 %2020 }
0x185c   :  { %v5612_v63 = vadd.f32 %v2021_v62, %v2013_v61 }
0x185e   :  { %4854 = vtanh.f32 %v5612_v63 }
0x1864   :  { %v4855_v14 = vpop.eup %4854 }
0x1865   :  { %2026 = vrot.lane.b32.xlu2 %v4855_v14, %s4963_s1 }
0x186a   :  { %v2101_v3 = vpop.permute.xlu2 %2100 }
0x186b   :  { %v2103_v4 = vmul.f32 %v2101_v3, %v2096_v2 }
0x186d   :  { %2105 = vrot.lane.b32.xlu1 %v2103_v4, %s4964_s12 }
0x18bf   :  { %v2027_v5 = vpop.permute.xlu2 %2026 }
0x18c0   :  { %v2029_v6 = vmul.f32 %v2027_v5, %v2011_v46  ;;  %v4714_v46 = vld [vmem:[%s6118_s8] ss:$0 sm:$0xff]  ;;  %v4629_v5 = vld [vmem:[%s6111_s2 + $0x8] sm:$0xff] }
0x18c1   :  { %2372 = vmatpush.bf16.msra.mxu1 %v4629_v5 }
0x18c2   :  { %v2157_v9 = vpack.c.bf16 %v2029_v6, %v2029_v6  ;;  %v4631_v6 = vld [vmem:[%s6115_s4 + $0x8] sm:$0xff] }
0x18c3   :  { %2428 = vmatpush.bf16.msra.mxu2 %v4631_v6 }
0x18c4   :  { %2163 = vrot.lane.b32.xlu1 %v2157_v9, %s4964_s12  ;;  %v4628_v9 = vld [vmem:[%s6111_s2] sm:$0xff] }
0x18c5   :  { %2373 = vmatpush.bf16.msra.mxu1 %v4628_v9 }
0x18c7   :  { %2429 = vmatpush.bf16.msra.mxu2 %v4630_v54 }
0x18df   :  { %v2106_v13 = vpop.permute.xlu1 %2105 }
0x18e0   :  { %v5631_v15 = vadd.f32 %v2106_v13, %v2098_v12  ;;  %v4633_v13 = vld [vmem:[%s6114_s5 + $0x8] sm:$0xff] }
0x18e1   :  { %2457 = vmatpush.bf16.msra.mxu3 %v4633_v13 }
0x18e2   :  { %4856 = vtanh.f32 %v5631_v15 }
0x18e5   :  { %2458 = vmatpush.bf16.msra.mxu3 %v4632_v19 }
0x18e8   :  { %v4857_v16 = vpop.eup %4856 }
0x18e9   :  { %2111 = vrot.lane.b32.xlu0 %v4857_v16, %s4963_s1 }
0x1936   :  { %v2164_v17 = vpop.permute.xlu1 %2163 }
0x1937   :  { %4216 = vmatmul.msk.bf16.vlgmr.msrb.gmra.mxu1 %vm272_vm0, %v2164_v17  ;;  %4225 = vmatmul.msk.bf16.vlgmr.msrb.gmra.mxu2 %vm272_vm0, %v2164_v17 }
0x195b   :  { %v2112_v20 = vpop.permute.xlu0 %2111 }
0x195c   :  { %v2114_v21 = vmul.f32 %v2112_v20, %v2096_v2  ;;  %v4626_v20 = vld [vmem:[%s6117_s7] sm:$0xff] }
0x195d   :  { %2335 = vmatpush.bf16.msrb.mxu0 %v4626_v20 }
0x195e   :  { %v2115_v22 = vpack.c.bf16 %v2114_v21, %v2114_v21  ;;  %v218_v21 = vadd.f32 %v5400_v45, %v5586_v34 }
0x1960   :  { %2125 = vrot.lane.b32.xlu2 %v2115_v22, %s4964_s12 }
0x19b4   :  { %v2189_v25 = vpop.f32.mrf.mxu1 }
0x19b5   :  { %v2193_v26 = vadd.f32 %v2189_v25, %v215_v24 }
0x19b7   :  { %4858 = vtanh.f32 %v2193_v26  ;;  %v2194_v32 = vmul.f32 0.5, %v2193_v26 }
0x19b9   :  { %4860 = vtanh.f32 %v2194_v32 }
0x19ba   :  { %v2126_v27 = vpop.permute.xlu2 %2125  ;;  %v2245_v28 = vpop.f32.mrf.mxu2 }
0x19bb   :  { %4207 = vmatmul.msk.bf16.vlgmr.msra.gmra.mxu0 %vm272_vm0, %v2126_v27  ;;  %4234 = vmatmul.msk.bf16.vlgmr.msrb.gmra.mxu3 %vm272_vm0, %v2126_v27  ;;  %v2246_v50 = vadd.f32 %v4713_v48, %v2245_v28 }
0x19bc   :  { %v2191_v29 = vpop.f32.mrf.mxu1 }
0x19bd   :  { %v4859_v30 = vpop.eup %4858 }
0x19be   :  { %2201 = vrot.lane.b32.xlu0 %v4859_v30, %s4963_s1 }
0x19bf   :  { %v4861_v41 = vpop.eup %4860 }
0x19c0   :  { %v2196_v42 = vmul.f32 0.5, %v4861_v41 }
0x19c2   :  { %v2247_v31 = vpop.f32.mrf.mxu2  ;;  %v2197_v43 = vadd.f32 0.5, %v2196_v42  ;;  %v4716_v42 = vld [vmem:[%s6118_s8] ss:$0 sm:$0xff] }
0x19c4   :  { %v2199_v58 = vmul.f32 %v2197_v43, %v5612_v63 }
0x1a30   :  { %v2202_v33 = vpop.permute.xlu0 %2201 }
0x1a31   :  { %v2204_v44 = vmul.f32 %v2202_v33, %v2197_v43  ;;  %v4715_v33 = vld [vmem:[%s6116_s6] ss:$0 sm:$0xff] }
0x1a33   :  { %2206 = vrot.lane.b32.xlu2 %v2204_v44, %s4964_s12 }
0x1a38   :  { %v2151_v47 = vpop.f32.mrf.mxu0 }
0x1a39   :  { %v2152_v49 = vadd.f32 %v4714_v46, %v2151_v47 }
0x1a3b   :  { %2155 = vst [vmem:[%s6119_s9 + $0x48] sm:$0xff] %v2152_v49 }
0x1a3e   :  { %v2274_v51 = vpop.f32.mrf.mxu3 }
0x1a3f   :  { %v2278_v52 = vadd.f32 %v2274_v51, %v2246_v50 }
0x1a40   :  { %v2153_v53 = vpop.f32.mrf.mxu0 }
0x1a41   :  { %4862 = vtanh.f32 %v2278_v52  ;;  %v2279_v61 = vmul.f32 0.5, %v2278_v52 }
0x1a46   :  { %v2276_v55 = vpop.f32.mrf.mxu3 }
0x1a47   :  { %v4863_v56 = vpop.eup %4862 }
0x1a48   :  { %2286 = vrot.lane.b32.xlu1 %v4863_v56, %s4963_s1 }
0x1a8d   :  { %v2207_v59 = vpop.permute.xlu2 %2206 }
0x1a8e   :  { %v5667_v57 = vadd.f32 %v2207_v59, %v2199_v58 }
0x1a90   :  { %4864 = vtanh.f32 %v5667_v57 }
0x1a91   :  { %4866 = vtanh.f32 %v2279_v61 }
0x1a96   :  { %v4865_v60 = vpop.eup %4864 }
0x1a97   :  { %2212 = vrot.lane.b32.xlu1 %v4865_v60, %s4963_s1  ;;  %v4867_v62 = vpop.eup %4866 }
0x1a98   :  { %v2281_v0 = vmul.f32 0.5, %v4867_v62 }
0x1a9a   :  { %v2282_v14 = vadd.f32 0.5, %v2281_v0 }
0x1a9c   :  { %v2284_v10 = vmul.f32 %v2282_v14, %v5631_v15 }
0x1aba   :  { %v2287_v1 = vpop.permute.xlu1 %2286 }
0x1abb   :  { %v2289_v2 = vmul.f32 %v2287_v1, %v2282_v14 }
0x1abd   :  { %2291 = vrot.lane.b32.xlu0 %v2289_v2, %s4964_s12  ;;  %v4636_v2 = vld [vmem:[%s6111_s2] sm:$0xff] }
0x1b09   :  { %v2213_v3 = vpop.permute.xlu1 %2212 }
0x1b0a   :  { %v2215_v4 = vmul.f32 %v2213_v3, %v2197_v43  ;;  %v4638_v3 = vld [vmem:[%s6115_s4] sm:$0xff] }
0x1b0c   :  { %v2343_v63 = vpack.c.bf16 %v2215_v4, %v2215_v4 }
0x1b0e   :  { %2349 = vrot.lane.b32.xlu0 %v2343_v63, %s4964_s12 }
0x1b2f   :  { %v2292_v8 = vpop.permute.xlu0 %2291 }
0x1b30   :  { %v5686_v11 = vadd.f32 %v2292_v8, %v2284_v10 }
0x1b32   :  { %4868 = vtanh.f32 %v5686_v11 }
0x1b38   :  { %v4869_v12 = vpop.eup %4868 }
0x1b39   :  { %2297 = vrot.lane.b32.xlu2 %v4869_v12, %s4963_s1 }
0x1b80   :  { %v2350_v16 = vpop.permute.xlu0 %2349 }
0x1b81   :  { %4252 = vmatmul.msk.bf16.vlgmr.msra.gmra.mxu1 %vm272_vm0, %v2350_v16  ;;  %4261 = vmatmul.msk.bf16.vlgmr.msra.gmra.mxu2 %vm272_vm0, %v2350_v16  ;;  %v4635_v16 = vld [vmem:[%s6117_s7 + $0x8] sm:$0xff] }
0x1b82   :  { %2520 = vmatpush.bf16.msra.mxu0 %v4635_v16 }
0x1b93   :  { %v2298_v17 = vpop.permute.xlu2 %2297 }
0x1b94   :  { %v2300_v15 = vmul.f32 %v2298_v17, %v2282_v14  ;;  %v4639_v14 = vld [vmem:[%s6115_s4 + $0x8] sm:$0xff]  ;;  %v4640_v17 = vld [vmem:[%s6114_s5] sm:$0xff] }
0x1b95   :  { %2614 = vmatpush.bf16.msrb.mxu2 %v4639_v14 }
0x1b96   :  { %v2301_v18 = vpack.c.bf16 %v2300_v15, %v2300_v15  ;;  %v4634_v15 = vld [vmem:[%s6117_s7] sm:$0xff] }
0x1b97   :  { %2521 = vmatpush.bf16.msra.mxu0 %v4634_v15 }
0x1b98   :  { %2311 = vrot.lane.b32.xlu1 %v2301_v18, %s4964_s12  ;;  %v220_v18 = vadd.f32 %v5400_v45, %v5588_v35 }
0x1b99   :  { %2615 = vmatpush.bf16.msrb.mxu2 %v4638_v3 }
0x1bfe   :  { %v2375_v22 = vpop.f32.mrf.mxu1 }
0x1bff   :  { %v2379_v23 = vadd.f32 %v2375_v22, %v218_v21 }
0x1c01   :  { %4870 = vtanh.f32 %v2379_v23  ;;  %v2380_v29 = vmul.f32 0.5, %v2379_v23 }
0x1c03   :  { %4872 = vtanh.f32 %v2380_v29  ;;  %v4718_v29 = vld [vmem:[%s6118_s8] ss:$0 sm:$0xff] }
0x1c04   :  { %v2431_v24 = vpop.f32.mrf.mxu2 }
0x1c05   :  { %v2432_v46 = vadd.f32 %v4715_v33, %v2431_v24 }
0x1c06   :  { %v2377_v25 = vpop.f32.mrf.mxu1 }
0x1c07   :  { %v4871_v26 = vpop.eup %4870 }
0x1c08   :  { %2387 = vrot.lane.b32.xlu2 %v4871_v26, %s4963_s1 }
0x1c09   :  { %v4873_v30 = vpop.eup %4872 }
0x1c0a   :  { %v2312_v27 = vpop.permute.xlu1 %2311  ;;  %v2382_v31 = vmul.f32 0.5, %v4873_v30 }
0x1c0b   :  { %4243 = vmatmul.msk.bf16.vlgmr.msrb.gmra.mxu0 %vm272_vm0, %v2312_v27  ;;  %4270 = vmatmul.msk.bf16.vlgmr.msra.gmra.mxu3 %vm272_vm0, %v2312_v27 }
0x1c0c   :  { %v2433_v28 = vpop.f32.mrf.mxu2  ;;  %v2383_v32 = vadd.f32 0.5, %v2382_v31  ;;  %v4717_v31 = vld [vmem:[%s6116_s6] ss:$0 sm:$0xff] }
0x1c0e   :  { %v2385_v52 = vmul.f32 %v2383_v32, %v5667_v57  ;;  %v4637_v57 = vld [vmem:[%s6111_s2 + $0x8] sm:$0xff] }
0x1c0f   :  { %2558 = vmatpush.bf16.msrb.mxu1 %v4637_v57  ;;  %v4646_v57 = vld [vmem:[%s6115_s4] sm:$0xff] }
0x1c13   :  { %2559 = vmatpush.bf16.msrb.mxu1 %v4636_v2 }
0x1c62   :  { %v2388_v34 = vpop.permute.xlu2 %2387 }
0x1c63   :  { %v2390_v41 = vmul.f32 %v2388_v34, %v2383_v32 }
0x1c65   :  { %2392 = vrot.lane.b32.xlu1 %v2390_v41, %s4964_s12 }
0x1c88   :  { %v2337_v43 = vpop.f32.mrf.mxu0 }
0x1c89   :  { %v2338_v44 = vadd.f32 %v4716_v42, %v2337_v43 }
0x1c8b   :  { %2341 = vst [vmem:[%s6119_s9 + $0x50] sm:$0xff] %v2338_v44 }
0x1c8e   :  { %v2460_v47 = vpop.f32.mrf.mxu3 }
0x1c8f   :  { %v2464_v48 = vadd.f32 %v2460_v47, %v2432_v46 }
0x1c90   :  { %v2339_v49 = vpop.f32.mrf.mxu0 }
0x1c91   :  { %4874 = vtanh.f32 %v2464_v48  ;;  %v2465_v58 = vmul.f32 0.5, %v2464_v48 }
0x1c96   :  { %v2462_v50 = vpop.f32.mrf.mxu3 }
0x1c97   :  { %v4875_v51 = vpop.eup %4874 }
0x1c98   :  { %2472 = vrot.lane.b32.xlu0 %v4875_v51, %s4963_s1 }
0x1cd7   :  { %v2393_v53 = vpop.permute.xlu1 %2392 }
0x1cd8   :  { %v5722_v55 = vadd.f32 %v2393_v53, %v2385_v52 }
0x1cda   :  { %4876 = vtanh.f32 %v5722_v55 }
0x1cdb   :  { %4878 = vtanh.f32 %v2465_v58 }
0x1ce0   :  { %v4877_v56 = vpop.eup %4876 }
0x1ce1   :  { %2398 = vrot.lane.b32.xlu0 %v4877_v56, %s4963_s1  ;;  %v4879_v59 = vpop.eup %4878 }
0x1ce2   :  { %v2467_v60 = vmul.f32 0.5, %v4879_v59 }
0x1ce4   :  { %v2468_v61 = vadd.f32 0.5, %v2467_v60 }
0x1ce6   :  { %v2470_v5 = vmul.f32 %v2468_v61, %v5686_v11  ;;  %v4641_v11 = vld [vmem:[%s6114_s5 + $0x8] sm:$0xff] }
0x1ce7   :  { %2643 = vmatpush.bf16.msrb.mxu3 %v4641_v11 }
0x1ceb   :  { %2644 = vmatpush.bf16.msrb.mxu3 %v4640_v17 }
0x1d0a   :  { %v2473_v62 = vpop.permute.xlu0 %2472 }
0x1d0b   :  { %v2475_v0 = vmul.f32 %v2473_v62, %v2468_v61  ;;  %v4647_v62 = vld [vmem:[%s6115_s4 + $0x8] sm:$0xff] }
0x1d0c   :  { %2800 = vmatpush.bf16.msra.mxu2 %v4647_v62 }
0x1d0d   :  { %2477 = vrot.lane.b32.xlu2 %v2475_v0, %s4964_s12  ;;  %v4644_v0 = vld [vmem:[%s6111_s2] sm:$0xff] }
0x1d10   :  { %2801 = vmatpush.bf16.msra.mxu2 %v4646_v57 }
0x1d53   :  { %v2399_v1 = vpop.permute.xlu0 %2398 }
0x1d54   :  { %v2401_v4 = vmul.f32 %v2399_v1, %v2383_v32 }
0x1d56   :  { %v2529_v63 = vpack.c.bf16 %v2401_v4, %v2401_v4 }
0x1d58   :  { %2535 = vrot.lane.b32.xlu2 %v2529_v63, %s4964_s12 }
0x1d67   :  { %v2478_v6 = vpop.permute.xlu2 %2477 }
0x1d68   :  { %v5741_v9 = vadd.f32 %v2478_v6, %v2470_v5 }
0x1d6a   :  { %4880 = vtanh.f32 %v5741_v9 }
0x1d70   :  { %v4881_v54 = vpop.eup %4880 }
0x1d71   :  { %2483 = vrot.lane.b32.xlu1 %v4881_v54, %s4963_s1  ;;  %v4648_v54 = vld [vmem:[%s6114_s5] sm:$0xff] }
0x1db2   :  { %v2536_v10 = vpop.permute.xlu2 %2535 }
0x1db3   :  { %4288 = vmatmul.msk.bf16.vlgmr.msrb.gmra.mxu1 %vm272_vm0, %v2536_v10  ;;  %4297 = vmatmul.msk.bf16.vlgmr.msrb.gmra.mxu2 %vm272_vm0, %v2536_v10  ;;  %v4643_v10 = vld [vmem:[%s6117_s7 + $0x8] sm:$0xff] }
0x1db4   :  { %2706 = vmatpush.bf16.msrb.mxu0 %v4643_v10 }
0x1de3   :  { %v2484_v8 = vpop.permute.xlu1 %2483 }
0x1de4   :  { %v2486_v12 = vmul.f32 %v2484_v8, %v2468_v61  ;;  %v4645_v61 = vld [vmem:[%s6111_s2 + $0x8] sm:$0xff]  ;;  %v4642_v8 = vld [vmem:[%s6117_s7] sm:$0xff] }
0x1de5   :  { %2744 = vmatpush.bf16.msra.mxu1 %v4645_v61  ;;  %2707 = vmatpush.bf16.msrb.mxu0 %v4642_v8 }
0x1de6   :  { %v2487_v13 = vpack.c.bf16 %v2486_v12, %v2486_v12  ;;  %v5818_v12 = vld [vmem:[%s6112_s3] ss:$0 sm:$0xff] }
0x1de8   :  { %2497 = vrot.lane.b32.xlu0 %v2487_v13, %s4964_s12  ;;  %v223_v13 = vadd.f32 %v5818_v12, %v5590_v36 }
0x1de9   :  { %2745 = vmatpush.bf16.msra.mxu1 %v4644_v0 }
0x1e30   :  { %v2561_v7 = vpop.f32.mrf.mxu1 }
0x1e31   :  { %v2565_v19 = vadd.f32 %v2561_v7, %v220_v18 }
0x1e33   :  { %4882 = vtanh.f32 %v2565_v19  ;;  %v2566_v25 = vmul.f32 0.5, %v2565_v19 }
0x1e35   :  { %4884 = vtanh.f32 %v2566_v25  ;;  %v4720_v25 = vld [vmem:[%s6118_s8] ss:$0 sm:$0xff] }
0x1e36   :  { %v2617_v20 = vpop.f32.mrf.mxu2 }
0x1e37   :  { %v2618_v34 = vadd.f32 %v4717_v31, %v2617_v20 }
0x1e38   :  { %v2563_v21 = vpop.f32.mrf.mxu1 }
0x1e39   :  { %v4883_v22 = vpop.eup %4882 }
0x1e3a   :  { %2573 = vrot.lane.b32.xlu1 %v4883_v22, %s4963_s1 }
0x1e3b   :  { %v4885_v26 = vpop.eup %4884 }
0x1e3c   :  { %v2568_v27 = vmul.f32 0.5, %v4885_v26 }
0x1e3e   :  { %v2619_v23 = vpop.f32.mrf.mxu2  ;;  %v2569_v28 = vadd.f32 0.5, %v2568_v27  ;;  %v4719_v27 = vld [vmem:[%s6116_s6] ss:$0 sm:$0xff] }
0x1e40   :  { %v2571_v46 = vmul.f32 %v2569_v28, %v5722_v55 }
0x1e5a   :  { %v2498_v24 = vpop.permute.xlu0 %2497 }
0x1e5b   :  { %4279 = vmatmul.msk.bf16.vlgmr.msra.gmra.mxu0 %vm272_vm0, %v2498_v24  ;;  %4306 = vmatmul.msk.bf16.vlgmr.msrb.gmra.mxu3 %vm272_vm0, %v2498_v24 }
0x1eac   :  { %v2574_v45 = vpop.permute.xlu1 %2573 }
0x1ead   :  { %v2576_v35 = vmul.f32 %v2574_v45, %v2569_v28 }
0x1eaf   :  { %2578 = vrot.lane.b32.xlu0 %v2576_v35, %s4964_s12 }
0x1ed8   :  { %v2523_v30 = vpop.f32.mrf.mxu0 }
0x1ed9   :  { %v2524_v32 = vadd.f32 %v4718_v29, %v2523_v30 }
0x1edb   :  { %2527 = vst [vmem:[%s6119_s9 + $0x58] sm:$0xff] %v2524_v32 }
0x1ede   :  { %v2646_v41 = vpop.f32.mrf.mxu3 }
0x1edf   :  { %v2650_v42 = vadd.f32 %v2646_v41, %v2618_v34 }
0x1ee0   :  { %v2525_v43 = vpop.f32.mrf.mxu0 }
0x1ee1   :  { %4886 = vtanh.f32 %v2650_v42  ;;  %v2651_v50 = vmul.f32 0.5, %v2650_v42 }
0x1ee6   :  { %v2648_v33 = vpop.f32.mrf.mxu3 }
0x1ee7   :  { %v4887_v44 = vpop.eup %4886 }
0x1ee8   :  { %2658 = vrot.lane.b32.xlu2 %v4887_v44, %s4963_s1 }
0x1f21   :  { %v2579_v47 = vpop.permute.xlu0 %2578 }
0x1f22   :  { %v5777_v48 = vadd.f32 %v2579_v47, %v2571_v46 }
0x1f24   :  { %4888 = vtanh.f32 %v5777_v48 }
0x1f25   :  { %4890 = vtanh.f32 %v2651_v50 }
0x1f2a   :  { %v4889_v49 = vpop.eup %4888 }
0x1f2b   :  { %2584 = vrot.lane.b32.xlu2 %v4889_v49, %s4963_s1  ;;  %v4891_v51 = vpop.eup %4890 }
0x1f2c   :  { %v2653_v52 = vmul.f32 0.5, %v4891_v51 }
0x1f2e   :  { %v2654_v53 = vadd.f32 0.5, %v2653_v52 }
0x1f30   :  { %v2656_v14 = vmul.f32 %v2654_v53, %v5741_v9  ;;  %v4649_v9 = vld [vmem:[%s6114_s5 + $0x8] sm:$0xff] }
0x1f31   :  { %2829 = vmatpush.bf16.msra.mxu3 %v4649_v9 }
0x1f35   :  { %2830 = vmatpush.bf16.msra.mxu3 %v4648_v54 }
0x1f42   :  { %v2659_v56 = vpop.permute.xlu2 %2658 }
0x1f43   :  { %v2661_v58 = vmul.f32 %v2659_v56, %v2654_v53  ;;  %v4655_v56 = vld [vmem:[%s6115_s4 + $0x8] sm:$0xff] }
0x1f44   :  { %2986 = vmatpush.bf16.msrb.mxu2 %v4655_v56 }
0x1f45   :  { %2663 = vrot.lane.b32.xlu1 %v2661_v58, %s4964_s12  ;;  %v4652_v58 = vld [vmem:[%s6111_s2] sm:$0xff] }
0x1f85   :  { %v2585_v59 = vpop.permute.xlu2 %2584 }
0x1f86   :  { %v2587_v60 = vmul.f32 %v2585_v59, %v2569_v28  ;;  %v4654_v59 = vld [vmem:[%s6115_s4] sm:$0xff] }
0x1f87   :  { %2987 = vmatpush.bf16.msrb.mxu2 %v4654_v59 }
0x1f88   :  { %v2715_v55 = vpack.c.bf16 %v2587_v60, %v2587_v60 }
0x1f8a   :  { %2721 = vrot.lane.b32.xlu1 %v2715_v55, %s4964_s12 }
0x1fb7   :  { %v2664_v1 = vpop.permute.xlu1 %2663 }
0x1fb8   :  { %v5796_v2 = vadd.f32 %v2664_v1, %v2656_v14 }
0x1fba   :  { %4892 = vtanh.f32 %v5796_v2 }
0x1fc0   :  { %v4893_v3 = vpop.eup %4892 }
0x1fc1   :  { %2669 = vrot.lane.b32.xlu0 %v4893_v3, %s4963_s1  ;;  %v4651_v3 = vld [vmem:[%s6117_s7 + $0x8] sm:$0xff] }
0x1fc2   :  { %2892 = vmatpush.bf16.msra.mxu0 %v4651_v3 }
0x1ffc   :  { %v2722_v4 = vpop.permute.xlu1 %2721 }
0x1ffd   :  { %4324 = vmatmul.msk.bf16.vlgmr.msra.gmra.mxu1 %vm272_vm0, %v2722_v4  ;;  %4333 = vmatmul.msk.bf16.vlgmr.msra.gmra.mxu2 %vm272_vm0, %v2722_v4  ;;  %v4656_v4 = vld [vmem:[%s6114_s5] sm:$0xff] }
0x2033   :  { %v2670_v63 = vpop.permute.xlu0 %2669 }
0x2034   :  { %v2672_v5 = vmul.f32 %v2670_v63, %v2654_v53  ;;  %v4653_v53 = vld [vmem:[%s6111_s2 + $0x8] sm:$0xff]  ;;  %v4650_v63 = vld [vmem:[%s6117_s7] sm:$0xff] }
0x2035   :  { %2930 = vmatpush.bf16.msrb.mxu1 %v4653_v53  ;;  %2893 = vmatpush.bf16.msra.mxu0 %v4650_v63 }
0x2036   :  { %v2673_v6 = vpack.c.bf16 %v2672_v5, %v2672_v5  ;;  %v225_v5 = vadd.f32 %v5818_v12, %v5592_v37 }
0x2038   :  { %2683 = vrot.lane.b32.xlu2 %v2673_v6, %s4964_s12 }
0x2039   :  { %2931 = vmatpush.bf16.msrb.mxu1 %v4652_v58 }
0x207a   :  { %v2747_v11 = vpop.f32.mrf.mxu1 }
0x207b   :  { %v2751_v16 = vadd.f32 %v2747_v11, %v223_v13 }
0x207d   :  { %4894 = vtanh.f32 %v2751_v16  ;;  %v2752_v20 = vmul.f32 0.5, %v2751_v16 }
0x207f   :  { %4896 = vtanh.f32 %v2752_v20 }
0x2080   :  { %v2803_v17 = vpop.f32.mrf.mxu2 }
0x2081   :  { %v2804_v45 = vadd.f32 %v4719_v27, %v2803_v17 }
0x2082   :  { %v2749_v15 = vpop.f32.mrf.mxu1 }
0x2083   :  { %v4895_v18 = vpop.eup %4894 }
0x2084   :  { %2759 = vrot.lane.b32.xlu0 %v4895_v18, %s4963_s1 }
0x2085   :  { %v4897_v21 = vpop.eup %4896 }
0x2086   :  { %v2754_v22 = vmul.f32 0.5, %v4897_v21  ;;  %v4721_v21 = vld [vmem:[%s6116_s6] ss:$0 sm:$0xff] }
0x2088   :  { %v2805_v7 = vpop.f32.mrf.mxu2  ;;  %v2755_v23 = vadd.f32 0.5, %v2754_v22 }
0x208a   :  { %v2757_v34 = vmul.f32 %v2755_v23, %v5777_v48 }
0x2092   :  { %v2684_v19 = vpop.permute.xlu2 %2683 }
0x2093   :  { %4315 = vmatmul.msk.bf16.vlgmr.msrb.gmra.mxu0 %vm272_vm0, %v2684_v19  ;;  %4342 = vmatmul.msk.bf16.vlgmr.msra.gmra.mxu3 %vm272_vm0, %v2684_v19  ;;  %v4722_v19 = vld [vmem:[%s6118_s8] ss:$0 sm:$0xff] }
0x20f6   :  { %v2760_v36 = vpop.permute.xlu0 %2759 }
0x20f7   :  { %v2762_v24 = vmul.f32 %v2760_v36, %v2755_v23 }
0x20f9   :  { %2764 = vrot.lane.b32.xlu2 %v2762_v24, %s4964_s12 }
0x2110   :  { %v2709_v26 = vpop.f32.mrf.mxu0 }
0x2111   :  { %v2710_v28 = vadd.f32 %v4720_v25, %v2709_v26 }
0x2113   :  { %2713 = vst [vmem:[%s6119_s9 + $0x60] sm:$0xff] %v2710_v28 }
0x2116   :  { %v2832_v35 = vpop.f32.mrf.mxu3 }
0x2117   :  { %v2836_v29 = vadd.f32 %v2832_v35, %v2804_v45 }
0x2118   :  { %v2711_v30 = vpop.f32.mrf.mxu0 }
0x2119   :  { %4898 = vtanh.f32 %v2836_v29  ;;  %v2837_v33 = vmul.f32 0.5, %v2836_v29 }
0x211e   :  { %v2834_v31 = vpop.f32.mrf.mxu3 }
0x211f   :  { %v4899_v32 = vpop.eup %4898 }
0x2120   :  { %2844 = vrot.lane.b32.xlu1 %v4899_v32, %s4963_s1 }
0x2153   :  { %v2765_v41 = vpop.permute.xlu2 %2764 }
0x2154   :  { %v5837_v42 = vadd.f32 %v2765_v41, %v2757_v34 }
0x2156   :  { %4900 = vtanh.f32 %v5837_v42 }
0x2157   :  { %4902 = vtanh.f32 %v2837_v33 }
0x215c   :  { %v4901_v43 = vpop.eup %4900 }
0x215d   :  { %2770 = vrot.lane.b32.xlu1 %v4901_v43, %s4963_s1  ;;  %v4903_v44 = vpop.eup %4902 }
0x215e   :  { %v2839_v46 = vmul.f32 0.5, %v4903_v44 }
0x2160   :  { %v2840_v47 = vadd.f32 0.5, %v2839_v46  ;;  %v4661_v46 = vld [vmem:[%s6111_s2 + $0x8] sm:$0xff] }
0x2161   :  { %3116 = vmatpush.bf16.msra.mxu1 %v4661_v46 }
0x2162   :  { %v2842_v60 = vmul.f32 %v2840_v47, %v5796_v2  ;;  %v4657_v2 = vld [vmem:[%s6114_s5 + $0x8] sm:$0xff] }
0x2163   :  { %3015 = vmatpush.bf16.msrb.mxu3 %v4657_v2 }
0x2167   :  { %3016 = vmatpush.bf16.msrb.mxu3 %v4656_v4 }
0x2192   :  { %v2845_v49 = vpop.permute.xlu1 %2844 }
0x2193   :  { %v2847_v50 = vmul.f32 %v2845_v49, %v2840_v47  ;;  %v4660_v49 = vld [vmem:[%s6111_s2] sm:$0xff] }
0x2194   :  { %3117 = vmatpush.bf16.msra.mxu1 %v4660_v49 }
0x2195   :  { %2849 = vrot.lane.b32.xlu0 %v2847_v50, %s4964_s12  ;;  %v4662_v50 = vld [vmem:[%s6115_s4] sm:$0xff] }
0x21cf   :  { %v2771_v51 = vpop.permute.xlu1 %2770 }
0x21d0   :  { %v2773_v52 = vmul.f32 %v2771_v51, %v2755_v23 }
0x21d2   :  { %v2901_v48 = vpack.c.bf16 %v2773_v52, %v2773_v52 }
0x21d4   :  { %2907 = vrot.lane.b32.xlu0 %v2901_v48, %s4964_s12 }
0x2207   :  { %v2850_v55 = vpop.permute.xlu0 %2849 }
0x2208   :  { %v5856_v61 = vadd.f32 %v2850_v55, %v2842_v60  ;;  %v4665_v55 = vld [vmem:[%s6114_s5 + $0x8] sm:$0xff] }
0x2209   :  { %3201 = vmatpush.bf16.msra.mxu3 %v4665_v55 }
0x220a   :  { %4904 = vtanh.f32 %v5856_v61 }
0x2210   :  { %v4905_v62 = vpop.eup %4904 }
0x2211   :  { %2855 = vrot.lane.b32.xlu2 %v4905_v62, %s4963_s1  ;;  %v4664_v62 = vld [vmem:[%s6114_s5] sm:$0xff] }
0x2212   :  { %3202 = vmatpush.bf16.msra.mxu3 %v4664_v62 }
0x2246   :  { %v2908_v0 = vpop.permute.xlu0 %2907 }
0x2247   :  { %4360 = vmatmul.msk.bf16.vlgmr.msrb.gmra.mxu1 %vm272_vm0, %v2908_v0  ;;  %4369 = vmatmul.msk.bf16.vlgmr.msrb.gmra.mxu2 %vm272_vm0, %v2908_v0  ;;  %v4658_v0 = vld [vmem:[%s6117_s7] sm:$0xff] }
0x226b   :  { %v2856_v57 = vpop.permute.xlu2 %2855 }
0x226c   :  { %v2858_v14 = vmul.f32 %v2856_v57, %v2840_v47  ;;  %v4663_v47 = vld [vmem:[%s6115_s4 + $0x8] sm:$0xff]  ;;  %v228_v57 = vadd.f32 %v5818_v12, %v5594_v38 }
0x226d   :  { %3172 = vmatpush.bf16.msra.mxu2 %v4663_v47 }
0x226e   :  { %v2859_v1 = vpack.c.bf16 %v2858_v14, %v2858_v14 }
0x2270   :  { %2869 = vrot.lane.b32.xlu1 %v2859_v1, %s4964_s12 }
0x2271   :  { %3173 = vmatpush.bf16.msra.mxu2 %v4662_v50 }
0x22c4   :  { %v2933_v6 = vpop.f32.mrf.mxu1 }
0x22c5   :  { %v2937_v9 = vadd.f32 %v2933_v6, %v225_v5 }
0x22c7   :  { %4906 = vtanh.f32 %v2937_v9  ;;  %v2938_v16 = vmul.f32 0.5, %v2937_v9 }
0x22c9   :  { %4908 = vtanh.f32 %v2938_v16  ;;  %v4723_v16 = vld [vmem:[%s6116_s6] ss:$0 sm:$0xff] }
0x22ca   :  { %v2989_v54 = vpop.f32.mrf.mxu2 }
0x22cb   :  { %v2990_v23 = vadd.f32 %v4721_v21, %v2989_v54 }
0x22cc   :  { %v2935_v10 = vpop.f32.mrf.mxu1 }
0x22cd   :  { %v4907_v8 = vpop.eup %4906 }
0x22ce   :  { %2945 = vrot.lane.b32.xlu2 %v4907_v8, %s4963_s1 }
0x22cf   :  { %v4909_v17 = vpop.eup %4908 }
0x22d0   :  { %v2940_v15 = vmul.f32 0.5, %v4909_v17 }
0x22d2   :  { %v2991_v13 = vpop.f32.mrf.mxu2  ;;  %v2941_v18 = vadd.f32 0.5, %v2940_v15 }
0x22d3   :  { %v4724_v13 = vld [vmem:[%s6118_s8] ss:$0 sm:$0xff] }
0x22d4   :  { %v2943_v28 = vmul.f32 %v2941_v18, %v5837_v42 }
0x22e2   :  { %v2870_v11 = vpop.permute.xlu1 %2869 }
0x22e3   :  { %4351 = vmatmul.msk.bf16.vlgmr.msra.gmra.mxu0 %vm272_vm0, %v2870_v11  ;;  %4378 = vmatmul.msk.bf16.vlgmr.msrb.gmra.mxu3 %vm272_vm0, %v2870_v11 }
0x2328   :  { %v2946_v37 = vpop.permute.xlu2 %2945 }
0x2329   :  { %v2948_v7 = vmul.f32 %v2946_v37, %v2941_v18 }
0x232b   :  { %2950 = vrot.lane.b32.xlu1 %v2948_v7, %s4964_s12 }
0x2360   :  { %v2895_v20 = vpop.f32.mrf.mxu0 }
0x2361   :  { %v2896_v22 = vadd.f32 %v4722_v19, %v2895_v20 }
0x2363   :  { %2899 = vst [vmem:[%s6119_s9 + $0x68] sm:$0xff] %v2896_v22 }
0x2366   :  { %v3018_v36 = vpop.f32.mrf.mxu3 }
0x2367   :  { %v3022_v24 = vadd.f32 %v3018_v36, %v2990_v23 }
0x2368   :  { %v2897_v25 = vpop.f32.mrf.mxu0 }
0x2369   :  { %4910 = vtanh.f32 %v3022_v24  ;;  %v3023_v30 = vmul.f32 0.5, %v3022_v24 }
0x236e   :  { %v3020_v26 = vpop.f32.mrf.mxu3 }
0x236f   :  { %v4911_v27 = vpop.eup %4910 }
0x2370   :  { %3030 = vrot.lane.b32.xlu0 %v4911_v27, %s4963_s1 }
0x239d   :  { %v2951_v45 = vpop.permute.xlu1 %2950 }
0x239e   :  { %v5892_v35 = vadd.f32 %v2951_v45, %v2943_v28 }
0x23a0   :  { %4912 = vtanh.f32 %v5892_v35 }
0x23a1   :  { %4914 = vtanh.f32 %v3023_v30 }
0x23a6   :  { %v4913_v29 = vpop.eup %4912 }
0x23a7   :  { %2956 = vrot.lane.b32.xlu0 %v4913_v29, %s4963_s1  ;;  %v4915_v31 = vpop.eup %4914 }
0x23a8   :  { %v3025_v32 = vmul.f32 0.5, %v4915_v31  ;;  %v4669_v31 = vld [vmem:[%s6111_s2 + $0x8] sm:$0xff] }
0x23a9   :  { %3302 = vmatpush.bf16.msrb.mxu1 %v4669_v31 }
0x23aa   :  { %v3026_v34 = vadd.f32 0.5, %v3025_v32  ;;  %v4671_v32 = vld [vmem:[%s6115_s4 + $0x8] sm:$0xff] }
0x23ab   :  { %3358 = vmatpush.bf16.msrb.mxu2 %v4671_v32 }
0x23ac   :  { %v3028_v51 = vmul.f32 %v3026_v34, %v5856_v61  ;;  %v4659_v61 = vld [vmem:[%s6117_s7 + $0x8] sm:$0xff] }
0x23ad   :  { %3078 = vmatpush.bf16.msrb.mxu0 %v4659_v61 }
0x23b1   :  { %3079 = vmatpush.bf16.msrb.mxu0 %v4658_v0 }
0x23e2   :  { %v3031_v41 = vpop.permute.xlu0 %3030 }
0x23e3   :  { %v3033_v43 = vmul.f32 %v3031_v41, %v3026_v34  ;;  %v4670_v41 = vld [vmem:[%s6115_s4] sm:$0xff] }
0x23e4   :  { %3359 = vmatpush.bf16.msrb.mxu2 %v4670_v41  ;;  %v4681_v41 = vld [vmem:[%s6114_s5 + $0x8] sm:$0xff] }
0x23e5   :  { %3035 = vrot.lane.b32.xlu2 %v3033_v43, %s4964_s12 }
0x2419   :  { %v2957_v33 = vpop.permute.xlu0 %2956 }
0x241a   :  { %v2959_v44 = vmul.f32 %v2957_v33, %v2941_v18 }
0x241c   :  { %v3087_v42 = vpack.c.bf16 %v2959_v44, %v2959_v44 }
0x241e   :  { %3093 = vrot.lane.b32.xlu2 %v3087_v42, %s4964_s12 }
0x243f   :  { %v3036_v52 = vpop.permute.xlu2 %3035 }
0x2440   :  { %v5911_v48 = vadd.f32 %v3036_v52, %v3028_v51  ;;  %v4673_v51 = vld [vmem:[%s6114_s5 + $0x8] sm:$0xff] }
0x2441   :  { %v4667_v52 = vld [vmem:[%s6117_s7 + $0x8] sm:$0xff]  ;;  %3387 = vmatpush.bf16.msrb.mxu3 %v4673_v51 }
0x2442   :  { %4916 = vtanh.f32 %v5911_v48  ;;  %3264 = vmatpush.bf16.msra.mxu0 %v4667_v52 }
0x2448   :  { %v4917_v53 = vpop.eup %4916 }
0x2449   :  { %3041 = vrot.lane.b32.xlu1 %v4917_v53, %s4963_s1  ;;  %v4666_v53 = vld [vmem:[%s6117_s7] sm:$0xff] }
0x244a   :  { %3265 = vmatpush.bf16.msra.mxu0 %v4666_v53  ;;  %v4728_v53 = vld [vmem:[%s6118_s8] ss:$0 sm:$0xff] }
0x2478   :  { %v3094_v56 = vpop.permute.xlu2 %3093 }
0x2479   :  { %4396 = vmatmul.msk.bf16.vlgmr.msra.gmra.mxu1 %vm272_vm0, %v3094_v56  ;;  %4405 = vmatmul.msk.bf16.vlgmr.msra.gmra.mxu2 %vm272_vm0, %v3094_v56  ;;  %v230_v56 = vadd.f32 %v5818_v12, %v5596_v39 }
0x24bb   :  { %v3042_v58 = vpop.permute.xlu1 %3041 }
0x24bc   :  { %v3044_v59 = vmul.f32 %v3042_v58, %v3026_v34  ;;  %v4668_v34 = vld [vmem:[%s6111_s2] sm:$0xff] }
0x24bd   :  { %3303 = vmatpush.bf16.msrb.mxu1 %v4668_v34 }
0x24be   :  { %v3045_v60 = vpack.c.bf16 %v3044_v59, %v3044_v59 }
0x24c0   :  { %3055 = vrot.lane.b32.xlu0 %v3045_v60, %s4964_s12 }
0x24f6   :  { %v3119_v14 = vpop.f32.mrf.mxu1 }
0x24f7   :  { %v3123_v1 = vadd.f32 %v3119_v14, %v228_v57 }
0x24f9   :  { %4918 = vtanh.f32 %v3123_v1  ;;  %v3124_v6 = vmul.f32 0.5, %v3123_v1 }
0x24fb   :  { %4920 = vtanh.f32 %v3124_v6 }
0x24fc   :  { %v3175_v2 = vpop.f32.mrf.mxu2 }
0x24fd   :  { %v3176_v15 = vadd.f32 %v4723_v16, %v3175_v2 }
0x24fe   :  { %v3121_v3 = vpop.f32.mrf.mxu1 }
0x24ff   :  { %v4919_v4 = vpop.eup %4918 }
0x2500   :  { %3131 = vrot.lane.b32.xlu1 %v4919_v4, %s4963_s1  ;;  %v4726_v4 = vld [vmem:[%s6118_s8] ss:$0 sm:$0xff] }
0x2501   :  { %v4921_v9 = vpop.eup %4920 }
0x2502   :  { %v3126_v54 = vmul.f32 0.5, %v4921_v9 }
0x2504   :  { %v3177_v63 = vpop.f32.mrf.mxu2  ;;  %v3127_v10 = vadd.f32 0.5, %v3126_v54 }
0x2506   :  { %v3129_v21 = vmul.f32 %v3127_v10, %v5892_v35 }
0x2532   :  { %v3056_v5 = vpop.permute.xlu0 %3055 }
0x2533   :  { %4387 = vmatmul.msk.bf16.vlgmr.msrb.gmra.mxu0 %vm272_vm0, %v3056_v5  ;;  %4414 = vmatmul.msk.bf16.vlgmr.msra.gmra.mxu3 %vm272_vm0, %v3056_v5  ;;  %v4725_v5 = vld [vmem:[%s6116_s6] ss:$0 sm:$0xff] }
0x2572   :  { %v3132_v38 = vpop.permute.xlu1 %3131 }
0x2573   :  { %v3134_v8 = vmul.f32 %v3132_v38, %v3127_v10 }
0x2575   :  { %3136 = vrot.lane.b32.xlu0 %v3134_v8, %s4964_s12 }
0x25b0   :  { %v3081_v11 = vpop.f32.mrf.mxu0 }
0x25b1   :  { %v3082_v17 = vadd.f32 %v4724_v13, %v3081_v11 }
0x25b3   :  { %3085 = vst [vmem:[%s6119_s9 + $0x70] sm:$0xff] %v3082_v17 }
0x25b6   :  { %v3204_v18 = vpop.f32.mrf.mxu3 }
0x25b7   :  { %v3208_v37 = vadd.f32 %v3204_v18, %v3176_v15 }
0x25b8   :  { %v3083_v7 = vpop.f32.mrf.mxu0 }
0x25b9   :  { %4922 = vtanh.f32 %v3208_v37  ;;  %v3209_v24 = vmul.f32 0.5, %v3208_v37 }
0x25be   :  { %v3206_v19 = vpop.f32.mrf.mxu3 }
0x25bf   :  { %v4923_v20 = vpop.eup %4922 }
0x25c0   :  { %3216 = vrot.lane.b32.xlu2 %v4923_v20, %s4963_s1 }
0x25e7   :  { %v3137_v22 = vpop.permute.xlu0 %3136 }
0x25e8   :  { %v5947_v23 = vadd.f32 %v3137_v22, %v3129_v21 }
0x25ea   :  { %4924 = vtanh.f32 %v5947_v23 }
0x25eb   :  { %4926 = vtanh.f32 %v3209_v24  ;;  %v4677_v24 = vld [vmem:[%s6111_s2 + $0x8] sm:$0xff] }
0x25ec   :  { %3488 = vmatpush.bf16.msra.mxu1 %v4677_v24 }
0x25f0   :  { %v4925_v36 = vpop.eup %4924 }
0x25f1   :  { %3142 = vrot.lane.b32.xlu2 %v4925_v36, %s4963_s1  ;;  %v4927_v25 = vpop.eup %4926 }
0x25f2   :  { %v3211_v26 = vmul.f32 0.5, %v4927_v25  ;;  %v4679_v25 = vld [vmem:[%s6115_s4 + $0x8] sm:$0xff] }
0x25f3   :  { %3544 = vmatpush.bf16.msra.mxu2 %v4679_v25 }
0x25f4   :  { %v3212_v27 = vadd.f32 0.5, %v3211_v26  ;;  %v4676_v26 = vld [vmem:[%s6111_s2] sm:$0xff] }
0x25f5   :  { %3489 = vmatpush.bf16.msra.mxu1 %v4676_v26 }
0x25f6   :  { %v3214_v43 = vmul.f32 %v3212_v27, %v5911_v48  ;;  %v4672_v48 = vld [vmem:[%s6114_s5] sm:$0xff] }
0x25f7   :  { %3388 = vmatpush.bf16.msrb.mxu3 %v4672_v48 }
0x25fb   :  { %3573 = vmatpush.bf16.msra.mxu3 %v4681_v41 }
0x261a   :  { %v3217_v28 = vpop.permute.xlu2 %3216 }
0x261b   :  { %v3219_v45 = vmul.f32 %v3217_v28, %v3212_v27 }
0x261d   :  { %3221 = vrot.lane.b32.xlu1 %v3219_v45, %s4964_s12 }
0x264b   :  { %v3143_v29 = vpop.permute.xlu2 %3142 }
0x264c   :  { %v3145_v30 = vmul.f32 %v3143_v29, %v3127_v10 }
0x264e   :  { %v3273_v35 = vpack.c.bf16 %v3145_v30, %v3145_v30 }
0x2650   :  { %3279 = vrot.lane.b32.xlu1 %v3273_v35, %s4964_s12 }
0x268f   :  { %v3222_v33 = vpop.permute.xlu1 %3221 }
0x2690   :  { %v5966_v44 = vadd.f32 %v3222_v33, %v3214_v43  ;;  %v4675_v43 = vld [vmem:[%s6117_s7 + $0x8] sm:$0xff]  ;;  %v4680_v33 = vld [vmem:[%s6114_s5] sm:$0xff] }
0x2691   :  { %3450 = vmatpush.bf16.msrb.mxu0 %v4675_v43  ;;  %3574 = vmatpush.bf16.msra.mxu3 %v4680_v33 }
0x2692   :  { %4928 = vtanh.f32 %v5966_v44 }
0x2698   :  { %v4929_v42 = vpop.eup %4928 }
0x2699   :  { %3227 = vrot.lane.b32.xlu0 %v4929_v42, %s4963_s1  ;;  %v233_v42 = vadd.f32 %v5818_v12, %v5598_v40  ;;  %v4727_v40 = vld [vmem:[%s6116_s6] ss:$0 sm:$0xff] }
0x26c2   :  { %v3280_v46 = vpop.permute.xlu1 %3279 }
0x26c3   :  { %4432 = vmatmul.msk.bf16.vlgmr.msrb.gmra.mxu1 %vm272_vm0, %v3280_v46  ;;  %4441 = vmatmul.msk.bf16.vlgmr.msrb.gmra.mxu2 %vm272_vm0, %v3280_v46 }
0x270b   :  { %v3228_v47 = vpop.permute.xlu0 %3227 }
0x270c   :  { %v3230_v49 = vmul.f32 %v3228_v47, %v3212_v27  ;;  %v4678_v27 = vld [vmem:[%s6115_s4] sm:$0xff] }
0x270d   :  { %3545 = vmatpush.bf16.msra.mxu2 %v4678_v27 }
0x270e   :  { %v3231_v50 = vpack.c.bf16 %v3230_v49, %v3230_v49 }
0x2710   :  { %3241 = vrot.lane.b32.xlu2 %v3231_v50, %s4964_s12 }
0x2740   :  { %v3305_v58 = vpop.f32.mrf.mxu1 }
0x2741   :  { %v3309_v59 = vadd.f32 %v3305_v58, %v230_v56 }
0x2743   :  { %4930 = vtanh.f32 %v3309_v59  ;;  %v3310_v57 = vmul.f32 0.5, %v3309_v59 }
0x2745   :  { %4932 = vtanh.f32 %v3310_v57 }
0x2746   :  { %v3361_v60 = vpop.f32.mrf.mxu2 }
0x2747   :  { %v3362_v9 = vadd.f32 %v4725_v5, %v3361_v60 }
0x2748   :  { %v3307_v55 = vpop.f32.mrf.mxu1 }
0x2749   :  { %v4931_v61 = vpop.eup %4930 }
0x274a   :  { %3317 = vrot.lane.b32.xlu0 %v4931_v61, %s4963_s1 }
0x274b   :  { %v4933_v14 = vpop.eup %4932 }
0x274c   :  { %v3312_v1 = vmul.f32 0.5, %v4933_v14 }
0x274e   :  { %v3363_v62 = vpop.f32.mrf.mxu2  ;;  %v3313_v2 = vadd.f32 0.5, %v3312_v1 }
0x2750   :  { %v3315_v11 = vmul.f32 %v3313_v2, %v5947_v23 }
0x276a   :  { %v3242_v0 = vpop.permute.xlu2 %3241 }
0x276b   :  { %4423 = vmatmul.msk.bf16.vlgmr.msra.gmra.mxu0 %vm272_vm0, %v3242_v0  ;;  %4450 = vmatmul.msk.bf16.vlgmr.msrb.gmra.mxu3 %vm272_vm0, %v3242_v0 }
0x27bc   :  { %v3318_v39 = vpop.permute.xlu0 %3317 }
0x27bd   :  { %v3320_v3 = vmul.f32 %v3318_v39, %v3313_v2 }
0x27bf   :  { %3322 = vrot.lane.b32.xlu2 %v3320_v3, %s4964_s12 }
0x27e8   :  { %v3267_v63 = vpop.f32.mrf.mxu0 }
0x27e9   :  { %v3268_v6 = vadd.f32 %v4726_v4, %v3267_v63 }
0x27eb   :  { %3271 = vst [vmem:[%s6119_s9 + $0x78] sm:$0xff] %v3268_v6 }
0x27ee   :  { %v3390_v54 = vpop.f32.mrf.mxu3 }
0x27ef   :  { %v3394_v10 = vadd.f32 %v3390_v54, %v3362_v9 }
0x27f0   :  { %v3269_v38 = vpop.f32.mrf.mxu0 }
0x27f1   :  { %4934 = vtanh.f32 %v3394_v10  ;;  %v3395_v18 = vmul.f32 0.5, %v3394_v10 }
0x27f6   :  { %v3392_v8 = vpop.f32.mrf.mxu3 }
0x27f7   :  { %v4935_v13 = vpop.eup %4934 }
0x27f8   :  { %3402 = vrot.lane.b32.xlu1 %v4935_v13, %s4963_s1 }
0x2819   :  { %v3323_v16 = vpop.permute.xlu2 %3322 }
0x281a   :  { %v6002_v17 = vadd.f32 %v3323_v16, %v3315_v11 }
0x281c   :  { %4936 = vtanh.f32 %v6002_v17 }
0x281d   :  { %4938 = vtanh.f32 %v3395_v18 }
0x2822   :  { %v4937_v15 = vpop.eup %4936 }
0x2823   :  { %3328 = vrot.lane.b32.xlu1 %v4937_v15, %s4963_s1  ;;  %v4939_v37 = vpop.eup %4938 }
0x2824   :  { %v3397_v7 = vmul.f32 0.5, %v4939_v37 }
0x2826   :  { %v3398_v19 = vadd.f32 0.5, %v3397_v7 }
0x2828   :  { %v3400_v28 = vmul.f32 %v3398_v19, %v5966_v44  ;;  %v4674_v44 = vld [vmem:[%s6117_s7] sm:$0xff] }
0x2829   :  { %3451 = vmatpush.bf16.msrb.mxu0 %v4674_v44 }
0x286a   :  { %v3403_v20 = vpop.permute.xlu1 %3402 }
0x286b   :  { %v3405_v21 = vmul.f32 %v3403_v20, %v3398_v19  ;;  %v4687_v20 = vld [vmem:[%s6114_s5 + $0x8] sm:$0xff] }
0x286c   :  { %3706 = vmatpush.bf16.msrb.mxu2 %v4687_v20 }
0x286d   :  { %3407 = vrot.lane.b32.xlu0 %v3405_v21, %s4964_s12  ;;  %v4683_v21 = vld [vmem:[%s6117_s7 + $0x8] sm:$0xff] }
0x286e   :  { %3636 = vmatpush.bf16.msra.mxu0 %v4683_v21 }
0x2895   :  { %v3329_v22 = vpop.permute.xlu1 %3328 }
0x2896   :  { %v3331_v36 = vmul.f32 %v3329_v22, %v3313_v2  ;;  %v4686_v22 = vld [vmem:[%s6114_s5] sm:$0xff] }
0x2897   :  { %3707 = vmatpush.bf16.msrb.mxu2 %v4686_v22 }
0x2898   :  { %v3459_v23 = vpack.c.bf16 %v3331_v36, %v3331_v36  ;;  %v4682_v36 = vld [vmem:[%s6117_s7] sm:$0xff] }
0x2899   :  { %3637 = vmatpush.bf16.msra.mxu0 %v4682_v36 }
0x289a   :  { %3465 = vrot.lane.b32.xlu0 %v3459_v23, %s4964_s12 }
0x28df   :  { %v3408_v45 = vpop.permute.xlu0 %3407 }
0x28e0   :  { %v6021_v29 = vadd.f32 %v3408_v45, %v3400_v28 }
0x28e2   :  { %4940 = vtanh.f32 %v6021_v29 }
0x28e8   :  { %v4941_v30 = vpop.eup %4940 }
0x28e9   :  { %3413 = vrot.lane.b32.xlu2 %v4941_v30, %s4963_s1 }
0x290c   :  { %v3466_v35 = vpop.permute.xlu0 %3465 }
0x290d   :  { %4468 = vmatmul.msk.bf16.vlgmr.msra.gmra.mxu1 %vm272_vm0, %v3466_v35  ;;  %4477 = vmatmul.msk.bf16.vlgmr.msra.gmra.mxu2 %vm272_vm0, %v3466_v35  ;;  %v4729_v35 = vld [vmem:[%s6116_s6] ss:$0 sm:$0xff] }
0x2943   :  { %v3414_v31 = vpop.permute.xlu2 %3413 }
0x2944   :  { %v3416_v32 = vmul.f32 %v3414_v31, %v3398_v19  ;;  %v4684_v19 = vld [vmem:[%s6115_s4] sm:$0xff] }
0x2946   :  { %v3417_v34 = vpack.c.bf16 %v3416_v32, %v3416_v32 }
0x2948   :  { %3427 = vrot.lane.b32.xlu1 %v3417_v34, %s4964_s12 }
0x298a   :  { %v3491_v46 = vpop.f32.mrf.mxu1 }
0x298b   :  { %v3495_v47 = vadd.f32 %v3491_v46, %v233_v42 }
0x298d   :  { %4942 = vtanh.f32 %v3495_v47  ;;  %v3496_v58 = vmul.f32 0.5, %v3495_v47 }
0x298f   :  { %4944 = vtanh.f32 %v3496_v58 }
0x2990   :  { %v3547_v49 = vpop.f32.mrf.mxu2 }
0x2991   :  { %v3548_v59 = vadd.f32 %v4727_v40, %v3547_v49  ;;  %v4689_v40 = vld [vmem:[%s6117_s7 + $0x8] sm:$0xff] }
0x2992   :  { %v3493_v50 = vpop.f32.mrf.mxu1  ;;  %3769 = vmatpush.bf16.msrb.mxu3 %v4689_v40 }
0x2993   :  { %v4943_v51 = vpop.eup %4942 }
0x2994   :  { %3503 = vrot.lane.b32.xlu0 %v4943_v51, %s4963_s1 }
0x2995   :  { %v4945_v62 = vpop.eup %4944 }
0x2996   :  { %v3498_v14 = vmul.f32 0.5, %v4945_v62 }
0x2998   :  { %v3549_v52 = vpop.f32.mrf.mxu2  ;;  %v3499_v2 = vadd.f32 0.5, %v3498_v14 }
0x299a   :  { %v3501_v54 = vmul.f32 %v3499_v2, %v6002_v17  ;;  %v4685_v17 = vld [vmem:[%s6115_s4 + $0x8] sm:$0xff] }
0x299b   :  { %3677 = vmatpush.bf16.msrb.mxu1 %v4685_v17 }
0x299f   :  { %3678 = vmatpush.bf16.msrb.mxu1 %v4684_v19 }
0x29ba   :  { %v3428_v48 = vpop.permute.xlu1 %3427 }
0x29bb   :  { %4459 = vmatmul.msk.bf16.vlgmr.msrb.gmra.mxu0 %vm272_vm0, %v3428_v48  ;;  %4486 = vmatmul.msk.bf16.vlgmr.msra.gmra.mxu3 %vm272_vm0, %v3428_v48 }
0x2a06   :  { %v3504_v1 = vpop.permute.xlu0 %3503 }
0x2a07   :  { %v3506_v39 = vmul.f32 %v3504_v1, %v3499_v2 }
0x2a38   :  { %v3453_v56 = vpop.f32.mrf.mxu0 }
0x2a39   :  { %v3454_v12 = vadd.f32 %v4728_v53, %v3453_v56 }
0x2a3b   :  { %3457 = vst [vmem:[%s6119_s9 + $0x80] sm:$0xff] %v3454_v12  ;;  %v4688_v12 = vld [vmem:[%s6117_s7] sm:$0xff] }
0x2a3c   :  { %3770 = vmatpush.bf16.msrb.mxu3 %v4688_v12 }
0x2a3e   :  { %v3576_v60 = vpop.f32.mrf.mxu3 }
0x2a3f   :  { %v3580_v55 = vadd.f32 %v3576_v60, %v3548_v59 }
0x2a40   :  { %v3455_v61 = vpop.f32.mrf.mxu0 }
0x2a41   :  { %4946 = vtanh.f32 %v3580_v55  ;;  %v3581_v3 = vmul.f32 0.5, %v3580_v55  ;;  %v4731_v61 = vld [vmem:[%s6118_s8] ss:$0 sm:$0xff] }
0x2a43   :  { %4948 = vtanh.f32 %v3581_v3 }
0x2a46   :  { %v3578_v0 = vpop.f32.mrf.mxu3 }
0x2a47   :  { %v4947_v57 = vpop.eup %4946 }
0x2a48   :  { %3588 = vrot.lane.b32.xlu2 %v4947_v57, %s4963_s1 }
0x2a49   :  { %v4949_v4 = vpop.eup %4948 }
0x2a4a   :  { %v3583_v63 = vmul.f32 0.5, %v4949_v4 }
0x2a4c   :  { %v3584_v5 = vadd.f32 0.5, %v3583_v63 }
0x2a4e   :  { %v3586_v13 = vmul.f32 %v3584_v5, %v6021_v29  ;;  %v4730_v29 = vld [vmem:[%s6118_s8] ss:$0 sm:$0xff] }
0x2a50   :  { %3508 = vrot.lane.b32.xlu2 %v3506_v39, %s4964_s12 }
0x2aa2   :  { %v3589_v6 = vpop.permute.xlu2 %3588 }
0x2aa3   :  { %v3591_v9 = vmul.f32 %v3589_v6, %v3584_v5 }
0x2aa5   :  { %3593 = vrot.lane.b32.xlu1 %v3591_v9, %s4964_s12 }
0x2aaa   :  { %v3509_v10 = vpop.permute.xlu2 %3508 }
0x2aab   :  { %v3511_v38 = vadd.f32 %v3509_v10, %v3501_v54 }
0x2aad   :  { %4950 = vtanh.f32 %v3511_v38 }
0x2ab3   :  { %v4951_v8 = vpop.eup %4950 }
0x2ab4   :  { %3514 = vrot.lane.b32.xlu1 %v4951_v8, %s4963_s1 }
0x2b17   :  { %v3594_v11 = vpop.permute.xlu1 %3593 }
0x2b18   :  { %v3596_v16 = vadd.f32 %v3594_v11, %v3586_v13 }
0x2b1a   :  { %4952 = vtanh.f32 %v3596_v16 }
0x2b20   :  { %v4953_v15 = vpop.eup %4952 }
0x2b21   :  { %3599 = vrot.lane.b32.xlu0 %v4953_v15, %s4963_s1 }
0x2b26   :  { %v3515_v18 = vpop.permute.xlu1 %3514 }
0x2b27   :  { %v3517_v37 = vmul.f32 %v3515_v18, %v3499_v2 }
0x2b29   :  { %v3644_v7 = vpack.c.bf16 %v3517_v37, %v3517_v37 }
0x2b2b   :  { %3654 = vrot.lane.b32.xlu0 %v3644_v7, %s4964_s12 }
0x2b93   :  { %v3600_v23 = vpop.permute.xlu0 %3599 }
0x2b94   :  { %v3602_v24 = vmul.f32 %v3600_v23, %v3584_v5 }
0x2b96   :  { %v3603_v25 = vpack.c.bf16 %v3602_v24, %v3602_v24 }
0x2b98   :  { %3613 = vrot.lane.b32.xlu2 %v3603_v25, %s4964_s12 }
0x2b9d   :  { %v3655_v26 = vpop.permute.xlu0 %3654 }
0x2b9e   :  { %4504 = vmatmul.msk.bf16.vlgmr.msrb.gmra.mxu1 %vm272_vm0, %v3655_v26 }
0x2bf2   :  { %v3614_v27 = vpop.permute.xlu2 %3613 }
0x2bf3   :  { %4495 = vmatmul.msk.bf16.vlgmr.msra.gmra.mxu0 %vm272_vm0, %v3614_v27  ;;  %4513 = vmatmul.msk.bf16.vlgmr.msrb.gmra.mxu2 %vm272_vm0, %v3614_v27 }
0x2c1b   :  { %v3680_v28 = vpop.f32.mrf.mxu1 }
0x2c1c   :  { %v3681_v32 = vadd.f32 %v4729_v35, %v3680_v28 }
0x2c23   :  { %v3682_v45 = vpop.f32.mrf.mxu1 }
0x2c70   :  { %v3639_v30 = vpop.f32.mrf.mxu0 }
0x2c71   :  { %v3640_v31 = vadd.f32 %v4730_v29, %v3639_v30 }
0x2c73   :  { %3643 = vst [vmem:[%s6119_s9 + $0x88] sm:$0xff] %v3640_v31 }
0x2c76   :  { %v3709_v34 = vpop.f32.mrf.mxu2 }
0x2c77   :  { %v3713_v41 = vadd.f32 %v3709_v34, %v3681_v32 }
0x2c78   :  { %v3641_v43 = vpop.f32.mrf.mxu0 }
0x2c79   :  { %4954 = vtanh.f32 %v3713_v41  ;;  %v3714_v42 = vmul.f32 0.5, %v3713_v41 }
0x2c7b   :  { %4956 = vtanh.f32 %v3714_v42 }
0x2c7e   :  { %v3711_v33 = vpop.f32.mrf.mxu2 }
0x2c7f   :  { %v4955_v44 = vpop.eup %4954 }
0x2c80   :  { %3721 = vrot.lane.b32.xlu1 %v4955_v44, %s4963_s1 }
0x2c81   :  { %v4957_v46 = vpop.eup %4956 }
0x2c82   :  { %v3716_v47 = vmul.f32 0.5, %v4957_v46 }
0x2c84   :  { %v3717_v49 = vadd.f32 0.5, %v3716_v47 }
0x2c86   :  { %v3719_v52 = vmul.f32 %v3717_v49, %v3596_v16 }
0x2cf2   :  { %v3722_v50 = vpop.permute.xlu1 %3721 }
0x2cf3   :  { %v3724_v51 = vmul.f32 %v3722_v50, %v3717_v49 }
0x2cf5   :  { %3726 = vrot.lane.b32.xlu2 %v3724_v51, %s4964_s12 }
0x2d4f   :  { %v3727_v48 = vpop.permute.xlu2 %3726 }
0x2d50   :  { %v3729_v53 = vadd.f32 %v3727_v48, %v3719_v52 }
0x2d52   :  { %4958 = vtanh.f32 %v3729_v53 }
0x2d58   :  { %v4959_v56 = vpop.eup %4958 }
0x2d59   :  { %3732 = vrot.lane.b32.xlu0 %v4959_v56, %s4963_s1 }
0x2dcb   :  { %v3733_v58 = vpop.permute.xlu0 %3732 }
0x2dcc   :  { %v3735_v59 = vmul.f32 %v3733_v58, %v3717_v49 }
0x2dce   :  { %v3736_v60 = vpack.c.bf16 %v3735_v59, %v3735_v59 }
0x2dd0   :  { %3746 = vrot.lane.b32.xlu1 %v3736_v60, %s4964_s12 }
0x2e42   :  { %v3747_v55 = vpop.permute.xlu1 %3746 }
0x2e43   :  { %4522 = vmatmul.msk.bf16.vlgmr.msrb.gmra.mxu3 %vm272_vm0, %v3747_v55 }
0x2ec6   :  { %v3772_v62 = vpop.f32.mrf.mxu3 }
0x2ec7   :  { %v3773_v0 = vadd.f32 %v4731_v61, %v3772_v62 }
0x2ec9   :  { %3776 = vst [vmem:[%s6119_s9 + $0x90] sm:$0xff] %v3773_v0 }
0x2ece   :  { %v3774_v57 = vpop.f32.mrf.mxu3 }

</bundles_post_ra>
